<compile_context>
chip_gen: v7x
topology: tpu7x:2x2x1
jax: 0.10.0
libtpu: 0.0.40
codegen_flags: <defaults>
</compile_context>

<pallas_src>
import functools

import numpy as np
import jax
import jax.numpy as jnp
from jax.experimental import pallas as pl
from jax.experimental.pallas import tpu as pltpu

NUM_HEADS = 8
NEG_SLOPE = 0.2
NEG_INF = -1e30
LANE = 128
SUBLANE = 8


def _round_up(x, m):
    return ((x + m - 1) // m) * m


# -----------------------------------------------------------------------------
# Pallas kernel: dense-adjacency multi-head GAT, one graph problem per grid step.
# -----------------------------------------------------------------------------
def gat_kernel(widx_ref, h_ref, adjb_ref, wf_ref, b_ref, out_ref, *,
               num_heads, head_dim):
    del widx_ref  # scalar-prefetch ref; consumed only by the index_maps
    H, Dh = num_heads, head_dim
    HD = H * Dh
    Np = h_ref.shape[1]
    HDp = out_ref.shape[-1]

    x = h_ref[0]                      # (Np, d_in)  bf16
    wf = wf_ref[0]                    # (d_in, Fp)  bf16  = [W | W@AL | W@AR | 0pad]
    # One fused, lane-dense MXU pass: projected features + both attention terms.
    zf = jnp.dot(x, wf, preferred_element_type=jnp.float32)   # (Np, Fp) f32
    z = zf[:, :HD]                                            # (Np, HD)
    el = zf[:, HD:HD + H]                                     # (Np, H) source term
    er = zf[:, HD + H:HD + 2 * H]                             # (Np, H) dest term
    elT = el.T                                                # (H, Np)
    z_bf = z.astype(jnp.bfloat16)

    adj_b = adjb_ref[0].astype(jnp.float32)    # (Np, Np): 0 edge / -1e30 off-edge

    head_outs = []
    for h in range(H):                # 8 unrolled heads; per-head temps stay small
        # logits[i, j] = leaky_relu(er[i, h] + el[j, h]) for edge j -> i
        s = er[:, h:h + 1] + elT[h:h + 1, :]                  # (Np, Np)
        s = jnp.maximum(s, NEG_SLOPE * s)                     # leaky_relu, no select
        s = s + adj_b                                         # additive edge mask
        m = jnp.max(s, axis=1, keepdims=True)
        p = jnp.exp(s - m)                                    # non-edges underflow to 0
        denom = jnp.sum(p, axis=1, keepdims=True)             # >= 1 (self-loop per row)
        alpha = p * pl.reciprocal(denom, approx=True)
        head_outs.append(
            jnp.dot(alpha.astype(jnp.bfloat16), z_bf[:, h * Dh:(h + 1) * Dh],
                    preferred_element_type=jnp.float32))

    if HDp > HD:                                              # pad to 128 lanes so the
        head_outs.append(jnp.zeros((Np, HDp - HD), jnp.float32))  # store is unmasked
    out = jnp.concatenate(head_outs, axis=-1)                 # (Np, HDp)
    out_ref[0] = out + b_ref[0]                               # bias added once, 1 store


def gat_forward_batched(widx, feats, adj_bias, w_fused, bias, *,
                        num_heads, head_dim):
    """Run all GAT sub-problems in one pallas_call (leading grid axis = problem)."""
    P, Np, d_in = feats.shape
    _, _, Fp = w_fused.shape
    HDp = bias.shape[-1]

    kernel = functools.partial(gat_kernel, num_heads=num_heads, head_dim=head_dim)
    out = pl.pallas_call(
        kernel,
        out_shape=jax.ShapeDtypeStruct((P, Np, HDp), jnp.float32),
        grid_spec=pltpu.PrefetchScalarGridSpec(
            num_scalar_prefetch=1,            # widx: per-problem etype weight index
            grid=(P,),
            in_specs=[
                pl.BlockSpec((1, Np, d_in), lambda p, widx: (p, 0, 0)),       # feats
                pl.BlockSpec((1, Np, Np), lambda p, widx: (p, 0, 0)),         # adj mask
                pl.BlockSpec((1, d_in, Fp), lambda p, widx: (widx[p], 0, 0)),  # weights
                pl.BlockSpec((1, 1, HDp), lambda p, widx: (widx[p], 0, 0)),    # bias
            ],
            out_specs=pl.BlockSpec((1, Np, HDp), lambda p, widx: (p, 0, 0)),
        ),
        compiler_params=pltpu.CompilerParams(
            dimension_semantics=("parallel",)),
    )(widx, feats, adj_bias, w_fused, bias)
    return out


# -----------------------------------------------------------------------------
# Glue replicating BiGraphContrastLayer / ContrastLayer forward semantics.
# -----------------------------------------------------------------------------
def fuse_gat_params(params, d_in_pad, hd_pad):
    """Concatenate [W | W@AL | W@AR], pad lanes to 128 and rows to d_in_pad."""
    W, AL, AR, bias = params["W"], params["AL"], params["AR"], params["bias"]
    d_in, HD = W.shape
    WF = jnp.concatenate([W, W @ AL, W @ AR], axis=1)          # (d_in, HD + 2H)
    F = WF.shape[1]
    Fp = _round_up(max(F, LANE), LANE)
    WF = jnp.pad(WF, ((0, d_in_pad - d_in), (0, Fp - F)))
    b = jnp.pad(bias.reshape(1, HD), ((0, 0), (0, hd_pad - HD)))
    return WF.astype(jnp.bfloat16), b.astype(jnp.float32)


def _build_problem(stype, dtype, src_feat, dst_feat, edges, num_src, num_dst,
                   Np, d_in_pad):
    """Pad one homogeneous sub-graph to (Np, ...) and build its additive adj mask."""
    src_ids, dst_ids = edges
    src_feat = np.asarray(src_feat, np.float32)
    dst_feat = np.asarray(dst_feat, np.float32)
    d_in = src_feat.shape[1]
    if stype == dtype:
        feats = src_feat
        N = num_src
        src_off = dst_off = 0
    else:
        # dgl.to_homogeneous orders node blocks by sorted ntypes.
        ntypes = sorted([stype, dtype])
        off, offsets, feat_list = 0, {}, []
        for nt in ntypes:
            offsets[nt] = off
            if nt == stype:
                feat_list.append(src_feat)
                off += num_src
            else:
                feat_list.append(dst_feat)
                off += num_dst
        feats = np.concatenate(feat_list, axis=0)
        N = num_src + num_dst
        src_off, dst_off = offsets[stype], offsets[dtype]

    feats_pad = np.zeros((Np, d_in_pad), np.float32)
    feats_pad[:N, :d_in] = feats

    adj_b = np.full((Np, Np), NEG_INF, np.float32)
    adj_b[np.arange(Np), np.arange(Np)] = 0.0  # add_self_loop (also on padded rows)
    adj_b[np.asarray(dst_ids) + dst_off, np.asarray(src_ids) + src_off] = 0.0
    return feats_pad, adj_b, dst_off


def contrast_layer_forward(bigraph_params, graph, feat):
    n_feat = {}

    # Shared lane-dense pad across all sub-problems (one compile, one pallas_call).
    d_in = None
    max_n = 1
    for stype, etype, dtype in graph["canonical_etypes"]:
        src_ids, _ = graph["edges"][etype]
        if len(src_ids) == 0:
            continue
        n = graph["num_nodes"][stype] if stype == dtype else (
            graph["num_nodes"][stype] + graph["num_nodes"][dtype])
        max_n = max(max_n, n)
        d_in = feat[stype][next(iter(feat[stype]))].shape[1]
    if d_in is None:
        return n_feat
    Np = _round_up(max_n, LANE)
    d_in_pad = _round_up(d_in, SUBLANE)

    problems = []   # (dtype, out_key, dst_off, num_dst, feats_np, adj_np, etype)
    for stype, etype, dtype in graph["canonical_etypes"]:
        src_ids, dst_ids = graph["edges"][etype]
        if len(src_ids) == 0:
            continue
        num_src = graph["num_nodes"][stype]
        num_dst = graph["num_nodes"][dtype]
        if dtype not in n_feat:
            n_feat[dtype] = {dtype: feat[dtype][dtype][:num_dst]}
        for s_etype in feat[stype]:
            src_feat = feat[stype][s_etype]
            dst_feat = src_feat if stype == dtype else feat[dtype][dtype][:num_dst]
            feats_np, adj_np, dst_off = _build_problem(
                stype, dtype, src_feat, dst_feat, (src_ids, dst_ids),
                num_src, num_dst, Np, d_in_pad)
            problems.append((dtype, dtype + '-' + s_etype, dst_off, num_dst,
                             feats_np, adj_np, etype))

    if not problems:
        return n_feat

    HD = next(iter(bigraph_params.values()))["W"].shape[1]
    H = NUM_HEADS
    Dh = HD // H
    HDp = _round_up(HD, LANE)

    # Per-etype fused weights; each problem only carries an index (scalar prefetch).
    etypes_used = sorted({p[6] for p in problems})
    eidx = {et: i for i, et in enumerate(etypes_used)}
    fused = [fuse_gat_params(bigraph_params[et], d_in_pad, HDp) for et in etypes_used]
    wf_all = jnp.stack([f[0] for f in fused])                  # (E, d_in_pad, Fp) bf16
    b_all = jnp.stack([f[1] for f in fused])                   # (E, 1, HDp)       f32
    widx = jnp.asarray([eidx[p[6]] for p in problems], jnp.int32)   # (P,)

    feats = jnp.asarray(np.stack([p[4] for p in problems]), jnp.bfloat16)  # (P,Np,d)
    adjb = jnp.asarray(np.stack([p[5] for p in problems]), jnp.bfloat16)   # (P,Np,Np)

    out = gat_forward_batched(widx, feats, adjb, wf_all, b_all,
                              num_heads=H, head_dim=Dh)

    for i, (dtype, key, dst_off, num_dst, *_rest) in enumerate(problems):
        # pos_nodes = nodes whose _TYPE == dtype (contiguous block in homo order)
        n_feat[dtype][key] = out[i, dst_off:dst_off + num_dst, :HD]
    return n_feat


# -----------------------------------------------------------------------------
# Deterministic parameter init (GATConv: fc weight, attn_l, attn_r, bias).
# -----------------------------------------------------------------------------
def init_gat_params(key, in_dim, hidden_dim, num_heads=NUM_HEADS):
    head_dim = hidden_dim // num_heads
    k1, k2, k3 = jax.random.split(key, 3)
    W = jax.random.normal(k1, (in_dim, num_heads * head_dim), jnp.float32)
    W = W * (1.0 / np.sqrt(in_dim))
    attn_l = jax.random.normal(k2, (num_heads, head_dim), jnp.float32) * 0.1
    attn_r = jax.random.normal(k3, (num_heads, head_dim), jnp.float32) * 0.1
    # Block-diagonal selection matrices so el = z @ AL gives per-head sums.
    eye = jnp.eye(num_heads, dtype=jnp.float32)
    AL = (attn_l.reshape(num_heads, head_dim, 1)
          * eye.reshape(num_heads, 1, num_heads)).reshape(num_heads * head_dim,
                                                          num_heads)
    AR = (attn_r.reshape(num_heads, head_dim, 1)
          * eye.reshape(num_heads, 1, num_heads)).reshape(num_heads * head_dim,
                                                          num_heads)
    bias = jnp.zeros((num_heads * head_dim,), jnp.float32)
    return {"W": W, "AL": AL, "AR": AR, "bias": bias}


if __name__ == "__main__":
    in_dim = 32
    hidden_dim = 64
    attn_drop = 0.5  # identity at eval time (see TODO above)

    num_users = 12
    num_items = 9

    canonical_etypes = [
        ("user", "buys", "item"),
        ("item", "bought-by", "user"),
        ("user", "follows", "user"),
    ]

    buys_src = np.array([0, 1, 2, 3, 4, 5, 6, 7, 8, 9, 10, 11], np.int32)
    buys_dst = np.array([0, 1, 2, 3, 4, 5, 6, 7, 8, 0, 1, 2], np.int32)
    follows_src = np.array([0, 1, 2, 3, 4, 5], np.int32)
    follows_dst = np.array([1, 2, 3, 4, 5, 0], np.int32)

    graph = {
        "canonical_etypes": canonical_etypes,
        "num_nodes": {"user": num_users, "item": num_items},
        "edges": {
            "buys": (buys_src, buys_dst),
            "bought-by": (buys_dst, buys_src),
            "follows": (follows_src, follows_dst),
        },
    }

    key = jax.random.PRNGKey(0)
    ku0, ku1, ki0, ki1 = jax.random.split(jax.random.fold_in(key, 1), 4)
    feat = {
        "user": {
            "user": jax.random.normal(ku0, (num_users, in_dim), jnp.float32),
            "bought-by": jax.random.normal(ku1, (num_users, in_dim), jnp.float32),
        },
        "item": {
            "item": jax.random.normal(ki0, (num_items, in_dim), jnp.float32),
            "buys": jax.random.normal(ki1, (num_items, in_dim), jnp.float32),
        },
    }

    bigraph_params = {
        etype: init_gat_params(jax.random.fold_in(key, 100 + i), in_dim, hidden_dim)
        for i, (_, etype, _) in enumerate(canonical_etypes)
    }

    n_feat = contrast_layer_forward(bigraph_params, graph, feat)
    n_feat = jax.tree_util.tree_map(jax.block_until_ready, n_feat)

    # Output keys follow the module: dtype + '-' + s_etype, s_etype in feat[stype].
    assert n_feat["item"]["item"].shape == (num_items, in_dim)
    assert n_feat["item"]["item-user"].shape == (num_items, hidden_dim)
    assert n_feat["item"]["item-bought-by"].shape == (num_items, hidden_dim)
    assert n_feat["user"]["user"].shape == (num_users, in_dim)
    assert n_feat["user"]["user-item"].shape == (num_users, hidden_dim)
    assert n_feat["user"]["user-buys"].shape == (num_users, hidden_dim)
    assert n_feat["user"]["user-user"].shape == (num_users, hidden_dim)
    assert n_feat["user"]["user-bought-by"].shape == (num_users, hidden_dim)
    for d in n_feat.values():
        for v in d.values():
            assert bool(jnp.all(jnp.isfinite(v)))

    print("KERNEL_OK")
</pallas_src>

<mosaic_0001>
module attributes {stable_mosaic.version = 11 : i64} {
  func.func @gat_kernel(%arg0: i32, %arg1: memref<6xi32, #tpu.memory_space<smem>>, %arg2: memref<1x128x32xbf16, #tpu.memory_space<vmem>>, %arg3: memref<1x128x128xbf16, #tpu.memory_space<vmem>>, %arg4: memref<1x32x128xbf16, #tpu.memory_space<vmem>>, %arg5: memref<1x1x128xf32, #tpu.memory_space<vmem>>, %arg6: memref<1x128x128xf32, #tpu.memory_space<vmem>>) attributes {dimension_semantics = [#tpu.dimension_semantics<parallel>], iteration_bounds = array<i64: 6>, scalar_prefetch = 1 : i64, scratch_operands = 0 : i64, tpu.core_type = #tpu.core_type<tc>, window_params = [{transform_indices = @transform_0, window_bounds = array<i64: 1, 128, 32>}, {transform_indices = @transform_1, window_bounds = array<i64: 1, 128, 128>}, {transform_indices = @transform_2, window_bounds = array<i64: 1, 32, 128>}, {transform_indices = @transform_3, window_bounds = array<i64: 1, 1, 128>}, {transform_indices = @transform_4, window_bounds = array<i64: 1, 128, 128>}]} {
    %c0 = arith.constant 0 : index
    %c0_0 = arith.constant 0 : index
    %c0_1 = arith.constant 0 : index
    %0 = vector.load %arg2[%c0, %c0_0, %c0_1] : memref<1x128x32xbf16, #tpu.memory_space<vmem>>, vector<1x128x32xbf16>
    %1 = vector.shape_cast %0 : vector<1x128x32xbf16> to vector<128x32xbf16>
    %c0_2 = arith.constant 0 : index
    %c0_3 = arith.constant 0 : index
    %c0_4 = arith.constant 0 : index
    %2 = vector.load %arg4[%c0_2, %c0_3, %c0_4] : memref<1x32x128xbf16, #tpu.memory_space<vmem>>, vector<1x32x128xbf16>
    %3 = vector.shape_cast %2 : vector<1x32x128xbf16> to vector<32x128xbf16>
    %cst = arith.constant dense<0.000000e+00> : vector<128x128xf32>
    %4 = tpu.matmul %1, %3, %cst {dimension_numbers = #tpu.dot_dimension_numbers<[1], [0], [0], [1], [0, 0, 1, 1], [], []>} : vector<128x32xbf16>, vector<32x128xbf16>, vector<128x128xf32> -> vector<128x128xf32>
    %5 = vector.extract_strided_slice %4 {offsets = [0, 0], sizes = [128, 64], strides = [1, 1]} : vector<128x128xf32> to vector<128x64xf32>
    %6 = vector.extract_strided_slice %4 {offsets = [0, 64], sizes = [128, 8], strides = [1, 1]} : vector<128x128xf32> to vector<128x8xf32>
    %7 = vector.extract_strided_slice %4 {offsets = [0, 72], sizes = [128, 8], strides = [1, 1]} : vector<128x128xf32> to vector<128x8xf32>
    %8 = tpu.transpose %6, [1, 0] : vector<128x8xf32> -> vector<8x128xf32>
    %9 = arith.truncf %5 : vector<128x64xf32> to vector<128x64xbf16>
    %c0_5 = arith.constant 0 : index
    %c0_6 = arith.constant 0 : index
    %c0_7 = arith.constant 0 : index
    %10 = vector.load %arg3[%c0_5, %c0_6, %c0_7] : memref<1x128x128xbf16, #tpu.memory_space<vmem>>, vector<1x128x128xbf16>
    %11 = vector.shape_cast %10 : vector<1x128x128xbf16> to vector<128x128xbf16>
    %12 = arith.extf %11 : vector<128x128xbf16> to vector<128x128xf32>
    %13 = vector.extract_strided_slice %7 {offsets = [0, 0], sizes = [128, 1], strides = [1, 1]} : vector<128x8xf32> to vector<128x1xf32>
    %14 = vector.extract_strided_slice %8 {offsets = [0, 0], sizes = [1, 128], strides = [1, 1]} : vector<8x128xf32> to vector<1x128xf32>
    %15 = vector.broadcast %13 : vector<128x1xf32> to vector<128x128xf32>
    %16 = vector.broadcast %14 : vector<1x128xf32> to vector<128x128xf32>
    %17 = arith.addf %15, %16 : vector<128x128xf32>
    %cst_8 = arith.constant 2.000000e-01 : f32
    %18 = vector.broadcast %cst_8 : f32 to vector<128x128xf32>
    %19 = arith.mulf %18, %17 : vector<128x128xf32>
    %20 = arith.maximumf %17, %19 : vector<128x128xf32>
    %21 = arith.addf %20, %12 : vector<128x128xf32>
    %cst_9 = arith.constant dense<0xFF800000> : vector<128xf32>
    %22 = vector.multi_reduction <maximumf>, %21, %cst_9 [1] : vector<128x128xf32> to vector<128xf32>
    %23 = vector.shape_cast %22 : vector<128xf32> to vector<128x1xf32>
    %24 = vector.broadcast %23 : vector<128x1xf32> to vector<128x128xf32>
    %25 = arith.subf %21, %24 : vector<128x128xf32>
    %26 = math.exp %25 : vector<128x128xf32>
    %cst_10 = arith.constant dense<0.000000e+00> : vector<128xf32>
    %27 = vector.multi_reduction <add>, %26, %cst_10 [1] : vector<128x128xf32> to vector<128xf32>
    %28 = vector.shape_cast %27 : vector<128xf32> to vector<128x1xf32>
    %29 = tpu.reciprocal %28 {approx = true} : vector<128x1xf32> -> vector<128x1xf32>
    %30 = vector.broadcast %29 : vector<128x1xf32> to vector<128x128xf32>
    %31 = arith.mulf %26, %30 : vector<128x128xf32>
    %32 = arith.truncf %31 : vector<128x128xf32> to vector<128x128xbf16>
    %33 = vector.extract_strided_slice %9 {offsets = [0, 0], sizes = [128, 8], strides = [1, 1]} : vector<128x64xbf16> to vector<128x8xbf16>
    %cst_11 = arith.constant dense<0.000000e+00> : vector<128x8xf32>
    %34 = tpu.matmul %32, %33, %cst_11 {dimension_numbers = #tpu.dot_dimension_numbers<[1], [0], [0], [1], [0, 0, 1, 1], [], []>} : vector<128x128xbf16>, vector<128x8xbf16>, vector<128x8xf32> -> vector<128x8xf32>
    %35 = vector.extract_strided_slice %7 {offsets = [0, 1], sizes = [128, 1], strides = [1, 1]} : vector<128x8xf32> to vector<128x1xf32>
    %36 = vector.extract_strided_slice %8 {offsets = [1, 0], sizes = [1, 128], strides = [1, 1]} : vector<8x128xf32> to vector<1x128xf32>
    %37 = vector.broadcast %35 : vector<128x1xf32> to vector<128x128xf32>
    %38 = vector.broadcast %36 : vector<1x128xf32> to vector<128x128xf32>
    %39 = arith.addf %37, %38 : vector<128x128xf32>
    %cst_12 = arith.constant 2.000000e-01 : f32
    %40 = vector.broadcast %cst_12 : f32 to vector<128x128xf32>
    %41 = arith.mulf %40, %39 : vector<128x128xf32>
    %42 = arith.maximumf %39, %41 : vector<128x128xf32>
    %43 = arith.addf %42, %12 : vector<128x128xf32>
    %cst_13 = arith.constant dense<0xFF800000> : vector<128xf32>
    %44 = vector.multi_reduction <maximumf>, %43, %cst_13 [1] : vector<128x128xf32> to vector<128xf32>
    %45 = vector.shape_cast %44 : vector<128xf32> to vector<128x1xf32>
    %46 = vector.broadcast %45 : vector<128x1xf32> to vector<128x128xf32>
    %47 = arith.subf %43, %46 : vector<128x128xf32>
    %48 = math.exp %47 : vector<128x128xf32>
    %cst_14 = arith.constant dense<0.000000e+00> : vector<128xf32>
    %49 = vector.multi_reduction <add>, %48, %cst_14 [1] : vector<128x128xf32> to vector<128xf32>
    %50 = vector.shape_cast %49 : vector<128xf32> to vector<128x1xf32>
    %51 = tpu.reciprocal %50 {approx = true} : vector<128x1xf32> -> vector<128x1xf32>
    %52 = vector.broadcast %51 : vector<128x1xf32> to vector<128x128xf32>
    %53 = arith.mulf %48, %52 : vector<128x128xf32>
    %54 = arith.truncf %53 : vector<128x128xf32> to vector<128x128xbf16>
    %55 = vector.extract_strided_slice %9 {offsets = [0, 8], sizes = [128, 8], strides = [1, 1]} : vector<128x64xbf16> to vector<128x8xbf16>
    %cst_15 = arith.constant dense<0.000000e+00> : vector<128x8xf32>
    %56 = tpu.matmul %54, %55, %cst_15 {dimension_numbers = #tpu.dot_dimension_numbers<[1], [0], [0], [1], [0, 0, 1, 1], [], []>} : vector<128x128xbf16>, vector<128x8xbf16>, vector<128x8xf32> -> vector<128x8xf32>
    %57 = vector.extract_strided_slice %7 {offsets = [0, 2], sizes = [128, 1], strides = [1, 1]} : vector<128x8xf32> to vector<128x1xf32>
    %58 = vector.extract_strided_slice %8 {offsets = [2, 0], sizes = [1, 128], strides = [1, 1]} : vector<8x128xf32> to vector<1x128xf32>
    %59 = vector.broadcast %57 : vector<128x1xf32> to vector<128x128xf32>
    %60 = vector.broadcast %58 : vector<1x128xf32> to vector<128x128xf32>
    %61 = arith.addf %59, %60 : vector<128x128xf32>
    %cst_16 = arith.constant 2.000000e-01 : f32
    %62 = vector.broadcast %cst_16 : f32 to vector<128x128xf32>
    %63 = arith.mulf %62, %61 : vector<128x128xf32>
    %64 = arith.maximumf %61, %63 : vector<128x128xf32>
    %65 = arith.addf %64, %12 : vector<128x128xf32>
    %cst_17 = arith.constant dense<0xFF800000> : vector<128xf32>
    %66 = vector.multi_reduction <maximumf>, %65, %cst_17 [1] : vector<128x128xf32> to vector<128xf32>
    %67 = vector.shape_cast %66 : vector<128xf32> to vector<128x1xf32>
    %68 = vector.broadcast %67 : vector<128x1xf32> to vector<128x128xf32>
    %69 = arith.subf %65, %68 : vector<128x128xf32>
    %70 = math.exp %69 : vector<128x128xf32>
    %cst_18 = arith.constant dense<0.000000e+00> : vector<128xf32>
    %71 = vector.multi_reduction <add>, %70, %cst_18 [1] : vector<128x128xf32> to vector<128xf32>
    %72 = vector.shape_cast %71 : vector<128xf32> to vector<128x1xf32>
    %73 = tpu.reciprocal %72 {approx = true} : vector<128x1xf32> -> vector<128x1xf32>
    %74 = vector.broadcast %73 : vector<128x1xf32> to vector<128x128xf32>
    %75 = arith.mulf %70, %74 : vector<128x128xf32>
    %76 = arith.truncf %75 : vector<128x128xf32> to vector<128x128xbf16>
    %77 = vector.extract_strided_slice %9 {offsets = [0, 16], sizes = [128, 8], strides = [1, 1]} : vector<128x64xbf16> to vector<128x8xbf16>
    %cst_19 = arith.constant dense<0.000000e+00> : vector<128x8xf32>
    %78 = tpu.matmul %76, %77, %cst_19 {dimension_numbers = #tpu.dot_dimension_numbers<[1], [0], [0], [1], [0, 0, 1, 1], [], []>} : vector<128x128xbf16>, vector<128x8xbf16>, vector<128x8xf32> -> vector<128x8xf32>
    %79 = vector.extract_strided_slice %7 {offsets = [0, 3], sizes = [128, 1], strides = [1, 1]} : vector<128x8xf32> to vector<128x1xf32>
    %80 = vector.extract_strided_slice %8 {offsets = [3, 0], sizes = [1, 128], strides = [1, 1]} : vector<8x128xf32> to vector<1x128xf32>
    %81 = vector.broadcast %79 : vector<128x1xf32> to vector<128x128xf32>
    %82 = vector.broadcast %80 : vector<1x128xf32> to vector<128x128xf32>
    %83 = arith.addf %81, %82 : vector<128x128xf32>
    %cst_20 = arith.constant 2.000000e-01 : f32
    %84 = vector.broadcast %cst_20 : f32 to vector<128x128xf32>
    %85 = arith.mulf %84, %83 : vector<128x128xf32>
    %86 = arith.maximumf %83, %85 : vector<128x128xf32>
    %87 = arith.addf %86, %12 : vector<128x128xf32>
    %cst_21 = arith.constant dense<0xFF800000> : vector<128xf32>
    %88 = vector.multi_reduction <maximumf>, %87, %cst_21 [1] : vector<128x128xf32> to vector<128xf32>
    %89 = vector.shape_cast %88 : vector<128xf32> to vector<128x1xf32>
    %90 = vector.broadcast %89 : vector<128x1xf32> to vector<128x128xf32>
    %91 = arith.subf %87, %90 : vector<128x128xf32>
    %92 = math.exp %91 : vector<128x128xf32>
    %cst_22 = arith.constant dense<0.000000e+00> : vector<128xf32>
    %93 = vector.multi_reduction <add>, %92, %cst_22 [1] : vector<128x128xf32> to vector<128xf32>
    %94 = vector.shape_cast %93 : vector<128xf32> to vector<128x1xf32>
    %95 = tpu.reciprocal %94 {approx = true} : vector<128x1xf32> -> vector<128x1xf32>
    %96 = vector.broadcast %95 : vector<128x1xf32> to vector<128x128xf32>
    %97 = arith.mulf %92, %96 : vector<128x128xf32>
    %98 = arith.truncf %97 : vector<128x128xf32> to vector<128x128xbf16>
    %99 = vector.extract_strided_slice %9 {offsets = [0, 24], sizes = [128, 8], strides = [1, 1]} : vector<128x64xbf16> to vector<128x8xbf16>
    %cst_23 = arith.constant dense<0.000000e+00> : vector<128x8xf32>
    %100 = tpu.matmul %98, %99, %cst_23 {dimension_numbers = #tpu.dot_dimension_numbers<[1], [0], [0], [1], [0, 0, 1, 1], [], []>} : vector<128x128xbf16>, vector<128x8xbf16>, vector<128x8xf32> -> vector<128x8xf32>
    %101 = vector.extract_strided_slice %7 {offsets = [0, 4], sizes = [128, 1], strides = [1, 1]} : vector<128x8xf32> to vector<128x1xf32>
    %102 = vector.extract_strided_slice %8 {offsets = [4, 0], sizes = [1, 128], strides = [1, 1]} : vector<8x128xf32> to vector<1x128xf32>
    %103 = vector.broadcast %101 : vector<128x1xf32> to vector<128x128xf32>
    %104 = vector.broadcast %102 : vector<1x128xf32> to vector<128x128xf32>
    %105 = arith.addf %103, %104 : vector<128x128xf32>
    %cst_24 = arith.constant 2.000000e-01 : f32
    %106 = vector.broadcast %cst_24 : f32 to vector<128x128xf32>
    %107 = arith.mulf %106, %105 : vector<128x128xf32>
    %108 = arith.maximumf %105, %107 : vector<128x128xf32>
    %109 = arith.addf %108, %12 : vector<128x128xf32>
    %cst_25 = arith.constant dense<0xFF800000> : vector<128xf32>
    %110 = vector.multi_reduction <maximumf>, %109, %cst_25 [1] : vector<128x128xf32> to vector<128xf32>
    %111 = vector.shape_cast %110 : vector<128xf32> to vector<128x1xf32>
    %112 = vector.broadcast %111 : vector<128x1xf32> to vector<128x128xf32>
    %113 = arith.subf %109, %112 : vector<128x128xf32>
    %114 = math.exp %113 : vector<128x128xf32>
    %cst_26 = arith.constant dense<0.000000e+00> : vector<128xf32>
    %115 = vector.multi_reduction <add>, %114, %cst_26 [1] : vector<128x128xf32> to vector<128xf32>
    %116 = vector.shape_cast %115 : vector<128xf32> to vector<128x1xf32>
    %117 = tpu.reciprocal %116 {approx = true} : vector<128x1xf32> -> vector<128x1xf32>
    %118 = vector.broadcast %117 : vector<128x1xf32> to vector<128x128xf32>
    %119 = arith.mulf %114, %118 : vector<128x128xf32>
    %120 = arith.truncf %119 : vector<128x128xf32> to vector<128x128xbf16>
    %121 = vector.extract_strided_slice %9 {offsets = [0, 32], sizes = [128, 8], strides = [1, 1]} : vector<128x64xbf16> to vector<128x8xbf16>
    %cst_27 = arith.constant dense<0.000000e+00> : vector<128x8xf32>
    %122 = tpu.matmul %120, %121, %cst_27 {dimension_numbers = #tpu.dot_dimension_numbers<[1], [0], [0], [1], [0, 0, 1, 1], [], []>} : vector<128x128xbf16>, vector<128x8xbf16>, vector<128x8xf32> -> vector<128x8xf32>
    %123 = vector.extract_strided_slice %7 {offsets = [0, 5], sizes = [128, 1], strides = [1, 1]} : vector<128x8xf32> to vector<128x1xf32>
    %124 = vector.extract_strided_slice %8 {offsets = [5, 0], sizes = [1, 128], strides = [1, 1]} : vector<8x128xf32> to vector<1x128xf32>
    %125 = vector.broadcast %123 : vector<128x1xf32> to vector<128x128xf32>
    %126 = vector.broadcast %124 : vector<1x128xf32> to vector<128x128xf32>
    %127 = arith.addf %125, %126 : vector<128x128xf32>
    %cst_28 = arith.constant 2.000000e-01 : f32
    %128 = vector.broadcast %cst_28 : f32 to vector<128x128xf32>
    %129 = arith.mulf %128, %127 : vector<128x128xf32>
    %130 = arith.maximumf %127, %129 : vector<128x128xf32>
    %131 = arith.addf %130, %12 : vector<128x128xf32>
    %cst_29 = arith.constant dense<0xFF800000> : vector<128xf32>
    %132 = vector.multi_reduction <maximumf>, %131, %cst_29 [1] : vector<128x128xf32> to vector<128xf32>
    %133 = vector.shape_cast %132 : vector<128xf32> to vector<128x1xf32>
    %134 = vector.broadcast %133 : vector<128x1xf32> to vector<128x128xf32>
    %135 = arith.subf %131, %134 : vector<128x128xf32>
    %136 = math.exp %135 : vector<128x128xf32>
    %cst_30 = arith.constant dense<0.000000e+00> : vector<128xf32>
    %137 = vector.multi_reduction <add>, %136, %cst_30 [1] : vector<128x128xf32> to vector<128xf32>
    %138 = vector.shape_cast %137 : vector<128xf32> to vector<128x1xf32>
    %139 = tpu.reciprocal %138 {approx = true} : vector<128x1xf32> -> vector<128x1xf32>
    %140 = vector.broadcast %139 : vector<128x1xf32> to vector<128x128xf32>
    %141 = arith.mulf %136, %140 : vector<128x128xf32>
    %142 = arith.truncf %141 : vector<128x128xf32> to vector<128x128xbf16>
    %143 = vector.extract_strided_slice %9 {offsets = [0, 40], sizes = [128, 8], strides = [1, 1]} : vector<128x64xbf16> to vector<128x8xbf16>
    %cst_31 = arith.constant dense<0.000000e+00> : vector<128x8xf32>
    %144 = tpu.matmul %142, %143, %cst_31 {dimension_numbers = #tpu.dot_dimension_numbers<[1], [0], [0], [1], [0, 0, 1, 1], [], []>} : vector<128x128xbf16>, vector<128x8xbf16>, vector<128x8xf32> -> vector<128x8xf32>
    %145 = vector.extract_strided_slice %7 {offsets = [0, 6], sizes = [128, 1], strides = [1, 1]} : vector<128x8xf32> to vector<128x1xf32>
    %146 = vector.extract_strided_slice %8 {offsets = [6, 0], sizes = [1, 128], strides = [1, 1]} : vector<8x128xf32> to vector<1x128xf32>
    %147 = vector.broadcast %145 : vector<128x1xf32> to vector<128x128xf32>
    %148 = vector.broadcast %146 : vector<1x128xf32> to vector<128x128xf32>
    %149 = arith.addf %147, %148 : vector<128x128xf32>
    %cst_32 = arith.constant 2.000000e-01 : f32
    %150 = vector.broadcast %cst_32 : f32 to vector<128x128xf32>
    %151 = arith.mulf %150, %149 : vector<128x128xf32>
    %152 = arith.maximumf %149, %151 : vector<128x128xf32>
    %153 = arith.addf %152, %12 : vector<128x128xf32>
    %cst_33 = arith.constant dense<0xFF800000> : vector<128xf32>
    %154 = vector.multi_reduction <maximumf>, %153, %cst_33 [1] : vector<128x128xf32> to vector<128xf32>
    %155 = vector.shape_cast %154 : vector<128xf32> to vector<128x1xf32>
    %156 = vector.broadcast %155 : vector<128x1xf32> to vector<128x128xf32>
    %157 = arith.subf %153, %156 : vector<128x128xf32>
    %158 = math.exp %157 : vector<128x128xf32>
    %cst_34 = arith.constant dense<0.000000e+00> : vector<128xf32>
    %159 = vector.multi_reduction <add>, %158, %cst_34 [1] : vector<128x128xf32> to vector<128xf32>
    %160 = vector.shape_cast %159 : vector<128xf32> to vector<128x1xf32>
    %161 = tpu.reciprocal %160 {approx = true} : vector<128x1xf32> -> vector<128x1xf32>
    %162 = vector.broadcast %161 : vector<128x1xf32> to vector<128x128xf32>
    %163 = arith.mulf %158, %162 : vector<128x128xf32>
    %164 = arith.truncf %163 : vector<128x128xf32> to vector<128x128xbf16>
    %165 = vector.extract_strided_slice %9 {offsets = [0, 48], sizes = [128, 8], strides = [1, 1]} : vector<128x64xbf16> to vector<128x8xbf16>
    %cst_35 = arith.constant dense<0.000000e+00> : vector<128x8xf32>
    %166 = tpu.matmul %164, %165, %cst_35 {dimension_numbers = #tpu.dot_dimension_numbers<[1], [0], [0], [1], [0, 0, 1, 1], [], []>} : vector<128x128xbf16>, vector<128x8xbf16>, vector<128x8xf32> -> vector<128x8xf32>
    %167 = vector.extract_strided_slice %7 {offsets = [0, 7], sizes = [128, 1], strides = [1, 1]} : vector<128x8xf32> to vector<128x1xf32>
    %168 = vector.extract_strided_slice %8 {offsets = [7, 0], sizes = [1, 128], strides = [1, 1]} : vector<8x128xf32> to vector<1x128xf32>
    %169 = vector.broadcast %167 : vector<128x1xf32> to vector<128x128xf32>
    %170 = vector.broadcast %168 : vector<1x128xf32> to vector<128x128xf32>
    %171 = arith.addf %169, %170 : vector<128x128xf32>
    %cst_36 = arith.constant 2.000000e-01 : f32
    %172 = vector.broadcast %cst_36 : f32 to vector<128x128xf32>
    %173 = arith.mulf %172, %171 : vector<128x128xf32>
    %174 = arith.maximumf %171, %173 : vector<128x128xf32>
    %175 = arith.addf %174, %12 : vector<128x128xf32>
    %cst_37 = arith.constant dense<0xFF800000> : vector<128xf32>
    %176 = vector.multi_reduction <maximumf>, %175, %cst_37 [1] : vector<128x128xf32> to vector<128xf32>
    %177 = vector.shape_cast %176 : vector<128xf32> to vector<128x1xf32>
    %178 = vector.broadcast %177 : vector<128x1xf32> to vector<128x128xf32>
    %179 = arith.subf %175, %178 : vector<128x128xf32>
    %180 = math.exp %179 : vector<128x128xf32>
    %cst_38 = arith.constant dense<0.000000e+00> : vector<128xf32>
    %181 = vector.multi_reduction <add>, %180, %cst_38 [1] : vector<128x128xf32> to vector<128xf32>
    %182 = vector.shape_cast %181 : vector<128xf32> to vector<128x1xf32>
    %183 = tpu.reciprocal %182 {approx = true} : vector<128x1xf32> -> vector<128x1xf32>
    %184 = vector.broadcast %183 : vector<128x1xf32> to vector<128x128xf32>
    %185 = arith.mulf %180, %184 : vector<128x128xf32>
    %186 = arith.truncf %185 : vector<128x128xf32> to vector<128x128xbf16>
    %187 = vector.extract_strided_slice %9 {offsets = [0, 56], sizes = [128, 8], strides = [1, 1]} : vector<128x64xbf16> to vector<128x8xbf16>
    %cst_39 = arith.constant dense<0.000000e+00> : vector<128x8xf32>
    %188 = tpu.matmul %186, %187, %cst_39 {dimension_numbers = #tpu.dot_dimension_numbers<[1], [0], [0], [1], [0, 0, 1, 1], [], []>} : vector<128x128xbf16>, vector<128x8xbf16>, vector<128x8xf32> -> vector<128x8xf32>
    %cst_40 = arith.constant 0.000000e+00 : f32
    %189 = vector.broadcast %cst_40 : f32 to vector<128x64xf32>
    %190 = tpu.concatenate %34, %56, %78, %100, %122, %144, %166, %188, %189 in 1 : vector<128x8xf32>, vector<128x8xf32>, vector<128x8xf32>, vector<128x8xf32>, vector<128x8xf32>, vector<128x8xf32>, vector<128x8xf32>, vector<128x8xf32>, vector<128x64xf32> -> vector<128x128xf32>
    %c0_41 = arith.constant 0 : index
    %c0_42 = arith.constant 0 : index
    %c0_43 = arith.constant 0 : index
    %191 = vector.load %arg5[%c0_41, %c0_42, %c0_43] : memref<1x1x128xf32, #tpu.memory_space<vmem>>, vector<1x1x128xf32>
    %192 = vector.shape_cast %191 : vector<1x1x128xf32> to vector<1x128xf32>
    %193 = vector.broadcast %192 : vector<1x128xf32> to vector<128x128xf32>
    %194 = arith.addf %190, %193 : vector<128x128xf32>
    %c0_44 = arith.constant 0 : index
    %c0_45 = arith.constant 0 : index
    %c0_46 = arith.constant 0 : index
    %195 = vector.load %arg6[%c0_44, %c0_45, %c0_46] : memref<1x128x128xf32, #tpu.memory_space<vmem>>, vector<1x128x128xf32>
    %196 = vector.shape_cast %195 : vector<1x128x128xf32> to vector<128x128xf32>
    %197 = vector.shape_cast %194 : vector<128x128xf32> to vector<1x128x128xf32>
    tpu.vector_store %arg6[%c0_44, %c0_45, %c0_46], %197 {strides = array<i32>} : memref<1x128x128xf32, #tpu.memory_space<vmem>>, vector<1x128x128xf32>,
    return
  }
  func.func @transform_0(%arg0: i32, %arg1: memref<6xi32, #tpu.memory_space<smem>>) -> (i32, i32, i32) {
    %c0_i32 = arith.constant 0 : i32
    %c0_i32_0 = arith.constant 0 : i32
    %c0_i32_1 = arith.constant 0 : i32
    return %arg0, %c0_i32, %c0_i32_0 : i32, i32, i32
  }
  func.func @transform_1(%arg0: i32, %arg1: memref<6xi32, #tpu.memory_space<smem>>) -> (i32, i32, i32) {
    %c0_i32 = arith.constant 0 : i32
    %c0_i32_0 = arith.constant 0 : i32
    %c0_i32_1 = arith.constant 0 : i32
    return %arg0, %c0_i32, %c0_i32_0 : i32, i32, i32
  }
  func.func @transform_2(%arg0: i32, %arg1: memref<6xi32, #tpu.memory_space<smem>>) -> (i32, i32, i32) {
    %0 = arith.index_cast %arg0 : i32 to index
    %1 = memref.load %arg1[%0] : memref<6xi32, #tpu.memory_space<smem>>
    %c0_i32 = arith.constant 0 : i32
    %c0_i32_0 = arith.constant 0 : i32
    %c0_i32_1 = arith.constant 0 : i32
    return %1, %c0_i32, %c0_i32_0 : i32, i32, i32
  }
  func.func @transform_3(%arg0: i32, %arg1: memref<6xi32, #tpu.memory_space<smem>>) -> (i32, i32, i32) {
    %0 = arith.index_cast %arg0 : i32 to index
    %1 = memref.load %arg1[%0] : memref<6xi32, #tpu.memory_space<smem>>
    %c0_i32 = arith.constant 0 : i32
    %c0_i32_0 = arith.constant 0 : i32
    %c0_i32_1 = arith.constant 0 : i32
    return %1, %c0_i32, %c0_i32_0 : i32, i32, i32
  }
  func.func @transform_4(%arg0: i32, %arg1: memref<6xi32, #tpu.memory_space<smem>>) -> (i32, i32, i32) {
    %c0_i32 = arith.constant 0 : i32
    %c0_i32_0 = arith.constant 0 : i32
    %c0_i32_1 = arith.constant 0 : i32
    return %arg0, %c0_i32, %c0_i32_0 : i32, i32, i32
  }
}

</mosaic_0001>

<bundles_post_ra>
// kernel: tpu_custom_call.1
= control target key start
LH: loop header
LB: loop body
LE: loop exit
PB: predicated region body
PF: predicated region fallthrough
CT: control target
= control target key end

     0   :  { %s8870_s0 = inlined_call_operand.vmem [shape: s32[6], index: 0, kind: input, shape index: {}]   ;;  %s8871_s1 = inlined_call_operand.vmem [shape: bf16[6,128,32], index: 1, kind: input, shape index: {}]   ;;  %s8872_s2 = inlined_call_operand.vmem [shape: bf16[6,128,128], index: 2, kind: input, shape index: {}]   ;;  %s8873_s3 = inlined_call_operand.vmem [shape: bf16[3,32,128], index: 3, kind: input, shape index: {}]   ;;  %s8874_s4 = inlined_call_operand.vmem [shape: f32[3,1,128], index: 4, kind: input, shape index: {}]   ;;  %s8875_s5 = inlined_call_operand.hbm [shape: f32[6,128,128], index: 5, kind: output, shape index: {}]  }
   0x1   :  { %s10_s20 = sshll.u32 %s8870_s0, 4  ;;  %s11_s20 = int_to_ptr.vmem [resolvable:$true] %s10_s20 }
   0x2   :  { %s5699_s21 = scalar_lea.vmem %s11_s20, 16  ;;  %p5704_p1 = scmp.lt.s32.totalorder %s11_s20, %s11_s20 }
   0x3   :  { %p5700_p0 = scmp.ne.s32.totalorder %s11_s20, %s5699_s21  ;;  %p5705_p2 = scmp.lt.s32.totalorder %s5699_s21, %s5699_s21 }
   0x5   :  { %p5706_p3 = por %p5705_p2, %p5704_p1 }
   0x7   :  { %p5707_p4 = pnand %p5706_p3, %p5700_p0 }
   0x9   :  { %5710 = shalt.err (!%p5707_p4)  }
   0xa   :  { %s5777_s22 = smov [#allocation3]  }
   0xb   :  { %13 = dma.vmem_to_smem %s11_s20, 16, %s5777_s22, [#allocation2] }
   0xc   :  { %5755 = dma.done.wait [#allocation2], 16 }
   0xd   :  { %5756 = vsyncadd [#allocation2], 4294967280 }
   0xe   :  { %15 = sfence }
   0xf   :  { %16 = vsyncpa [#allocation5], 0 }
  0x10   :  { %18 = vsyncpa [#allocation5 + $0x1], 0  ;;  %s5836_s23 = smov 0   ;;  %s5838_s24 = smov 0  }
  0x11   :  { %s5840_s0 = smov 0   ;;  %s5842_s25 = smov 0  }
  0x12 LB: > { %s5857_s26 = sadd.s32 4294967295, %s5775_s25   ;;  %s4557_s27 = sadd.s32 4294967294, %s5775_s25   ;;  %s5775_s25 = sphi %s5842_s25, %s9453_s25   ;;  %s5771_s0 = sphi %s5840_s0, %s9452_s0   ;;  %s5767_s24 = sphi %s5838_s24, %s9451_s24   ;;  %s5763_s23 = sphi %s5836_s23, %s9450_s23  }
  0x13   : > { %s5861_s28 = sadd.s32 1, %s5775_s25   ;;  %s139_s29 = sadd.s32 1, %s5771_s0 }
  0x14   : > { %s136_s30 = ssub.s32 %s5775_s25, %s5861_s28  ;;  %p149_p5 = scmp.ne.s32.totalorder %s5771_s0, %s5767_s24 }
  0x15   : > { %p137_p6 = scmp.eq.s32.totalorder %s136_s30, 0  ;;  %p150_p7 = scmp.eq.s32.totalorder %s5857_s26, 5 }
  0x16   : > { %p155_p8 = scmp.ne.s32.totalorder %s5767_s24, %s5763_s23  ;;  %p156_p9 = scmp.eq.s32.totalorder %s4557_s27, 5 }
  0x17   : > { %s5872_s6 = scalar_select %p137_p6, %s5771_s0, %s139_s29  }
  0x18   : > { %p5874_p10 = por %p150_p7, %p149_p5  ;;  %p5878_p11 = por %p156_p9, %p155_p8 }
  0x19   : > { %p4560_p12 = scmp.ge.s32.totalorder %s5775_s25, 1  ;;  %p208_p13 = scmp.lt.s32.totalorder %s5775_s25, 7 }
  0x1b   : > { %p209_p0 = pnand %p4560_p12, %p208_p13 }
  0x1d   : > { %212 = sbr.rel (%p209_p0) target bundleno = 2842 (0xb1a), region = 36 }
  0x24   : > { %s259_s9 = sld [smem:[#allocation3 + %s5857_s26]]  ;;  %p249_p1 = scmp.lt.s32.totalorder %s5857_s26, 5  ;;  %vm344_vm0 = vcmask 261120   ;;  %v5778_v10 = vmov 72   ;;  %v5779_v11 = vmov 74   ;;  %v5781_v19 = vmov 73  }
  0x25   : > { %5113 = vset.pattern.permute.xlu1 %v5778_v10  ;;  %5119 = vset.pattern.permute.xlu0 %v5779_v11  ;;  %s5780_s19 = smov 64   ;;  %v8876_v28 = vmov 75   ;;  %s5783_s20 = smov 120   ;;  %vm4274_vm1 = vcmask 64512   ;;  %vm4291_vm2 = vcmask 130048   ;;  %vm4308_vm3 = vcmask 195584  }
  0x26   : > { %s5887_s10 = scalar_select %p249_p1, %s5857_s26, 5  ;;  %vm4358_vm4 = vcmask 392192   ;;  %vm4341_vm5 = vcmask 326656   ;;  %vm4375_vm6 = vcmask 457728   ;;  %vm4392_vm7 = vcmask 523264  }
  0x27   : > { %s5784_s21 = smov 112   ;;  %s5786_s30 = smov 104  }
  0x28   : > { %s4592_s11 = sshll.u32 %s5887_s10, 6  ;;  %s5790_s10 = smov 88  }
  0x29   : > { %s253_s14 = scalar_lea.vmem %s8871_s1, %s4592_s11  ;;  %s6302_s29 = scalar_lea.vmem %s8872_s2, %s4592_s11 }
  0x2a   : > { %p260_p2 = scmp.lt.s32.totalorder %s259_s9, 2  ;;  %v5179_v0 = vld [vmem:[%s253_s14] sm:$0xff]   ;;  %v5180_v3 = vld [vmem:[%s253_s14 + $0x8] sm:$0xff]   ;;  %v5181_v4 = vld [vmem:[%s253_s14 + $0x10] sm:$0xff]   ;;  %s5792_s11 = smov 80  }
  0x2b   : > { %4777 = vmatprep.mubr.msk.bf16.mxu0 %vm344_vm0, %v5179_v0  ;;  %v5182_v5 = vld [vmem:[%s253_s14 + $0x18] sm:$0xff]   ;;  %v5183_v6 = vld [vmem:[%s253_s14 + $0x20] sm:$0xff]   ;;  %v5184_v7 = vld [vmem:[%s253_s14 + $0x28] sm:$0xff]   ;;  %s5793_s12 = smov 72   ;;  %s5794_s13 = smov 8  }
  0x2c   : > { %s9455_s9 = smov (!%p260_p2, %s259_s9), 2  ;;  %v5185_v8 = vld [vmem:[%s253_s14 + $0x30] sm:$0xff]   ;;  %v5186_v9 = vld [vmem:[%s253_s14 + $0x38] sm:$0xff]   ;;  %s5795_s14 = smov 16  }
  0x2d   : > { %s4594_s15 = sshll.u32 %s9455_s9, 4  ;;  %s5788_s9 = smov 96  }
  0x2e   : > { %s264_s18 = scalar_lea.vmem %s8873_s3, %s4594_s15  ;;  %s5796_s15 = smov 24  }
  0x2f   : > { %v5177_v1 = vld [vmem:[%s264_s18] sm:$0xff]   ;;  %v5178_v2 = vld [vmem:[%s264_s18 + $0x8] sm:$0xff]   ;;  %s5797_s16 = smov 32   ;;  %s5798_s17 = smov 40  }
  0x30   : > { %4773 = vmatprep.subr.bf16.mxu0 %v5177_v1  ;;  %s5799_s18 = smov 48  }
  0x31   : > { %4774 = vmatpush3.bf16.msra.mxu0 %v5177_v1 }
  0x32   : > { %4775 = vmatprep.subr.bf16.mxu0 %v5178_v2 }
  0x35   : > { %4776 = vmatpush3.bf16.msra.mxu0 %v5178_v2 }
  0x38   : > { %4778 = vmatmul.mubr.msk.bf16.vlgmr.msra.gmra.mrb[0].mxu0 %vm344_vm0, %v5180_v3 }
  0x39   : > { %4781 = vmatprep.mubr.msk.bf16.mxu0 %vm344_vm0, %v5181_v4 }
  0x40   : > { %4782 = vmatmul.mubr.msk.bf16.gmra.mrb[4].mxu0 %vm344_vm0, %v5182_v5 }
  0x41   : > { %4785 = vmatprep.mubr.msk.bf16.mxu0 %vm344_vm0, %v5183_v6 }
  0x48   : > { %4786 = vmatmul.mubr.msk.bf16.gmra.mrb[8].mxu0 %vm344_vm0, %v5184_v7 }
  0x49   : > { %4789 = vmatprep.mubr.msk.bf16.mxu0 %vm344_vm0, %v5185_v8 }
  0x50   : > { %4790 = vmatmul.mubr.msk.bf16.gmra.mrb[12].mxu0 %vm344_vm0, %v5186_v9 }
 0x10b   : > { %v5908_v12 = vpop.f32.mrb[0].mxu0 }
 0x10c   : > { %9022 = vst [vmem:[#allocation8_spill] sm:$0xff] %v5908_v12  ;;  %486 = vrot.lane.b32.xlu1 %v5908_v12, %s5780_s19  ;;  %v5912_v13 = vpop.f32.mrb[1].mxu0 }
 0x10d   : > { %9023 = vst [vmem:[#allocation9_spill] sm:$0xff] %v5912_v13  ;;  %482 = vrot.lane.b32.xlu0 %v5912_v13, %s5780_s19  ;;  %v5916_v14 = vpop.f32.mrb[2].mxu0 }
 0x10e   : > { %9024 = vst [vmem:[#allocation10_spill] sm:$0xff] %v5916_v14  ;;  %v5920_v15 = vpack.c.bf16 %v5916_v14, %v5908_v12  ;;  %v5922_v16 = vpop.f32.mrb[3].mxu0 }
 0x10f   : > { %9026 = vst [vmem:[#allocation12_spill] sm:$0xff] %v5922_v16  ;;  %v5926_v17 = vpack.c.bf16 %v5922_v16, %v5912_v13 }
 0x110   : > { %9025 = vst [vmem:[#allocation11_spill] sm:$0xff] %v5920_v15  ;;  %611 = vperm.xlu1 %5113, %v5908_v12  }
 0x111   : > { %9027 = vst [vmem:[#allocation13_spill] sm:$0xff] %v5926_v17  ;;  %1397 = vperm.xlu0 %5119, %v5912_v13   ;;  %4793 = vmatprep.subr.bf16.mxu1 %v5926_v17 }
 0x112   : > { %4794 = vmatpush3.bf16.msra.mxu1 %v5926_v17 }
 0x113   : > { %4795 = vmatprep.subr.bf16.mxu1 %v5920_v15  ;;  %v5933_v18 = vpop.f32.mrb[4].mxu0 }
 0x114   : > { %9028 = vst [vmem:[#allocation14_spill] sm:$0xff] %v5933_v18  ;;  %5114 = vset.pattern.permute.xlu1 %v5781_v19  ;;  %v5936_v20 = vpop.f32.mrb[5].mxu0 }
 0x115   : > { %9029 = vst [vmem:[#allocation15_spill] sm:$0xff] %v5936_v20  ;;  %992 = vperm.xlu1 %5114, %v5908_v12   ;;  %1409 = vperm.xlu0 %5119, %v5916_v14   ;;  %v5940_v21 = vpop.f32.mrb[6].mxu0 }
 0x116   : > { %9030 = vst [vmem:[#allocation16_spill] sm:$0xff] %v5940_v21  ;;  %4796 = vmatpush3.bf16.msra.mxu1 %v5920_v15  ;;  %v5945_v22 = vpack.c.bf16 %v5940_v21, %v5933_v18  ;;  %v5947_v23 = vpop.f32.mrb[7].mxu0 }
 0x117   : > { %9032 = vst [vmem:[#allocation18_spill] sm:$0xff] %v5947_v23  ;;  %v5951_v24 = vpack.c.bf16 %v5947_v23, %v5936_v20 }
 0x118   : > { %9031 = vst [vmem:[#allocation17_spill] sm:$0xff] %v5945_v22 }
 0x119   : > { %9033 = vst [vmem:[#allocation19_spill] sm:$0xff] %v5951_v24  ;;  %5115 = vset.pattern.permute.xlu1 %v5779_v11  ;;  %484 = vrot.lane.b32.xlu0 %v5922_v16, %s5780_s19 }
 0x11a   : > { %1405 = vperm.xlu1 %5115, %v5908_v12   ;;  %5125 = vset.pattern.permute.xlu0 %v5781_v19 }
 0x11b   : > { %v5958_v25 = vpop.f32.mrb[8].mxu0  ;;  %4797 = vmatprep.subr.bf16.mxu1 %v5951_v24 }
 0x11c   : > { %9034 = vst [vmem:[#allocation20_spill] sm:$0xff] %v5958_v25  ;;  %v5961_v26 = vpop.f32.mrb[9].mxu0  ;;  %4798 = vmatpush3.bf16.msra.mxu1 %v5951_v24 }
 0x11d   : > { %9035 = vst [vmem:[#allocation21_spill] sm:$0xff] %v5961_v26  ;;  %988 = vperm.xlu0 %5125, %v5922_v16   ;;  %v5965_v27 = vpop.f32.mrb[10].mxu0  ;;  %4799 = vmatprep.subr.bf16.mxu1 %v5945_v22 }
 0x11e   : > { %9036 = vst [vmem:[#allocation22_spill] sm:$0xff] %v5965_v27  ;;  %5116 = vset.pattern.permute.xlu1 %v8876_v28  ;;  %v5971_v29 = vpack.c.bf16 %v5965_v27, %v5958_v25  ;;  %v5973_v30 = vpop.f32.mrb[11].mxu0 }
 0x11f   : > { %9038 = vst [vmem:[#allocation24_spill] sm:$0xff] %v5973_v30  ;;  %1810 = vperm.xlu1 %5116, %v5908_v12   ;;  %v5978_v31 = vpack.c.bf16 %v5973_v30, %v5961_v26 }
 0x120   : > { %9037 = vst [vmem:[#allocation23_spill] sm:$0xff] %v5971_v29  ;;  %4800 = vmatpush3.bf16.msra.mxu1 %v5945_v22 }
 0x121   : > { %9039 = vst [vmem:[#allocation25_spill] sm:$0xff] %v5978_v31  ;;  %5127 = vset.pattern.permute.xlu0 %v8876_v28  ;;  %4801 = vmatprep.subr.bf16.mxu1 %v5978_v31 }
 0x122   : > { %1806 = vperm.xlu0 %5127, %v5922_v16  }
 0x123   : > { %5117 = vset.pattern.permute.xlu1 %v5778_v10  ;;  %v5985_v32 = vpop.f32.mrb[12].mxu0 }
 0x124   : > { %9040 = vst [vmem:[#allocation26_spill] sm:$0xff] %v5985_v32  ;;  %603 = vperm.xlu1 %5117, %v5912_v13   ;;  %v5988_v33 = vpop.f32.mrb[13].mxu0  ;;  %4802 = vmatpush3.bf16.msra.mxu1 %v5978_v31 }
 0x125   : > { %9041 = vst [vmem:[#allocation27_spill] sm:$0xff] %v5988_v33  ;;  %v5991_v34 = vpop.f32.mrb[14].mxu0  ;;  %4803 = vmatprep.subr.bf16.mxu1 %v5971_v29 }
 0x126   : > { %9042 = vst [vmem:[#allocation28_spill] sm:$0xff] %v5991_v34  ;;  %1277 = vrot.lane.b32.xlu0 %v5920_v15, %s5783_s20  ;;  %v5998_v35 = vpack.c.bf16 %v5991_v34, %v5985_v32  ;;  %v6000_v36 = vpop.f32.mrb[15].mxu0 }
 0x127   : > { %9044 = vst [vmem:[#allocation30_spill] sm:$0xff] %v6000_v36  ;;  %v6004_v37 = vpack.c.bf16 %v6000_v36, %v5988_v33 }
 0x128   : > { %9043 = vst [vmem:[#allocation29_spill] sm:$0xff] %v5998_v35  ;;  %5118 = vset.pattern.permute.xlu1 %v5781_v19  ;;  %4804 = vmatpush3.bf16.msra.mxu1 %v5971_v29 }
 0x129   : > { %9045 = vst [vmem:[#allocation31_spill] sm:$0xff] %v6004_v37  ;;  %984 = vperm.xlu1 %5118, %v5912_v13   ;;  %4805 = vmatprep.subr.bf16.mxu1 %v6004_v37 }
 0x12a   : > { %1680 = vrot.lane.b32.xlu0 %v5926_v17, %s5784_s21 }
 0x12c   : > { %4806 = vmatpush3.bf16.msra.mxu1 %v6004_v37 }
 0x12d   : > { %5120 = vset.pattern.permute.xlu1 %v8876_v28  ;;  %4807 = vmatprep.subr.bf16.mxu1 %v5998_v35 }
 0x12e   : > { %1802 = vperm.xlu1 %5120, %v5912_v13   ;;  %494 = vrot.lane.b32.xlu0 %v5933_v18, %s5780_s19 }
 0x130   : > { %4808 = vmatpush3.bf16.msra.mxu1 %v5998_v35 }
 0x132   : > { %488 = vrot.lane.b32.xlu1 %v5916_v14, %s5780_s19  ;;  %1826 = vperm.xlu0 %5127, %v5933_v18  }
 0x133   : > { %5121 = vset.pattern.permute.xlu1 %v5778_v10 }
 0x136   : > { %615 = vperm.xlu1 %5121, %v5916_v14   ;;  %490 = vrot.lane.b32.xlu0 %v5936_v20, %s5780_s19 }
 0x13a   : > { %5122 = vset.pattern.permute.xlu1 %v5781_v19  ;;  %1818 = vperm.xlu0 %5127, %v5936_v20  }
 0x13b   : > { %996 = vperm.xlu1 %5122, %v5916_v14  }
 0x13e   : > { %5136 = vset.pattern.permute.xlu0 %v5779_v11 }
 0x13f   : > { %5123 = vset.pattern.permute.xlu1 %v8876_v28  ;;  %1425 = vperm.xlu0 %5136, %v5940_v21  }
 0x140   : > { %1814 = vperm.xlu1 %5123, %v5916_v14  }
 0x143   : > { %1417 = vperm.xlu0 %5136, %v5947_v23  }
 0x144   : > { %5124 = vset.pattern.permute.xlu1 %v5778_v10 }
 0x145   : > { %607 = vperm.xlu1 %5124, %v5922_v16  }
 0x147   : > { %1686 = vrot.lane.b32.xlu0 %v5945_v22, %s5784_s21 }
 0x148   : > { %5141 = vset.pattern.permute.xlu0 %v5781_v19 }
 0x149   : > { %5126 = vset.pattern.permute.xlu1 %v5779_v11 }
 0x14a   : > { %1401 = vperm.xlu1 %5126, %v5922_v16  }
 0x14b   : > { %502 = vrot.lane.b32.xlu0 %v5958_v25, %s5780_s19 }
 0x14e   : > { %1682 = vrot.lane.b32.xlu1 %v5920_v15, %s5784_s21  ;;  %v666_v15 = vlaneseq }
 0x14f   : > { %1024 = vperm.xlu0 %5141, %v5958_v25   ;;  %5128 = vset.pattern.permute.xlu1 %v5778_v10 }
 0x152   : > { %1275 = vrot.lane.b32.xlu1 %v5926_v17, %s5783_s20  ;;  %v6292_v17 = vshrl.u32 %v666_v15, 7  ;;  %v4597_v15 = vld [vmem:[%s6302_s29] sm:$0xff]  }
 0x153   : > { %498 = vrot.lane.b32.xlu0 %v5961_v26, %s5780_s19 }
 0x154   : > { %5148 = vset.pattern.permute.xlu0 %v5779_v11  ;;  %9074 = vst [vmem:[#allocation59_spill] sm:$0xff] %v6292_v17 }
 0x156   : > { %627 = vperm.xlu1 %5128, %v5933_v18  }
 0x157   : > { %1441 = vperm.xlu0 %5148, %v5965_v27  }
 0x15a   : > { %5129 = vset.pattern.permute.xlu1 %v5781_v19 }
 0x15b   : > { %1008 = vperm.xlu1 %5129, %v5933_v18   ;;  %1433 = vperm.xlu0 %5148, %v5973_v30  }
 0x15f   : > { %5130 = vset.pattern.permute.xlu1 %v5779_v11  ;;  %1690 = vrot.lane.b32.xlu0 %v5971_v29, %s5784_s21 }
 0x160   : > { %1421 = vperm.xlu1 %5130, %v5933_v18   ;;  %5152 = vset.pattern.permute.xlu0 %v5781_v19 }
 0x163   : > { %1283 = vrot.lane.b32.xlu0 %v5978_v31, %s5783_s20 }
 0x164   : > { %5131 = vset.pattern.permute.xlu1 %v5778_v10 }
 0x165   : > { %619 = vperm.xlu1 %5131, %v5936_v20  }
 0x167   : > { %510 = vrot.lane.b32.xlu0 %v5985_v32, %s5780_s19 }
 0x169   : > { %5132 = vset.pattern.permute.xlu1 %v5781_v19 }
 0x16a   : > { %1000 = vperm.xlu1 %5132, %v5936_v20  }
 0x16b   : > { %1040 = vperm.xlu0 %5152, %v5985_v32  }
 0x16e   : > { %5133 = vset.pattern.permute.xlu1 %v5779_v11 }
 0x16f   : > { %1413 = vperm.xlu1 %5133, %v5936_v20   ;;  %506 = vrot.lane.b32.xlu0 %v5988_v33, %s5780_s19 }
 0x173   : > { %496 = vrot.lane.b32.xlu1 %v5940_v21, %s5780_s19  ;;  %1032 = vperm.xlu0 %5152, %v5988_v33  }
 0x174   : > { %5134 = vset.pattern.permute.xlu1 %v5778_v10 }
 0x177   : > { %631 = vperm.xlu1 %5134, %v5940_v21   ;;  %5158 = vset.pattern.permute.xlu0 %v5779_v11 }
 0x178   : > { %1457 = vperm.xlu0 %5158, %v5991_v34  }
 0x17b   : > { %5135 = vset.pattern.permute.xlu1 %v5781_v19 }
 0x17c   : > { %1012 = vperm.xlu1 %5135, %v5940_v21   ;;  %1449 = vperm.xlu0 %5158, %v6000_v36  }
 0x17e   : > { %v487_v38 = vpop.permute.xlu1 %486 }
 0x17f   : > { %v483_v39 = vpop.permute.xlu0 %482 }
 0x180   : > { %492 = vrot.lane.b32.xlu1 %v5947_v23, %s5780_s19  ;;  %1694 = vrot.lane.b32.xlu0 %v5998_v35, %s5784_s21 }
 0x181   : > { %5137 = vset.pattern.permute.xlu1 %v5778_v10  ;;  %5162 = vset.pattern.permute.xlu0 %v8876_v28 }
 0x184   : > { %623 = vperm.xlu1 %5137, %v5947_v23   ;;  %1287 = vrot.lane.b32.xlu0 %v6004_v37, %s5783_s20 }
 0x188   : > { %5138 = vset.pattern.permute.xlu1 %v5781_v19  ;;  %1834 = vperm.xlu0 %5162, %v5961_v26  }
 0x189   : > { %1004 = vperm.xlu1 %5138, %v5947_v23  }
 0x18c   : > { %1842 = vperm.xlu0 %5162, %v5958_v25  }
 0x18d   : > { %5139 = vset.pattern.permute.xlu1 %v8876_v28 }
 0x18e   : > { %1822 = vperm.xlu1 %5139, %v5947_v23  }
 0x18f   : > { %v6100_v40 = vpop.permute.xlu1 %611 }
 0x190   : > { %v6102_v41 = vpop.permute.xlu0 %1397  ;;  %1850 = vperm.xlu0 %5162, %v5988_v33  }
 0x191   : > { %9046 = vst [vmem:[#allocation32_spill] sm:$0xff] %v6102_v41  ;;  %v4629_v41 = vld [vmem:[%s6302_s29 + $0x10] sm:$0xff]  }
 0x192   : > { %1281 = vrot.lane.b32.xlu1 %v5945_v22, %s5783_s20 }
 0x193   : > { %5140 = vset.pattern.permute.xlu1 %v5778_v10 }
 0x194   : > { %v6108_v42 = vpop.permute.xlu1 %992  ;;  %v6110_v43 = vpop.permute.xlu0 %1409  ;;  %1858 = vperm.xlu0 %5162, %v5985_v32  }
 0x195   : > { %9047 = vst [vmem:[#allocation33_spill] sm:$0xff] %v6110_v43 }
 0x196   : > { %1279 = vrot.lane.b32.xlu1 %v5951_v24, %s5783_s20 }
 0x198   : > { %v485_v44 = vpop.permute.xlu0 %484 }
 0x199   : > { %v6115_v45 = vpop.permute.xlu1 %1405 }
 0x19a   : > { %1684 = vrot.lane.b32.xlu1 %v5951_v24, %s5784_s21 }
 0x19c   : > { %v6119_v46 = vpop.permute.xlu0 %988 }
 0x19e   : > { %v6121_v47 = vpop.permute.xlu1 %1810  ;;  %643 = vperm.xlu1 %5140, %v5958_v25  }
 0x19f   : > { %9048 = vst [vmem:[#allocation34_spill] sm:$0xff] %v6121_v47 }
 0x1a1   : > { %v6124_v48 = vpop.permute.xlu0 %1806 }
 0x1a2   : > { %9049 = vst [vmem:[#allocation35_spill] sm:$0xff] %v6124_v48  ;;  %5142 = vset.pattern.permute.xlu1 %v5779_v11  ;;  %v6321_v48 = vunpack.c.l.bf16 %v4597_v15 }
 0x1a3   : > { %v6127_v49 = vpop.permute.xlu1 %603  ;;  %1437 = vperm.xlu1 %5142, %v5958_v25  }
 0x1a4   : > { %9077 = vst [vmem:[#allocation62_spill] sm:$0xff] %v6321_v48 }
 0x1a5   : > { %v1278_v50 = vpop.permute.xlu0 %1277 }
 0x1a7   : > { %5143 = vset.pattern.permute.xlu1 %v5778_v10 }
 0x1a8   : > { %v6131_v51 = vpop.permute.xlu1 %984  ;;  %635 = vperm.xlu1 %5143, %v5961_v26  }
 0x1a9   : > { %v6134_v52 = vpop.permute.xlu0 %1680 }
 0x1aa   : > { %9050 = vst [vmem:[#allocation36_spill] sm:$0xff] %v6134_v52  ;;  %4857 = vmatprep.subr.bf16.mxu1 %v6134_v52 }
 0x1ac   : > { %5144 = vset.pattern.permute.xlu1 %v5781_v19 }
 0x1ad   : > { %v6138_v53 = vpop.permute.xlu1 %1802  ;;  %1016 = vperm.xlu1 %5144, %v5961_v26   ;;  %v6143_v55 = vpop.permute.xlu0 %494 }
 0x1ae   : > { %9051 = vst [vmem:[#allocation37_spill] sm:$0xff] %v6138_v53 }
 0x1b1   : > { %v489_v54 = vpop.permute.xlu1 %488  ;;  %5145 = vset.pattern.permute.xlu1 %v5779_v11  ;;  %v6153_v58 = vpop.permute.xlu0 %1826 }
 0x1b2   : > { %1429 = vperm.xlu1 %5145, %v5961_v26   ;;  %530 = vxpose.xlu0.b32.start [1/16] (narrow) %v483_v39, 8  ;;  %9052 = vst [vmem:[#allocation38_spill] sm:$0xff] %v6153_v58 }
 0x1b5   : > { %v6145_v56 = vpop.permute.xlu1 %615  ;;  %v491_v60 = vpop.permute.xlu0 %490 }
 0x1b6   : > { %504 = vrot.lane.b32.xlu1 %v5965_v27, %s5780_s19  ;;  %531 = vxpose.xlu0.b32.cont [2/16] (narrow) %v485_v44, 8 }
 0x1b7   : > { %5146 = vset.pattern.permute.xlu1 %v5778_v10 }
 0x1b9   : > { %v6185_v4 = vpop.permute.xlu0 %1818 }
 0x1ba   : > { %v6150_v57 = vpop.permute.xlu1 %996  ;;  %647 = vperm.xlu1 %5146, %v5965_v27   ;;  %532 = vxpose.xlu0.b32.cont [3/16] (narrow) %v487_v38, 8  ;;  %9055 = vst [vmem:[#allocation41_spill] sm:$0xff] %v6185_v4 }
 0x1be   : > { %5147 = vset.pattern.permute.xlu1 %v5781_v19  ;;  %533 = vxpose.xlu0.b32.cont [4/16] (narrow) %v489_v54, 8  ;;  %v6192_v6 = vpop.permute.xlu0 %1425 }
 0x1bf   : > { %v6156_v59 = vpop.permute.xlu1 %1814  ;;  %1028 = vperm.xlu1 %5147, %v5965_v27   ;;  %9056 = vst [vmem:[#allocation42_spill] sm:$0xff] %v6192_v6 }
 0x1c0   : > { %9053 = vst [vmem:[#allocation39_spill] sm:$0xff] %v6156_v59 }
 0x1c2   : > { %534 = vxpose.xlu0.b32.cont [5/16] (narrow) %v491_v60, 8  ;;  %v6200_v8 = vpop.permute.xlu0 %1417 }
 0x1c3   : > { %500 = vrot.lane.b32.xlu1 %v5973_v30, %s5780_s19  ;;  %9057 = vst [vmem:[#allocation43_spill] sm:$0xff] %v6200_v8 }
 0x1c4   : > { %v6161_v61 = vpop.permute.xlu1 %607  ;;  %5149 = vset.pattern.permute.xlu1 %v5778_v10 }
 0x1c6   : > { %v6205_v39 = vpop.permute.xlu0 %1686 }
 0x1c7   : > { %639 = vperm.xlu1 %5149, %v5973_v30   ;;  %9058 = vst [vmem:[#allocation44_spill] sm:$0xff] %v6205_v39 }
 0x1c9   : > { %v6165_v62 = vpop.permute.xlu1 %1401 }
 0x1ca   : > { %v503_v44 = vpop.permute.xlu0 %502 }
 0x1cb   : > { %5150 = vset.pattern.permute.xlu1 %v5781_v19 }
 0x1cc   : > { %1020 = vperm.xlu1 %5150, %v5973_v30  }
 0x1cd   : > { %v6169_v63 = vpop.permute.xlu1 %1682 }
 0x1ce   : > { %9054 = vst [vmem:[#allocation40_spill] sm:$0xff] %v6169_v63  ;;  %v6217_v54 = vpop.permute.xlu0 %1024 }
 0x1d0   : > { %1285 = vrot.lane.b32.xlu1 %v5971_v29, %s5783_s20 }
 0x1d1   : > { %v1276_v0 = vpop.permute.xlu1 %1275  ;;  %5151 = vset.pattern.permute.xlu1 %v5778_v10 }
 0x1d2   : > { %4825 = vmatprep.subr.bf16.mxu0 %v1276_v0 }
 0x1d3   : > { %4826 = vmatpush3.bf16.msra.mxu0 %v1276_v0  ;;  %v499_v0 = vpop.permute.xlu0 %498 }
 0x1d4   : > { %4827 = vmatprep.subr.bf16.mxu0 %v1278_v50  ;;  %1688 = vrot.lane.b32.xlu1 %v5978_v31, %s5784_s21 }
 0x1d5   : > { %v6176_v1 = vpop.permute.xlu1 %627 }
 0x1d7   : > { %4828 = vmatpush3.bf16.msra.mxu0 %v1278_v50 }
 0x1d8   : > { %659 = vperm.xlu1 %5151, %v5985_v32  }
 0x1da   : > { %v6179_v2 = vpop.permute.xlu1 %1008 }
 0x1dc   : > { %5153 = vset.pattern.permute.xlu1 %v5779_v11 }
 0x1dd   : > { %1453 = vperm.xlu1 %5153, %v5985_v32  }
 0x1df   : > { %v6183_v3 = vpop.permute.xlu1 %1421 }
 0x1e1   : > { %5154 = vset.pattern.permute.xlu1 %v5778_v10 }
 0x1e2   : > { %651 = vperm.xlu1 %5154, %v5988_v33  }
 0x1e4   : > { %v6189_v5 = vpop.permute.xlu1 %619 }
 0x1e6   : > { %5155 = vset.pattern.permute.xlu1 %v5779_v11 }
 0x1e7   : > { %1445 = vperm.xlu1 %5155, %v5988_v33   ;;  %v6229_v33 = vpop.permute.xlu0 %1441 }
 0x1e8   : > { %9060 = vst [vmem:[#allocation45_spill] sm:$0xff] %v6229_v33 }
 0x1e9   : > { %v6195_v7 = vpop.permute.xlu1 %1000 }
 0x1eb   : > { %512 = vrot.lane.b32.xlu1 %v5991_v34, %s5780_s19 }
 0x1ec   : > { %5156 = vset.pattern.permute.xlu1 %v5778_v10 }
 0x1ee   : > { %v6202_v9 = vpop.permute.xlu1 %1413 }
 0x1ef   : > { %663 = vperm.xlu1 %5156, %v5991_v34  }
 0x1f2   : > { %v497_v38 = vpop.permute.xlu1 %496 }
 0x1f3   : > { %5157 = vset.pattern.permute.xlu1 %v5781_v19 }
 0x1f4   : > { %1044 = vperm.xlu1 %5157, %v5991_v34  }
 0x1f6   : > { %v6209_v11 = vpop.permute.xlu1 %631 }
 0x1f8   : > { %508 = vrot.lane.b32.xlu1 %v6000_v36, %s5780_s19  ;;  %s5800_s19 = smov 56  }
 0x1f9   : > { %5159 = vset.pattern.permute.xlu1 %v5778_v10  ;;  %v9059_v10 = vmov 75  }
 0x1fb   : > { %v6214_v50 = vpop.permute.xlu1 %1012 }
 0x1fc   : > { %655 = vperm.xlu1 %5159, %v6000_v36  }
 0x1ff   : > { %v493_v60 = vpop.permute.xlu1 %492 }
 0x200   : > { %5160 = vset.pattern.permute.xlu1 %v5781_v19  ;;  %535 = vxpose.xlu0.b32.cont [6/16] (narrow) %v493_v60, 8  ;;  %v6236_v60 = vpop.permute.xlu0 %1433 }
 0x201   : > { %1036 = vperm.xlu1 %5160, %v6000_v36   ;;  %9062 = vst [vmem:[#allocation47_spill] sm:$0xff] %v6236_v60 }
 0x203   : > { %v6221_v28 = vpop.permute.xlu1 %623 }
 0x204   : > { %536 = vxpose.xlu0.b32.cont [7/16] (narrow) %v6143_v55, 8  ;;  %v6239_v25 = vpop.permute.xlu0 %1690 }
 0x205   : > { %1289 = vrot.lane.b32.xlu1 %v5998_v35, %s5783_s20  ;;  %9063 = vst [vmem:[#allocation48_spill] sm:$0xff] %v6239_v25  ;;  %s266_s20 = sld [smem:[#allocation3 + %s5857_s26]] }
 0x206   : > { %5161 = vset.pattern.permute.xlu1 %v9059_v10 }
 0x208   : > { %v6227_v32 = vpop.permute.xlu1 %1004  ;;  %537 = vxpose.xlu0.b32.cont [8/16] (narrow) %v497_v38, 8 }
 0x209   : > { %1692 = vrot.lane.b32.xlu1 %v6004_v37, %s5784_s21  ;;  %s246_s21 = sand.u32 1, %s5767_s24  }
 0x20b   : > { %p267_p3 = scmp.lt.s32.totalorder %s266_s20, 2 }
 0x20c   : > { %538 = vxpose.xlu0.b32.cont [9/16] (narrow) %v499_v0, 8  ;;  %v1284_v0 = vpop.permute.xlu0 %1283 }
 0x20d   : > { %v6233_v19 = vpop.permute.xlu1 %1822  ;;  %1830 = vperm.xlu1 %5161, %v5940_v21   ;;  %s9457_s20 = smov (!%p267_p3, %s266_s20), 2 }
 0x20e   : > { %9061 = vst [vmem:[#allocation46_spill] sm:$0xff] %v6233_v19 }
 0x210   : > { %v511_v18 = vpop.permute.xlu0 %510 }
 0x211   : > { %v1282_v55 = vpop.permute.xlu1 %1281  ;;  %1838 = vperm.xlu1 %5161, %v5973_v30  }
 0x215   : > { %v1280_v10 = vpop.permute.xlu1 %1279  ;;  %1846 = vperm.xlu1 %5161, %v5965_v27  }
 0x216   : > { %4829 = vmatprep.subr.bf16.mxu0 %v1280_v10 }
 0x217   : > { %4830 = vmatpush3.bf16.msra.mxu0 %v1280_v10  ;;  %v6254_v10 = vpop.permute.xlu0 %1040 }
 0x218   : > { %4831 = vmatprep.subr.bf16.mxu0 %v1282_v55 }
 0x219   : > { %v6242_v38 = vpop.permute.xlu1 %1684  ;;  %1854 = vperm.xlu1 %5161, %v6000_v36  }
 0x21a   : > { %9064 = vst [vmem:[#allocation49_spill] sm:$0xff] %v6242_v38 }
 0x21b   : > { %4832 = vmatpush3.bf16.msra.mxu0 %v1282_v55  ;;  %v507_v36 = vpop.permute.xlu0 %506 }
 0x21c   : > { %4833 = vmatprep.subr.bf16.mxu0 %v1284_v0 }
 0x21d   : > { %v6245_v26 = vpop.permute.xlu1 %643  ;;  %1862 = vperm.xlu1 %5161, %v5991_v34  }
 0x21f   : > { %4834 = vmatpush3.bf16.msra.mxu0 %v1284_v0  ;;  %v6258_v55 = vpop.permute.xlu0 %1032 }
 0x222   : > { %v6248_v30 = vpop.permute.xlu1 %1437 }
 0x223   : > { %v6262_v34 = vpop.permute.xlu0 %1457 }
 0x224   : > { %9065 = vst [vmem:[#allocation50_spill] sm:$0xff] %v6262_v34 }
 0x227   : > { %v6250_v21 = vpop.permute.xlu1 %635  ;;  %v6264_v14 = vpop.permute.xlu0 %1449 }
 0x228   : > { %9066 = vst [vmem:[#allocation51_spill] sm:$0xff] %v6264_v14 }
 0x22b   : > { %v6268_v39 = vpop.permute.xlu0 %1694 }
 0x22c   : > { %v6252_v27 = vpop.permute.xlu1 %1016  ;;  %9067 = vst [vmem:[#allocation52_spill] sm:$0xff] %v6268_v39 }
 0x22f   : > { %v1288_v38 = vpop.permute.xlu0 %1287 }
 0x231   : > { %v6256_v20 = vpop.permute.xlu1 %1429 }
 0x235   : > { %v505_v25 = vpop.permute.xlu1 %504 }
 0x239   : > { %v648_v23 = vpop.permute.xlu1 %647 }
 0x23e   : > { %v6260_v12 = vpop.permute.xlu1 %1028 }
 0x242   : > { %v501_v0 = vpop.permute.xlu1 %500 }
 0x243   : > { %539 = vxpose.xlu0.b32.cont [10/16] (narrow) %v501_v0, 8 }
 0x246   : > { %v6266_v16 = vpop.permute.xlu1 %639 }
 0x247   : > { %540 = vxpose.xlu0.b32.cont [11/16] (narrow) %v503_v44, 8 }
 0x24b   : > { %v6270_v13 = vpop.permute.xlu1 %1020  ;;  %541 = vxpose.xlu0.b32.cont [12/16] (narrow) %v505_v25, 8 }
 0x24f   : > { %v1286_v35 = vpop.permute.xlu1 %1285  ;;  %542 = vxpose.xlu0.b32.cont [13/16] (narrow) %v507_v36, 8 }
 0x250   : > { %4835 = vmatprep.subr.bf16.mxu0 %v1286_v35 }
 0x251   : > { %4836 = vmatpush3.bf16.msra.mxu0 %v1286_v35 }
 0x252   : > { %4837 = vmatprep.subr.bf16.mxu0 %v1288_v38 }
 0x253   : > { %v6272_v37 = vpop.permute.xlu1 %1688 }
 0x254   : > { %9068 = vst [vmem:[#allocation53_spill] sm:$0xff] %v6272_v37  ;;  %v6286_v37 = vpop.permute.xlu0 %1834 }
 0x255   : > { %4838 = vmatpush3.bf16.msra.mxu0 %v1288_v38  ;;  %9071 = vst [vmem:[#allocation56_spill] sm:$0xff] %v6286_v37 }
 0x257   : > { %v6274_v0 = vpop.permute.xlu1 %659 }
 0x258   : > { %v6288_v22 = vpop.permute.xlu0 %1842 }
 0x259   : > { %9072 = vst [vmem:[#allocation57_spill] sm:$0xff] %v6288_v22  ;;  %v6316_v22 = vld [vmem:[%s6302_s29 + $0x28] sm:$0xff]  }
 0x25a   : > { %v6330_v60 = vunpack.c.h.bf16 %v6316_v22 }
 0x25c   : > { %v6276_v29 = vpop.permute.xlu1 %1453  ;;  %v6290_v24 = vpop.permute.xlu0 %1850  ;;  %9079 = vst [vmem:[#allocation64_spill] sm:$0xff] %v6330_v60 }
 0x25d   : > { %9069 = vst [vmem:[#allocation54_spill] sm:$0xff] %v6276_v29  ;;  %9073 = vst [vmem:[#allocation58_spill] sm:$0xff] %v6290_v24 }
 0x260   : > { %v6294_v58 = vpop.permute.xlu0 %1858 }
 0x261   : > { %v6278_v63 = vpop.permute.xlu1 %651  ;;  %9075 = vst [vmem:[#allocation60_spill] sm:$0xff] %v6294_v58 }
 0x266   : > { %v6280_v44 = vpop.permute.xlu1 %1445 }
 0x267   : > { %9070 = vst [vmem:[#allocation55_spill] sm:$0xff] %v6280_v44 }
 0x26a   : > { %v513_v39 = vpop.permute.xlu1 %512 }
 0x26e   : > { %v664_v31 = vpop.permute.xlu1 %663 }
 0x273   : > { %v6282_v25 = vpop.permute.xlu1 %1044 }
 0x277   : > { %v509_v36 = vpop.permute.xlu1 %508 }
 0x278   : > { %543 = vxpose.xlu0.b32.cont [14/16] (narrow) %v509_v36, 8  ;;  %v668_v36 = vsub.s32 0, %v6292_v17 }
 0x27b   : > { %v656_v35 = vpop.permute.xlu1 %655 }
 0x27c   : > { %544 = vxpose.xlu0.b32.cont [15/16] (narrow) %v511_v18, 8 }
 0x280   : > { %v6284_v52 = vpop.permute.xlu1 %1036  ;;  %545 = vxpose.xlu0.b32.end [16/16] (narrow) %v513_v39, 8 }
 0x284   : > { %v1290_v38 = vpop.permute.xlu1 %1289 }
 0x285   : > { %4839 = vmatprep.subr.bf16.mxu0 %v1290_v38 }
 0x286   : > { %4840 = vmatpush3.bf16.msra.mxu0 %v1290_v38  ;;  %v1049_v38 = vsub.s32 1, %v6292_v17 }
 0x2c4   : > { %v6304_v18 = vpop.trf.xlu0 }
 0x2c5   : > { %9076 = vst [vmem:[#allocation61_spill] sm:$0xff] %v6304_v18  ;;  %v6307_v39 = vrot.slane %v6304_v18, %v668_v36  ;;  %v4628_v36 = vld [vmem:[%s6302_s29 + $0x8] sm:$0xff]   ;;  %v6333_v59 = vrot.slane %v6304_v18, %v1049_v38 }
 0x2c6   : > { %v6335_v47 = vunpack.c.l.bf16 %v4628_v36 }
 0x2c7   : > { %v671_v58 = vadd.f32 %v6307_v39, %v6161_v61  ;;  %v670_v24 = vadd.f32 %v6307_v39, %v6127_v49  ;;  %v681_v37 = vadd.f32 %v6307_v39, %v648_v23  ;;  %v672_v4 = vadd.f32 %v6307_v39, %v6100_v40 }
 0x2c8   : > { %v683_v34 = vadd.f32 %v6307_v39, %v656_v35  ;;  %v673_v14 = vadd.f32 %v6307_v39, %v6145_v56  ;;  %v6327_v61 = vunpack.c.h.bf16 %v4597_v15  ;;  %9080 = vst [vmem:[#allocation65_spill] sm:$0xff] %v6335_v47  ;;  %v6338_v35 = vld [vmem:[%s6302_s29 + $0x30] sm:$0xff]   ;;  %v685_v8 = vadd.f32 %v6307_v39, %v664_v31 }
 0x2c9   : > { %v687_v33 = vmul.f32 0.2, %v671_v58  ;;  %v686_v49 = vmul.f32 0.2, %v670_v24  ;;  %v697_v19 = vmul.f32 0.2, %v681_v37  ;;  %v674_v53 = vadd.f32 %v6307_v39, %v6189_v5 }
 0x2ca   : > { %9078 = vst [vmem:[#allocation63_spill] sm:$0xff] %v6327_v61  ;;  %v688_v23 = vmul.f32 0.2, %v672_v4  ;;  %v699_v56 = vmul.f32 0.2, %v683_v34  ;;  %v6357_v5 = vld [vmem:[%s6302_s29 + $0x38] sm:$0xff]  }
 0x2cb   : > { %v703_v40 = vmax.f32 %v671_v58, %v687_v33  ;;  %v702_v6 = vmax.f32 %v670_v24, %v686_v49  ;;  %v689_v15 = vmul.f32 0.2, %v673_v14  ;;  %v713_v24 = vmax.f32 %v681_v37, %v697_v19 }
 0x2cc   : > { %v704_v33 = vmax.f32 %v672_v4, %v688_v23  ;;  %v6352_v58 = vunpack.c.h.bf16 %v6338_v35  ;;  %v6354_v49 = vunpack.c.h.bf16 %v4628_v36  ;;  %v715_v31 = vmax.f32 %v683_v34, %v699_v56 }
 0x2cd   : > { %v6344_v43 = vadd.f32 %v6327_v61, %v703_v40  ;;  %v6347_v38 = vadd.f32 %v6321_v48, %v702_v6  ;;  %v705_v29 = vmax.f32 %v673_v14, %v689_v15  ;;  %v701_v40 = vmul.f32 0.2, %v685_v8 }
 0x2ce   : > { %9082 = vst [vmem:[#allocation67_spill] sm:$0xff] %v6352_v58  ;;  %9083 = vst [vmem:[#allocation68_spill] sm:$0xff] %v6354_v49  ;;  %v690_v44 = vmul.f32 0.2, %v674_v53  ;;  %v6361_v6 = vadd.f32 %v6330_v60, %v713_v24  ;;  %v6364_v37 = vadd.f32 %v6335_v47, %v704_v33  ;;  %v1051_v4 = vadd.f32 %v6333_v59, %v6131_v51 }
 0x2cf   : > { %9081 = vst [vmem:[#allocation66_spill] sm:$0xff] %v6347_v38  ;;  %736 = vmax.xlane.f32.xlu0 %v6344_v43  ;;  %734 = vmax.xlane.f32.xlu1 %v6347_v38  ;;  %v675_v19 = vadd.f32 %v6307_v39, %v6221_v28  ;;  %v6373_v14 = vunpack.c.h.bf16 %v6357_v5  ;;  %v6375_v34 = vunpack.c.l.bf16 %v4629_v41  ;;  %v6378_v36 = vadd.f32 %v6352_v58, %v715_v31 }
 0x2d0   : > { %9084 = vst [vmem:[#allocation69_spill] sm:$0xff] %v6361_v6  ;;  %9085 = vst [vmem:[#allocation70_spill] sm:$0xff] %v6364_v37  ;;  %v6381_v23 = vadd.f32 %v6354_v49, %v705_v29  ;;  %v717_v51 = vmax.f32 %v685_v8, %v701_v40  ;;  %v706_v56 = vmax.f32 %v674_v53, %v690_v44  ;;  %v1067_v15 = vmul.f32 0.2, %v1051_v4  ;;  %v4630_v53 = vld [vmem:[%s6302_s29 + $0x18] sm:$0xff]  }
 0x2d1   : > { %9086 = vst [vmem:[#allocation71_spill] sm:$0xff] %v6373_v14  ;;  %9087 = vst [vmem:[#allocation72_spill] sm:$0xff] %v6375_v34  ;;  %v691_v28 = vmul.f32 0.2, %v675_v19  ;;  %v1053_v24 = vadd.f32 %v6333_v59, %v6108_v42  ;;  %v676_v33 = vadd.f32 %v6307_v39, %v6176_v1  ;;  %v1054_v8 = vadd.f32 %v6333_v59, %v6150_v57 }
 0x2d2   : > { %9088 = vst [vmem:[#allocation73_spill] sm:$0xff] %v6378_v36  ;;  %9089 = vst [vmem:[#allocation74_spill] sm:$0xff] %v6381_v23  ;;  %v6392_v31 = vadd.f32 %v6373_v14, %v717_v51  ;;  %v6395_v29 = vadd.f32 %v6375_v34, %v706_v56  ;;  %v677_v42 = vadd.f32 %v6307_v39, %v6209_v11 }
 0x2d3   : > { %756 = vmax.xlane.f32.xlu0 %v6361_v6  ;;  %738 = vmax.xlane.f32.xlu1 %v6364_v37  ;;  %v6389_v6 = vunpack.c.h.bf16 %v4629_v41  ;;  %v1083_v1 = vmax.f32 %v1051_v4, %v1067_v15  ;;  %v707_v44 = vmax.f32 %v675_v19, %v691_v28  ;;  %v1069_v40 = vmul.f32 0.2, %v1053_v24  ;;  %v4631_v37 = vld [vmem:[%s6302_s29 + $0x20] sm:$0xff]   ;;  %s269_s29 = scalar_lea.vmem %s8874_s4, %s9457_s20 }
 0x2d4   : > { %9091 = vst [vmem:[#allocation76_spill] sm:$0xff] %v6392_v31  ;;  %9092 = vst [vmem:[#allocation77_spill] sm:$0xff] %v6395_v29  ;;  %v6404_v41 = vunpack.c.l.bf16 %v4630_v53  ;;  %v1070_v51 = vmul.f32 0.2, %v1054_v8  ;;  %v693_v56 = vmul.f32 0.2, %v677_v42  ;;  %v678_v57 = vadd.f32 %v6307_v39, %v6250_v21 }
 0x2d5   : > { %9090 = vst [vmem:[#allocation75_spill] sm:$0xff] %v6389_v6  ;;  %v6411_v11 = vadd.f32 %v6321_v48, %v1083_v1  ;;  %v6414_v4 = vadd.f32 %v6389_v6, %v707_v44  ;;  %v1085_v19 = vmax.f32 %v1053_v24, %v1069_v40  ;;  %v6418_v28 = vunpack.c.h.bf16 %v4630_v53 }
 0x2d6   : > { %9093 = vst [vmem:[#allocation78_spill] sm:$0xff] %v6404_v41  ;;  %v694_v38 = vmul.f32 0.2, %v678_v57  ;;  %v679_v24 = vadd.f32 %v6307_v39, %v6266_v16  ;;  %v680_v16 = vadd.f32 %v6307_v39, %v6245_v26 }
 0x2d7   : > { %760 = vmax.xlane.f32.xlu0 %v6378_v36  ;;  %740 = vmax.xlane.f32.xlu1 %v6381_v23  ;;  %v692_v36 = vmul.f32 0.2, %v676_v33  ;;  %v1056_v23 = vadd.f32 %v6333_v59, %v6227_v32  ;;  %9094 = vst [vmem:[#allocation79_spill] sm:$0xff] %v6418_v28  ;;  %v6422_v21 = vadd.f32 %v6335_v47, %v1085_v19 }
 0x2d8   : > { %v710_v44 = vmax.f32 %v678_v57, %v694_v38  ;;  %v1062_v38 = vadd.f32 %v6333_v59, %v6260_v12  ;;  %v696_v19 = vmul.f32 0.2, %v680_v16  ;;  %v1064_v12 = vadd.f32 %v6333_v59, %v6284_v52 }
 0x2d9   : > { %v708_v15 = vmax.f32 %v676_v33, %v692_v36  ;;  %v1072_v32 = vmul.f32 0.2, %v1056_v23  ;;  %v1058_v36 = vadd.f32 %v6333_v59, %v6214_v50  ;;  %v6433_v33 = vunpack.c.l.bf16 %v4631_v37 }
 0x2da   : > { %v1060_v50 = vadd.f32 %v6333_v59, %v6270_v13  ;;  %v682_v13 = vadd.f32 %v6307_v39, %v6278_v63  ;;  %v684_v63 = vadd.f32 %v6307_v39, %v6274_v0  ;;  %v1080_v39 = vmul.f32 0.2, %v1064_v12 }
 0x2db   : > { %764 = vmax.xlane.f32.xlu0 %v6392_v31  ;;  %742 = vmax.xlane.f32.xlu1 %v6395_v29  ;;  %v1086_v31 = vmax.f32 %v1054_v8, %v1070_v51  ;;  %v709_v29 = vmax.f32 %v677_v42, %v693_v56  ;;  %v6425_v1 = vadd.f32 %v6404_v41, %v708_v15  ;;  %v1074_v40 = vmul.f32 0.2, %v1058_v36 }
 0x2dc   : > { %9095 = vst [vmem:[#allocation80_spill] sm:$0xff] %v6433_v33  ;;  %v1088_v42 = vmax.f32 %v1056_v23, %v1072_v32  ;;  %v695_v51 = vmul.f32 0.2, %v679_v24  ;;  %v6447_v56 = vunpack.c.h.bf16 %v4631_v37  ;;  %v6453_v23 = vadd.f32 %v6433_v33, %v710_v44 }
 0x2dd   : > { %v6436_v53 = vadd.f32 %v6354_v49, %v1086_v31  ;;  %v6439_v8 = vadd.f32 %v6418_v28, %v709_v29  ;;  %v1090_v29 = vmax.f32 %v1058_v36, %v1074_v40  ;;  %v1076_v57 = vmul.f32 0.2, %v1060_v50 }
 0x2de   : > { %9096 = vst [vmem:[#allocation81_spill] sm:$0xff] %v6447_v56  ;;  %v6450_v31 = vadd.f32 %v6389_v6, %v1088_v42  ;;  %v711_v26 = vmax.f32 %v679_v24, %v695_v51  ;;  %v1462_v15 = vsub.s32 2, %v6292_v17  ;;  %v6461_v37 = vunpack.c.l.bf16 %v6316_v22 }
 0x2df   : > { %1115 = vmax.xlane.f32.xlu0 %v6411_v11  ;;  %744 = vmax.xlane.f32.xlu1 %v6414_v4  ;;  %v1078_v32 = vmul.f32 0.2, %v1062_v38  ;;  %v698_v42 = vmul.f32 0.2, %v682_v13  ;;  %v6470_v36 = vadd.f32 %v6418_v28, %v1090_v29  ;;  %v1092_v22 = vmax.f32 %v1060_v50, %v1076_v57 }
 0x2e0   : > { %9097 = vst [vmem:[#allocation82_spill] sm:$0xff] %v6450_v31  ;;  %9098 = vst [vmem:[#allocation83_spill] sm:$0xff] %v6461_v37  ;;  %v6473_v24 = vadd.f32 %v6447_v56, %v711_v26  ;;  %v712_v44 = vmax.f32 %v680_v16, %v696_v19  ;;  %v6476_v40 = vrot.slane %v6304_v18, %v1462_v15  ;;  %v6479_v51 = vunpack.c.l.bf16 %v6338_v35 }
 0x2e1   : > { %v1094_v52 = vmax.f32 %v1062_v38, %v1078_v32  ;;  %v714_v0 = vmax.f32 %v682_v13, %v698_v42  ;;  %v700_v29 = vmul.f32 0.2, %v684_v63  ;;  %v1066_v16 = vadd.f32 %v6333_v59, %v6282_v25 }
 0x2e2   : > { %9099 = vst [vmem:[#allocation84_spill] sm:$0xff] %v6479_v51  ;;  %v6487_v50 = vadd.f32 %v6461_v37, %v712_v44  ;;  %v1052_v35 = vadd.f32 %v6333_v59, %v6119_v46  ;;  %v6494_v26 = vunpack.c.l.bf16 %v6357_v5  ;;  %v1096_v57 = vmax.f32 %v1064_v12, %v1080_v39 }
 0x2e3   : > { %1119 = vmax.xlane.f32.xlu0 %v6422_v21  ;;  %746 = vmax.xlane.f32.xlu1 %v6425_v1  ;;  %v6499_v38 = vadd.f32 %v6330_v60, %v1094_v52  ;;  %v6502_v13 = vadd.f32 %v6479_v51, %v714_v0  ;;  %v716_v19 = vmax.f32 %v684_v63, %v700_v29  ;;  %v1082_v15 = vmul.f32 0.2, %v1066_v16 }
 0x2e4   : > { %9100 = vst [vmem:[#allocation85_spill] sm:$0xff] %v6494_v26  ;;  %v1068_v25 = vmul.f32 0.2, %v1052_v35  ;;  %v1465_v46 = vadd.f32 %v6476_v40, %v6165_v62  ;;  %v1055_v5 = vadd.f32 %v6333_v59, %v6195_v7  ;;  %v6511_v32 = vadd.f32 %v6352_v58, %v1096_v57 }
 0x2e5   : > { %v6514_v42 = vadd.f32 %v6494_v26, %v716_v19  ;;  %v1466_v12 = vadd.f32 %v6476_v40, %v6115_v45  ;;  %v1057_v63 = vadd.f32 %v6333_v59, %v6179_v2  ;;  %v1098_v62 = vmax.f32 %v1066_v16, %v1082_v15 }
 0x2e6   : > { %v1481_v44 = vmul.f32 0.2, %v1465_v46  ;;  %v1071_v7 = vmul.f32 0.2, %v1055_v5  ;;  %v1468_v39 = vadd.f32 %v6476_v40, %v6202_v9  ;;  %v1059_v29 = vadd.f32 %v6333_v59, %v6252_v27 }
 0x2e7   : > { %1121 = vmax.xlane.f32.xlu0 %v6436_v53  ;;  %748 = vmax.xlane.f32.xlu1 %v6439_v8  ;;  %v1482_v52 = vmul.f32 0.2, %v1466_v12  ;;  %v1073_v0 = vmul.f32 0.2, %v1057_v63  ;;  %v6527_v45 = vadd.f32 %v6373_v14, %v1098_v62  ;;  %v1470_v62 = vadd.f32 %v6476_v40, %v6183_v3 }
 0x2e8   : > { %v1497_v16 = vmax.f32 %v1465_v46, %v1481_v44  ;;  %v1484_v15 = vmul.f32 0.2, %v1468_v39  ;;  %v1061_v46 = vadd.f32 %v6333_v59, %v6217_v54  ;;  %v1472_v3 = vadd.f32 %v6476_v40, %v6256_v20 }
 0x2e9   : > { %9101 = vst [vmem:[#allocation86_spill] sm:$0xff] %v6527_v45  ;;  %v1498_v57 = vmax.f32 %v1466_v12, %v1482_v52  ;;  %v1089_v19 = vmax.f32 %v1057_v63, %v1073_v0  ;;  %v1486_v44 = vmul.f32 0.2, %v1470_v62  ;;  %v1063_v54 = vadd.f32 %v6333_v59, %v6258_v55 }
 0x2ea   : > { %v6535_v9 = vadd.f32 %v6327_v61, %v1497_v16  ;;  %v1500_v63 = vmax.f32 %v1468_v39, %v1484_v15  ;;  %v1474_v39 = vadd.f32 %v6476_v40, %v6248_v30 }
 0x2eb   : > { %1125 = vmax.xlane.f32.xlu0 %v6450_v31  ;;  %750 = vmax.xlane.f32.xlu1 %v6453_v23  ;;  %v6484_v31 = vadd.f32 %v6447_v56, %v1092_v22  ;;  %v1084_v22 = vmax.f32 %v1052_v35, %v1068_v25  ;;  %v1087_v35 = vmax.f32 %v1055_v5, %v1071_v7  ;;  %v1075_v25 = vmul.f32 0.2, %v1059_v29 }
 0x2ec   : > { %9102 = vst [vmem:[#allocation87_spill] sm:$0xff] %v6535_v9  ;;  %v6547_v5 = vadd.f32 %v6335_v47, %v1498_v57  ;;  %v6550_v12 = vadd.f32 %v6404_v41, %v1089_v19  ;;  %v1077_v7 = vmul.f32 0.2, %v1061_v46  ;;  %v6559_v52 = vadd.f32 %v6375_v34, %v1500_v63 }
 0x2ed   : > { %v6530_v2 = vadd.f32 %v6327_v61, %v1084_v22  ;;  %v6538_v27 = vadd.f32 %v6375_v34, %v1087_v35  ;;  %v1091_v22 = vmax.f32 %v1059_v29, %v1075_v25  ;;  %v1065_v29 = vadd.f32 %v6333_v59, %v6254_v10  ;;  %v9105_v25 = vld [vmem:[#allocation55_spill] sm:$0xff] }
 0x2ee   : > { %9103 = vst [vmem:[#allocation88_spill] sm:$0xff] %v6547_v5  ;;  %9104 = vst [vmem:[#allocation89_spill] sm:$0xff] %v6559_v52  ;;  %v1502_v20 = vmax.f32 %v1470_v62, %v1486_v44  ;;  %v1093_v16 = vmax.f32 %v1061_v46, %v1077_v7  ;;  %v1488_v35 = vmul.f32 0.2, %v1472_v3  ;;  %v1079_v55 = vmul.f32 0.2, %v1063_v54 }
 0x2ef   : > { %1129 = vmax.xlane.f32.xlu0 %v6470_v36  ;;  %752 = vmax.xlane.f32.xlu1 %v6473_v24  ;;  %v6562_v0 = vadd.f32 %v6433_v33, %v1091_v22  ;;  %v1867_v57 = vsub.s32 3, %v6292_v17  ;;  %v1490_v19 = vmul.f32 0.2, %v1474_v39  ;;  %v1081_v15 = vmul.f32 0.2, %v1065_v29  ;;  %v9106_v22 = vld [vmem:[#allocation32_spill] sm:$0xff] }
 0x2f0   : > { %v1476_v63 = vadd.f32 %v6476_v40, %v9105_v25  ;;  %v1464_v30 = vadd.f32 %v6476_v40, %v9106_v22  ;;  %v6576_v59 = vadd.f32 %v6404_v41, %v1502_v20  ;;  %v6579_v10 = vadd.f32 %v6461_v37, %v1093_v16  ;;  %v9109_v16 = vld [vmem:[#allocation54_spill] sm:$0xff] }
 0x2f1   : > { %v1504_v62 = vmax.f32 %v1472_v3, %v1488_v35  ;;  %v1095_v46 = vmax.f32 %v1063_v54, %v1079_v55  ;;  %v6582_v44 = vrot.slane %v6304_v18, %v1867_v57  ;;  %v1506_v7 = vmax.f32 %v1474_v39, %v1490_v19  ;;  %v9110_v54 = vld [vmem:[#allocation33_spill] sm:$0xff]  ;;  %v6608_v18 = vpop.permute.xlu1 %1692 }
 0x2f2   : > { %9107 = vst [vmem:[#allocation55_spill] sm:$0xff] %v6576_v59  ;;  %v1097_v25 = vmax.f32 %v1065_v29, %v1081_v15  ;;  %v1492_v17 = vmul.f32 0.2, %v1476_v63  ;;  %v1478_v3 = vadd.f32 %v6476_v40, %v9109_v16  ;;  %v1467_v35 = vadd.f32 %v6476_v40, %v9110_v54  ;;  %v9114_v16 = vld [vmem:[#allocation43_spill] sm:$0xff] }
 0x2f3   : > { %1133 = vmax.xlane.f32.xlu0 %v6484_v31  ;;  %754 = vmax.xlane.f32.xlu1 %v6487_v50  ;;  %v6587_v22 = vadd.f32 %v6433_v33, %v1504_v62  ;;  %v6590_v20 = vadd.f32 %v6479_v51, %v1095_v46  ;;  %v6599_v39 = vadd.f32 %v6461_v37, %v1506_v7  ;;  %v9113_v62 = vld [vmem:[#allocation37_spill] sm:$0xff] }
 0x2f4   : > { %v6602_v29 = vadd.f32 %v6494_v26, %v1097_v25  ;;  %v1508_v55 = vmax.f32 %v1476_v63, %v1492_v17  ;;  %v1494_v19 = vmul.f32 0.2, %v1478_v3  ;;  %v1483_v15 = vmul.f32 0.2, %v1467_v35  ;;  %9115 = vst [vmem:[#allocation37_spill] sm:$0xff] %v6608_v18 }
 0x2f5   : > { %9108 = vst [vmem:[#allocation32_spill] sm:$0xff] %v6587_v22  ;;  %9111 = vst [vmem:[#allocation54_spill] sm:$0xff] %v6599_v39  ;;  %v1869_v46 = vadd.f32 %v6582_v44, %v9113_v62  ;;  %v1469_v54 = vadd.f32 %v6476_v40, %v9114_v16 }
 0x2f6   : > { %9112 = vst [vmem:[#allocation33_spill] sm:$0xff] %v6602_v29  ;;  %v6613_v7 = vadd.f32 %v6479_v51, %v1508_v55  ;;  %v1510_v62 = vmax.f32 %v1478_v3, %v1494_v19  ;;  %v1499_v16 = vmax.f32 %v1467_v35, %v1483_v15 }
 0x2f7   : > { %1137 = vmax.xlane.f32.xlu0 %v6499_v38  ;;  %758 = vmax.xlane.f32.xlu1 %v6502_v13  ;;  %v1485_v18 = vmul.f32 0.2, %v1469_v54 }
 0x2f8   : > { %9116 = vst [vmem:[#allocation43_spill] sm:$0xff] %v6613_v7  ;;  %v6632_v3 = vadd.f32 %v6354_v49, %v1499_v16 }
 0x2f9   : > { %v1501_v19 = vmax.f32 %v1469_v54, %v1485_v18 }
 0x2fb   : > { %1141 = vmax.xlane.f32.xlu0 %v6511_v32  ;;  %762 = vmax.xlane.f32.xlu1 %v6514_v42 }
 0x2ff   : > { %1145 = vmax.xlane.f32.xlu0 %v6527_v45  ;;  %1117 = vmax.xlane.f32.xlu1 %v6530_v2  ;;  %v9124_v45 = vld [vmem:[#allocation45_spill] sm:$0xff] }
 0x300   : > { %v1475_v18 = vadd.f32 %v6476_v40, %v9124_v45 }
 0x303   : > { %1530 = vmax.xlane.f32.xlu0 %v6535_v9  ;;  %1123 = vmax.xlane.f32.xlu1 %v6538_v27  ;;  %v9121_v9 = vld [vmem:[#allocation47_spill] sm:$0xff] }
 0x307   : > { %1532 = vmax.xlane.f32.xlu0 %v6547_v5  ;;  %1127 = vmax.xlane.f32.xlu1 %v6550_v12  ;;  %v9120_v5 = vld [vmem:[#allocation39_spill] sm:$0xff] }
 0x30b   : > { %1536 = vmax.xlane.f32.xlu0 %v6559_v52  ;;  %1131 = vmax.xlane.f32.xlu1 %v6562_v0  ;;  %v1480_v52 = vmul.f32 0.2, %v1464_v30 }
 0x30d   : > { %v1496_v57 = vmax.f32 %v1464_v30, %v1480_v52  ;;  %v9118_v52 = vld [vmem:[#allocation34_spill] sm:$0xff] }
 0x30e   : > { %v1871_v63 = vadd.f32 %v6582_v44, %v9118_v52  ;;  %v9119_v30 = vld [vmem:[#allocation42_spill] sm:$0xff]  ;;  %v1473_v52 = vadd.f32 %v6476_v40, %v9121_v9  ;;  %v6640_v9 = vadd.f32 %v6389_v6, %v1501_v19  ;;  %v9126_v19 = vld [vmem:[#allocation51_spill] sm:$0xff] }
 0x30f   : > { %1540 = vmax.xlane.f32.xlu0 %v6576_v59  ;;  %1135 = vmax.xlane.f32.xlu1 %v6579_v10  ;;  %v6616_v17 = vadd.f32 %v6321_v48, %v1496_v57  ;;  %v1471_v25 = vadd.f32 %v6476_v40, %v9119_v30  ;;  %v1872_v57 = vadd.f32 %v6582_v44, %v9120_v5 }
 0x310   : > { %v1887_v55 = vmul.f32 0.2, %v1871_v63  ;;  %v1477_v45 = vadd.f32 %v6476_v40, %v9126_v19 }
 0x311   : > { %9117 = vst [vmem:[#allocation90_spill] sm:$0xff] %v6616_v17  ;;  %v1487_v59 = vmul.f32 0.2, %v1471_v25 }
 0x312   : > { %v1903_v15 = vmax.f32 %v1871_v63, %v1887_v55  ;;  %v1491_v55 = vmul.f32 0.2, %v1475_v18  ;;  %v1493_v19 = vmul.f32 0.2, %v1477_v45 }
 0x313   : > { %1544 = vmax.xlane.f32.xlu0 %v6587_v22  ;;  %1139 = vmax.xlane.f32.xlu1 %v6590_v20  ;;  %v1885_v22 = vmul.f32 0.2, %v1869_v46  ;;  %v1503_v30 = vmax.f32 %v1471_v25, %v1487_v59 }
 0x314   : > { %v6649_v59 = vadd.f32 %v6335_v47, %v1903_v15 }
 0x315   : > { %v1901_v35 = vmax.f32 %v1869_v46, %v1885_v22  ;;  %v6652_v46 = vadd.f32 %v6418_v28, %v1503_v30 }
 0x316   : > { %9125 = vst [vmem:[#allocation42_spill] sm:$0xff] %v6649_v59 }
 0x317   : > { %1548 = vmax.xlane.f32.xlu0 %v6599_v39  ;;  %1143 = vmax.xlane.f32.xlu1 %v6602_v29  ;;  %v1831_v39 = vpop.permute.xlu1 %1830  ;;  %v6629_v29 = vadd.f32 %v6494_v26, %v1510_v62  ;;  %v6637_v5 = vadd.f32 %v6321_v48, %v1901_v35  ;;  %v9123_v62 = vld [vmem:[#allocation46_spill] sm:$0xff] }
 0x318   : > { %v1874_v16 = vadd.f32 %v6582_v44, %v9123_v62  ;;  %v1876_v35 = vadd.f32 %v6582_v44, %v1831_v39 }
 0x319   : > { %9122 = vst [vmem:[#allocation34_spill] sm:$0xff] %v6637_v5 }
 0x31a   : > { %v1890_v25 = vmul.f32 0.2, %v1874_v16  ;;  %v1892_v47 = vmul.f32 0.2, %v1876_v35 }
 0x31b   : > { %1552 = vmax.xlane.f32.xlu0 %v6613_v7  ;;  %1528 = vmax.xlane.f32.xlu1 %v6616_v17  ;;  %v1888_v7 = vmul.f32 0.2, %v1872_v57  ;;  %v1489_v17 = vmul.f32 0.2, %v1473_v52  ;;  %v1839_v22 = vpop.permute.xlu1 %1838 }
 0x31c   : > { %v1906_v39 = vmax.f32 %v1874_v16, %v1890_v25  ;;  %v1908_v16 = vmax.f32 %v1876_v35, %v1892_v47 }
 0x31d   : > { %v1904_v54 = vmax.f32 %v1872_v57, %v1888_v7  ;;  %v1505_v63 = vmax.f32 %v1473_v52, %v1489_v17  ;;  %v1878_v7 = vadd.f32 %v6582_v44, %v1839_v22  ;;  %v9128_v17 = vld [vmem:[#allocation50_spill] sm:$0xff]  ;;  %v1507_v52 = vmax.f32 %v1475_v18, %v1491_v55 }
 0x31e   : > { %v1479_v57 = vadd.f32 %v6476_v40, %v9128_v17  ;;  %v6674_v22 = vadd.f32 %v6389_v6, %v1906_v39  ;;  %v1509_v18 = vmax.f32 %v1477_v45, %v1493_v19  ;;  %v9142_v6 = vld [vmem:[#allocation69_spill] sm:$0xff] }
 0x31f   : > { %1556 = vmax.xlane.f32.xlu0 %v6629_v29  ;;  %1534 = vmax.xlane.f32.xlu1 %v6632_v3  ;;  %v1847_v62 = vpop.permute.xlu1 %1846  ;;  %v6660_v15 = vadd.f32 %v6354_v49, %v1904_v54  ;;  %v6663_v30 = vadd.f32 %v6447_v56, %v1505_v63  ;;  %v1894_v48 = vmul.f32 0.2, %v1878_v7  ;;  %v9129_v49 = vld [vmem:[#allocation35_spill] sm:$0xff]  ;;  %v6677_v40 = vadd.f32 %v6330_v60, %v1507_v52  ;;  %v9130_v52 = vld [vmem:[#allocation41_spill] sm:$0xff] }
 0x320   : > { %v1880_v54 = vadd.f32 %v6582_v44, %v1847_v62  ;;  %v1870_v63 = vadd.f32 %v6582_v44, %v9129_v49  ;;  %v6685_v49 = vadd.f32 %v6352_v58, %v1509_v18  ;;  %v1873_v47 = vadd.f32 %v6582_v44, %v9130_v52  ;;  %v9131_v18 = vld [vmem:[#allocation38_spill] sm:$0xff] }
 0x321   : > { %9127 = vst [vmem:[#allocation39_spill] sm:$0xff] %v6660_v15  ;;  %v1910_v55 = vmax.f32 %v1878_v7, %v1894_v48 }
 0x322   : > { %v1886_v62 = vmul.f32 0.2, %v1870_v63  ;;  %v1889_v19 = vmul.f32 0.2, %v1873_v47 }
 0x323   : > { %1933 = vmax.xlane.f32.xlu0 %v6637_v5  ;;  %1538 = vmax.xlane.f32.xlu1 %v6640_v9  ;;  %v1855_v25 = vpop.permute.xlu1 %1854  ;;  %v6682_v5 = vadd.f32 %v6418_v28, %v1908_v16  ;;  %v6693_v48 = vadd.f32 %v6447_v56, %v1910_v55  ;;  %v9133_v56 = vld [vmem:[#allocation57_spill] sm:$0xff] }
 0x324   : > { %v1882_v39 = vadd.f32 %v6582_v44, %v1855_v25  ;;  %v1902_v7 = vmax.f32 %v1870_v63, %v1886_v62  ;;  %v1875_v25 = vadd.f32 %v6582_v44, %v9131_v18  ;;  %v1905_v63 = vmax.f32 %v1873_v47, %v1889_v19 }
 0x325   : > { %v1879_v28 = vadd.f32 %v6582_v44, %v9133_v56 }
 0x326   : > { %v6707_v55 = vadd.f32 %v6327_v61, %v1902_v7  ;;  %v6719_v7 = vadd.f32 %v6375_v34, %v1905_v63 }
 0x327   : > { %1937 = vmax.xlane.f32.xlu0 %v6649_v59  ;;  %1542 = vmax.xlane.f32.xlu1 %v6652_v46  ;;  %v1495_v59 = vmul.f32 0.2, %v1479_v57  ;;  %v1863_v35 = vpop.permute.xlu1 %1862 }
 0x328   : > { %v1884_v16 = vadd.f32 %v6582_v44, %v1863_v35  ;;  %v1891_v35 = vmul.f32 0.2, %v1875_v25 }
 0x329   : > { %v1511_v17 = vmax.f32 %v1479_v57, %v1495_v59  ;;  %v1898_v57 = vmul.f32 0.2, %v1882_v39 }
 0x32a   : > { %v1900_v62 = vmul.f32 0.2, %v1884_v16 }
 0x32b   : > { %1939 = vmax.xlane.f32.xlu0 %v6660_v15  ;;  %1546 = vmax.xlane.f32.xlu1 %v6663_v30  ;;  %v1896_v15 = vmul.f32 0.2, %v1880_v54  ;;  %v6696_v59 = vadd.f32 %v6373_v14, %v1511_v17  ;;  %v9132_v17 = vld [vmem:[#allocation56_spill] sm:$0xff] }
 0x32d   : > { %v1912_v45 = vmax.f32 %v1880_v54, %v1896_v15  ;;  %v1877_v15 = vadd.f32 %v6582_v44, %v9132_v17  ;;  %v1914_v54 = vmax.f32 %v1882_v39, %v1898_v57  ;;  %v1907_v17 = vmax.f32 %v1875_v25, %v1891_v35  ;;  %v9134_v39 = vld [vmem:[#allocation58_spill] sm:$0xff] }
 0x32e   : > { %v1881_v47 = vadd.f32 %v6582_v44, %v9134_v39 }
 0x32f   : > { %1943 = vmax.xlane.f32.xlu0 %v6674_v22  ;;  %1550 = vmax.xlane.f32.xlu1 %v6677_v40  ;;  %v6704_v52 = vadd.f32 %v6330_v60, %v1912_v45  ;;  %v1893_v18 = vmul.f32 0.2, %v1877_v15  ;;  %v6716_v45 = vadd.f32 %v6352_v58, %v1914_v54  ;;  %v1916_v60 = vmax.f32 %v1884_v16, %v1900_v62  ;;  %v9135_v62 = vld [vmem:[#allocation60_spill] sm:$0xff] }
 0x330   : > { %v6729_v56 = vadd.f32 %v6404_v41, %v1907_v17  ;;  %v1895_v54 = vmul.f32 0.2, %v1879_v28  ;;  %v1897_v63 = vmul.f32 0.2, %v1881_v47  ;;  %v1883_v35 = vadd.f32 %v6582_v44, %v9135_v62 }
 0x331   : > { %v6726_v57 = vadd.f32 %v6373_v14, %v1916_v60  ;;  %v1909_v19 = vmax.f32 %v1877_v15, %v1893_v18 }
 0x332   : > { %v1911_v25 = vmax.f32 %v1879_v28, %v1895_v54  ;;  %v1913_v17 = vmax.f32 %v1881_v47, %v1897_v63  ;;  %v1899_v15 = vmul.f32 0.2, %v1883_v35 }
 0x333   : > { %1947 = vmax.xlane.f32.xlu0 %v6682_v5  ;;  %1554 = vmax.xlane.f32.xlu1 %v6685_v49  ;;  %v6734_v16 = vadd.f32 %v6433_v33, %v1909_v19 }
 0x334   : > { %v6740_v60 = vadd.f32 %v6461_v37, %v1911_v25  ;;  %v6744_v18 = vadd.f32 %v6479_v51, %v1913_v17  ;;  %v1915_v39 = vmax.f32 %v1883_v35, %v1899_v15  ;;  %v9136_v25 = vld [vmem:[#allocation66_spill] sm:$0xff] }
 0x335   : > { %v9137_v17 = vld [vmem:[#allocation70_spill] sm:$0xff] }
 0x336   : > { %v6748_v28 = vadd.f32 %v6494_v26, %v1915_v39  ;;  %v9138_v26 = vld [vmem:[#allocation74_spill] sm:$0xff] }
 0x337   : > { %1951 = vmax.xlane.f32.xlu0 %v6693_v48  ;;  %1558 = vmax.xlane.f32.xlu1 %v6696_v59 }
 0x33b   : > { %1955 = vmax.xlane.f32.xlu0 %v6704_v52  ;;  %1935 = vmax.xlane.f32.xlu1 %v6707_v55 }
 0x33f   : > { %1959 = vmax.xlane.f32.xlu0 %v6716_v45  ;;  %1941 = vmax.xlane.f32.xlu1 %v6719_v7 }
 0x343   : > { %1963 = vmax.xlane.f32.xlu0 %v6726_v57  ;;  %1945 = vmax.xlane.f32.xlu1 %v6729_v56 }
 0x347   : > { %1949 = vmax.xlane.f32.xlu1 %v6734_v16 }
 0x34b   : > { %1953 = vmax.xlane.f32.xlu1 %v6740_v60 }
 0x34f   : > { %1957 = vmax.xlane.f32.xlu1 %v6744_v18 }
 0x353   : > { %1961 = vmax.xlane.f32.xlu1 %v6748_v28 }
 0x35c   : > { %v737_v44 = vpop.xlane.xlu0 %736  ;;  %v735_v19 = vpop.xlane.xlu1 %734 }
 0x35d   : > { %v767_v54 = vsub.f32 %v6344_v43, %v737_v44  ;;  %v766_v47 = vsub.f32 %v9136_v25, %v735_v19  ;;  %v9139_v44 = vld [vmem:[#allocation77_spill] sm:$0xff] }
 0x35f   : > { %v784_v63 = vmul.f32 1.442695, %v767_v54  ;;  %v782_v62 = vmul.f32 1.442695, %v766_v47 }
 0x360   : > { %v757_v14 = vpop.xlane.xlu0 %756  ;;  %v739_v37 = vpop.xlane.xlu1 %738 }
 0x361   : > { %5187 = vpow2.f32 %v784_v63  ;;  %v768_v35 = vsub.f32 %v9137_v17, %v739_v37 }
 0x362   : > { %5189 = vpow2.f32 %v782_v62 }
 0x363   : > { %v786_v15 = vmul.f32 1.442695, %v768_v35 }
 0x364   : > { %v761_v51 = vpop.xlane.xlu0 %760  ;;  %v741_v39 = vpop.xlane.xlu1 %740 }
 0x365   : > { %v769_v58 = vsub.f32 %v9138_v26, %v741_v39  ;;  %5191 = vpow2.f32 %v786_v15 }
 0x367   : > { %v788_v33 = vmul.f32 1.442695, %v769_v58 }
 0x368   : > { %v6755_v41 = vpop.xlane.xlu0 %764  ;;  %v743_v43 = vpop.xlane.xlu1 %742 }
 0x369   : > { %v770_v19 = vsub.f32 %v9139_v44, %v743_v43  ;;  %5193 = vpow2.f32 %v788_v33 }
 0x36b   : > { %v6758_v54 = vpop.eup %5187  ;;  %v790_v25 = vmul.f32 1.442695, %v770_v19 }
 0x36c   : > { %v6760_v47 = vpop.eup %5189  ;;  %816 = vadd.xlane.f32.xlu0 %v6758_v54  ;;  %v6763_v37 = vpop.xlane.xlu0 %1115 }
 0x36d   : > { %v745_v63 = vpop.xlane.xlu1 %744  ;;  %814 = vadd.xlane.f32.xlu1 %v6760_v47  ;;  %5195 = vpow2.f32 %v790_v25 }
 0x36e   : > { %v771_v58 = vsub.f32 %v6414_v4, %v745_v63 }
 0x36f   : > { %v6767_v62 = vpop.eup %5191 }
 0x370   : > { %v792_v26 = vmul.f32 1.442695, %v771_v58  ;;  %v6769_v17 = vpop.xlane.xlu0 %1119 }
 0x371   : > { %v747_v33 = vpop.xlane.xlu1 %746  ;;  %818 = vadd.xlane.f32.xlu1 %v6767_v62 }
 0x372   : > { %v772_v35 = vsub.f32 %v6425_v1, %v747_v33  ;;  %5197 = vpow2.f32 %v792_v26 }
 0x373   : > { %v6773_v39 = vpop.eup %5193 }
 0x374   : > { %v794_v15 = vmul.f32 1.442695, %v772_v35  ;;  %v6775_v43 = vpop.xlane.xlu0 %1121  ;;  %820 = vadd.xlane.f32.xlu0 %v6773_v39 }
 0x375   : > { %v749_v44 = vpop.xlane.xlu1 %748 }
 0x376   : > { %v773_v4 = vsub.f32 %v6439_v8, %v749_v44  ;;  %5199 = vpow2.f32 %v794_v15  ;;  %v777_v8 = vsub.f32 %v9142_v6, %v757_v14 }
 0x377   : > { %v6779_v25 = vpop.eup %5195 }
 0x378   : > { %v796_v19 = vmul.f32 1.442695, %v773_v4  ;;  %9140 = vst [vmem:[#allocation47_spill] sm:$0xff] %v6779_v25  ;;  %v6781_v63 = vpop.xlane.xlu0 %1125  ;;  %822 = vadd.xlane.f32.xlu1 %v6779_v25 }
 0x379   : > { %v751_v58 = vpop.xlane.xlu1 %750 }
 0x37a   : > { %v774_v1 = vsub.f32 %v6453_v23, %v751_v58  ;;  %5201 = vpow2.f32 %v796_v19  ;;  %v804_v19 = vmul.f32 1.442695, %v777_v8  ;;  %v9143_v58 = vld [vmem:[#allocation73_spill] sm:$0xff] }
 0x37c   : > { %v798_v26 = vmul.f32 1.442695, %v774_v1  ;;  %v6785_v33 = vpop.eup %5197  ;;  %v6787_v35 = vpop.xlane.xlu0 %1129  ;;  %v779_v1 = vsub.f32 %v9143_v58, %v761_v51 }
 0x37d   : > { %9141 = vst [vmem:[#allocation46_spill] sm:$0xff] %v6785_v33  ;;  %v753_v34 = vpop.xlane.xlu1 %752  ;;  %824 = vadd.xlane.f32.xlu0 %v6785_v33 }
 0x37e   : > { %v775_v15 = vsub.f32 %v6473_v24, %v753_v34  ;;  %5203 = vpow2.f32 %v798_v26  ;;  %v808_v24 = vmul.f32 1.442695, %v779_v1  ;;  %v9144_v26 = vld [vmem:[#allocation76_spill] sm:$0xff] }
 0x380   : > { %v800_v44 = vmul.f32 1.442695, %v775_v15  ;;  %v6792_v4 = vpop.eup %5199  ;;  %v6794_v61 = vpop.xlane.xlu0 %1133  ;;  %v781_v15 = vsub.f32 %v9144_v26, %v6755_v41 }
 0x381   : > { %v755_v23 = vpop.xlane.xlu1 %754  ;;  %826 = vadd.xlane.f32.xlu1 %v6792_v4 }
 0x382   : > { %v776_v25 = vsub.f32 %v6487_v50, %v755_v23  ;;  %5205 = vpow2.f32 %v800_v44  ;;  %v812_v44 = vmul.f32 1.442695, %v781_v15  ;;  %v1147_v23 = vsub.f32 %v6411_v11, %v6763_v37 }
 0x383   : > { %5207 = vpow2.f32 %v804_v19  ;;  %v1150_v37 = vsub.f32 %v6436_v53, %v6775_v43 }
 0x384   : > { %v802_v6 = vmul.f32 1.442695, %v776_v25  ;;  %v6799_v14 = vpop.eup %5201  ;;  %v6801_v33 = vpop.xlane.xlu0 %1137 }
 0x385   : > { %v759_v34 = vpop.xlane.xlu1 %758  ;;  %828 = vadd.xlane.f32.xlu0 %v6799_v14 }
 0x386   : > { %v778_v51 = vsub.f32 %v6502_v13, %v759_v34  ;;  %5209 = vpow2.f32 %v802_v6  ;;  %v1163_v34 = vmul.f32 1.442695, %v1147_v23 }
 0x387   : > { %5211 = vpow2.f32 %v808_v24  ;;  %v1149_v24 = vsub.f32 %v6422_v21, %v6769_v17  ;;  %v9145_v21 = vld [vmem:[#allocation82_spill] sm:$0xff] }
 0x388   : > { %v806_v8 = vmul.f32 1.442695, %v778_v51  ;;  %v6807_v58 = vpop.eup %5203  ;;  %v6809_v50 = vpop.xlane.xlu0 %1141  ;;  %v1152_v17 = vsub.f32 %v9145_v21, %v6781_v63  ;;  %v1154_v63 = vsub.f32 %v6470_v36, %v6787_v35  ;;  %v1156_v36 = vsub.f32 %v6484_v31, %v6794_v61 }
 0x389   : > { %v763_v25 = vpop.xlane.xlu1 %762  ;;  %830 = vadd.xlane.f32.xlu1 %v6807_v58  ;;  %v1158_v31 = vsub.f32 %v6499_v38, %v6801_v33  ;;  %v1160_v38 = vsub.f32 %v6511_v32, %v6809_v50 }
 0x38a   : > { %v780_v41 = vsub.f32 %v6514_v42, %v763_v25  ;;  %5213 = vpow2.f32 %v806_v8  ;;  %v1167_v25 = vmul.f32 1.442695, %v1149_v24  ;;  %v1181_v61 = vmul.f32 1.442695, %v1156_v36 }
 0x38b   : > { %5215 = vpow2.f32 %v812_v44 }
 0x38c   : > { %v810_v19 = vmul.f32 1.442695, %v780_v41  ;;  %v6815_v1 = vpop.eup %5205  ;;  %v6817_v13 = vpop.xlane.xlu0 %1145 }
 0x38d   : > { %v1118_v6 = vpop.xlane.xlu1 %1117  ;;  %832 = vadd.xlane.f32.xlu0 %v6815_v1  ;;  %v6825_v42 = vpop.eup %5207 }
 0x38e   : > { %v1148_v11 = vsub.f32 %v6530_v2, %v1118_v6  ;;  %5217 = vpow2.f32 %v810_v19  ;;  %v1169_v2 = vmul.f32 1.442695, %v1150_v37  ;;  %v1173_v19 = vmul.f32 1.442695, %v1152_v17 }
 0x38f   : > { %5219 = vpow2.f32 %v1163_v34 }
 0x390   : > { %v1165_v26 = vmul.f32 1.442695, %v1148_v11  ;;  %v6827_v15 = vpop.eup %5209  ;;  %v6829_v51 = vpop.xlane.xlu0 %1530 }
 0x391   : > { %v1124_v8 = vpop.xlane.xlu1 %1123  ;;  %836 = vadd.xlane.f32.xlu0 %v6825_v42  ;;  %834 = vadd.xlane.f32.xlu1 %v6827_v15  ;;  %v6836_v43 = vpop.eup %5211 }
 0x392   : > { %5221 = vpow2.f32 %v1165_v26  ;;  %v1151_v53 = vsub.f32 %v6538_v27, %v1124_v8  ;;  %v1177_v26 = vmul.f32 1.442695, %v1154_v63  ;;  %v5785_v8 = vmov 76  }
 0x393   : > { %5223 = vpow2.f32 %v1167_v25  ;;  %5163 = vset.pattern.permute.xlu0 %v5785_v8  ;;  %5164 = vset.pattern.permute.xlu1 %v5785_v8  ;;  %v9147_v8 = vld [vmem:[#allocation86_spill] sm:$0xff] }
 0x394   : > { %v6838_v44 = vpop.eup %5213  ;;  %v6840_v23 = vpop.xlane.xlu0 %1532  ;;  %5225 = vpow2.f32 %v1169_v2  ;;  %v1171_v6 = vmul.f32 1.442695, %v1151_v53  ;;  %v1162_v32 = vsub.f32 %v9147_v8, %v6817_v13 }
 0x395   : > { %v1128_v41 = vpop.xlane.xlu1 %1127  ;;  %840 = vadd.xlane.f32.xlu0 %v6836_v43  ;;  %838 = vadd.xlane.f32.xlu1 %v6838_v44  ;;  %v6847_v34 = vpop.eup %5215  ;;  %5227 = vpow2.f32 %v1173_v19 }
 0x396   : > { %v1153_v27 = vsub.f32 %v6550_v12, %v1128_v41  ;;  %5229 = vpow2.f32 %v1171_v6 }
 0x397   : > { %5231 = vpow2.f32 %v1177_v26 }
 0x398   : > { %v6849_v24 = vpop.eup %5217  ;;  %v6851_v11 = vpop.xlane.xlu0 %1536  ;;  %v1175_v35 = vmul.f32 1.442695, %v1153_v27  ;;  %v1185_v27 = vmul.f32 1.442695, %v1158_v31 }
 0x399   : > { %v1132_v37 = vpop.xlane.xlu1 %1131  ;;  %844 = vadd.xlane.f32.xlu0 %v6847_v34  ;;  %842 = vadd.xlane.f32.xlu1 %v6849_v24  ;;  %v6858_v25 = vpop.eup %5219 }
 0x39a   : > { %v1155_v12 = vsub.f32 %v6562_v0, %v1132_v37  ;;  %5233 = vpow2.f32 %v1175_v35 }
 0x39b   : > { %5235 = vpow2.f32 %v1181_v61 }
 0x39c   : > { %v6860_v21 = vpop.eup %5221  ;;  %v6862_v17 = vpop.xlane.xlu0 %1540  ;;  %v1179_v0 = vmul.f32 1.442695, %v1155_v12  ;;  %v1189_v12 = vmul.f32 1.442695, %v1160_v38 }
 0x39d   : > { %v1136_v2 = vpop.xlane.xlu1 %1135  ;;  %1195 = vadd.xlane.f32.xlu1 %v6858_v25  ;;  %1197 = vadd.xlane.f32.xlu0 %v6860_v21  ;;  %v6869_v41 = vpop.eup %5223 }
 0x39e   : > { %v1157_v53 = vsub.f32 %v6579_v10, %v1136_v2  ;;  %v6871_v19 = vpop.eup %5225  ;;  %5237 = vpow2.f32 %v1179_v0  ;;  %v9148_v2 = vld [vmem:[#allocation33_spill] sm:$0xff] }
 0x39f   : > { %v6880_v37 = vpop.eup %5227  ;;  %5239 = vpow2.f32 %v1185_v27  ;;  %v9150_v27 = vld [vmem:[#allocation87_spill] sm:$0xff] }
 0x3a0   : > { %v6873_v63 = vpop.xlane.xlu0 %1544  ;;  %v1183_v33 = vmul.f32 1.442695, %v1157_v53  ;;  %v6882_v26 = vpop.eup %5229  ;;  %v1561_v13 = vsub.f32 %v9150_v27, %v6829_v51 }
 0x3a1   : > { %v1140_v6 = vpop.xlane.xlu1 %1139  ;;  %1199 = vadd.xlane.f32.xlu1 %v6869_v41  ;;  %1201 = vadd.xlane.f32.xlu0 %v6871_v19  ;;  %9146 = vst [vmem:[#allocation45_spill] sm:$0xff] %v6882_v26  ;;  %v6891_v61 = vpop.eup %5231 }
 0x3a2   : > { %v1159_v10 = vsub.f32 %v6590_v20, %v1140_v6  ;;  %5241 = vpow2.f32 %v1183_v33  ;;  %v1193_v6 = vmul.f32 1.442695, %v1162_v32  ;;  %v9151_v33 = vld [vmem:[#allocation90_spill] sm:$0xff]  ;;  %v9152_v32 = vld [vmem:[#allocation88_spill] sm:$0xff] }
 0x3a3   : > { %5243 = vpow2.f32 %v1189_v12  ;;  %v1578_v12 = vmul.f32 1.442695, %v1561_v13  ;;  %v1562_v51 = vsub.f32 %v9152_v32, %v6840_v23 }
 0x3a4   : > { %v6884_v36 = vpop.xlane.xlu0 %1548  ;;  %v1187_v50 = vmul.f32 1.442695, %v1159_v10  ;;  %v6893_v31 = vpop.eup %5233 }
 0x3a5   : > { %v1144_v35 = vpop.xlane.xlu1 %1143  ;;  %1205 = vadd.xlane.f32.xlu0 %v6880_v37  ;;  %1203 = vadd.xlane.f32.xlu1 %v6882_v26  ;;  %9149 = vst [vmem:[#allocation51_spill] sm:$0xff] %v6893_v31 }
 0x3a6   : > { %v1161_v20 = vsub.f32 %v9148_v2, %v1144_v35  ;;  %5245 = vpow2.f32 %v1187_v50  ;;  %v6902_v35 = vpop.eup %5235 }
 0x3a7   : > { %5247 = vpow2.f32 %v1193_v6  ;;  %v9154_v6 = vld [vmem:[#allocation89_spill] sm:$0xff] }
 0x3a8   : > { %v6895_v0 = vpop.xlane.xlu0 %1552  ;;  %v1191_v38 = vmul.f32 1.442695, %v1161_v20  ;;  %v6904_v8 = vpop.eup %5237  ;;  %v1564_v13 = vsub.f32 %v9154_v6, %v6851_v11 }
 0x3a9   : > { %v1529_v53 = vpop.xlane.xlu1 %1528  ;;  %1209 = vadd.xlane.f32.xlu0 %v6891_v61  ;;  %1207 = vadd.xlane.f32.xlu1 %v6893_v31  ;;  %v1580_v31 = vmul.f32 1.442695, %v1562_v51  ;;  %v9156_v51 = vld [vmem:[#allocation55_spill] sm:$0xff] }
 0x3aa   : > { %v1560_v10 = vsub.f32 %v9151_v33, %v1529_v53  ;;  %5249 = vpow2.f32 %v1191_v38  ;;  %v6913_v53 = vpop.eup %5239  ;;  %v1566_v11 = vsub.f32 %v9156_v51, %v6862_v17 }
 0x3ab   : > { %5251 = vpow2.f32 %v1578_v12  ;;  %v1584_v12 = vmul.f32 1.442695, %v1564_v13  ;;  %v9158_v13 = vld [vmem:[#allocation32_spill] sm:$0xff] }
 0x3ac   : > { %v6906_v2 = vpop.xlane.xlu0 %1556  ;;  %v1576_v50 = vmul.f32 1.442695, %v1560_v10  ;;  %v6915_v27 = vpop.eup %5241  ;;  %v1568_v17 = vsub.f32 %v9158_v13, %v6873_v63 }
 0x3ad   : > { %v1535_v26 = vpop.xlane.xlu1 %1534  ;;  %1213 = vadd.xlane.f32.xlu0 %v6902_v35  ;;  %1211 = vadd.xlane.f32.xlu1 %v6904_v8  ;;  %9153 = vst [vmem:[#allocation50_spill] sm:$0xff] %v6915_v27 }
 0x3ae   : > { %v1563_v20 = vsub.f32 %v6632_v3, %v1535_v26  ;;  %5253 = vpow2.f32 %v1576_v50  ;;  %v6924_v26 = vpop.eup %5243 }
 0x3af   : > { %5255 = vpow2.f32 %v1580_v31  ;;  %v1588_v31 = vmul.f32 1.442695, %v1566_v11 }
 0x3b0   : > { %v1582_v23 = vmul.f32 1.442695, %v1563_v20  ;;  %v6921_v38 = vpop.xlane.xlu0 %1933  ;;  %v6926_v10 = vpop.eup %5245 }
 0x3b1   : > { %v1539_v33 = vpop.xlane.xlu1 %1538  ;;  %1217 = vadd.xlane.f32.xlu0 %v6913_v53  ;;  %1215 = vadd.xlane.f32.xlu1 %v6915_v27  ;;  %9155 = vst [vmem:[#allocation35_spill] sm:$0xff] %v6926_v10  ;;  %v6933_v6 = vpop.eup %5247 }
 0x3b2   : > { %v1565_v3 = vsub.f32 %v6640_v9, %v1539_v33  ;;  %5257 = vpow2.f32 %v1582_v23 }
 0x3b3   : > { %5259 = vpow2.f32 %v1584_v12  ;;  %v9159_v12 = vld [vmem:[#allocation54_spill] sm:$0xff] }
 0x3b4   : > { %v1586_v50 = vmul.f32 1.442695, %v1565_v3  ;;  %v6935_v9 = vpop.eup %5249  ;;  %v6937_v33 = vpop.xlane.xlu0 %1937  ;;  %v1570_v11 = vsub.f32 %v9159_v12, %v6884_v36 }
 0x3b5   : > { %v1543_v32 = vpop.xlane.xlu1 %1542  ;;  %1221 = vadd.xlane.f32.xlu0 %v6924_v26  ;;  %1219 = vadd.xlane.f32.xlu1 %v6926_v10  ;;  %9157 = vst [vmem:[#allocation41_spill] sm:$0xff] %v6935_v9  ;;  %v6944_v3 = vpop.eup %5251  ;;  %v1592_v10 = vmul.f32 1.442695, %v1568_v17  ;;  %v9160_v17 = vld [vmem:[#allocation43_spill] sm:$0xff] }
 0x3b6   : > { %v1567_v20 = vsub.f32 %v6652_v46, %v1543_v32  ;;  %5261 = vpow2.f32 %v1586_v50 }
 0x3b7   : > { %5263 = vpow2.f32 %v1588_v31  ;;  %v1596_v31 = vmul.f32 1.442695, %v1570_v11  ;;  %v1574_v11 = vsub.f32 %v6629_v29, %v6906_v2 }
 0x3b8   : > { %v1590_v23 = vmul.f32 1.442695, %v1567_v20  ;;  %v6946_v32 = vpop.eup %5253  ;;  %v1940_v63 = vpop.xlane.xlu0 %1939 }
 0x3b9   : > { %v1547_v27 = vpop.xlane.xlu1 %1546  ;;  %1225 = vadd.xlane.f32.xlu0 %v6933_v6  ;;  %1223 = vadd.xlane.f32.xlu1 %v6935_v9  ;;  %v1572_v9 = vsub.f32 %v9160_v17, %v6895_v0  ;;  %v1604_v17 = vmul.f32 1.442695, %v1574_v11  ;;  %v9164_v11 = vld [vmem:[#allocation42_spill] sm:$0xff] }
 0x3ba   : > { %v1569_v46 = vsub.f32 %v6663_v30, %v1547_v27  ;;  %5265 = vpow2.f32 %v1590_v23  ;;  %v6953_v30 = vpop.eup %5255 }
 0x3bb   : > { %5267 = vpow2.f32 %v1592_v10  ;;  %v1600_v10 = vmul.f32 1.442695, %v1572_v9  ;;  %v9163_v9 = vld [vmem:[#allocation34_spill] sm:$0xff] }
 0x3bc   : > { %v1594_v50 = vmul.f32 1.442695, %v1569_v46  ;;  %v6955_v27 = vpop.eup %5257 }
 0x3bd   : > { %v1551_v51 = vpop.xlane.xlu1 %1550  ;;  %1610 = vadd.xlane.f32.xlu1 %v6944_v3  ;;  %1608 = vadd.xlane.f32.xlu0 %v6946_v32  ;;  %v6962_v46 = vpop.eup %5259 }
 0x3be   : > { %v1571_v20 = vsub.f32 %v6677_v40, %v1551_v51  ;;  %5269 = vpow2.f32 %v1594_v50  ;;  %v1944_v51 = vpop.xlane.xlu0 %1943 }
 0x3bf   : > { %5271 = vpow2.f32 %v1596_v31  ;;  %v1965_v31 = vsub.f32 %v9163_v9, %v6921_v38  ;;  %v9165_v38 = vld [vmem:[#allocation39_spill] sm:$0xff] }
 0x3c0   : > { %v1598_v36 = vmul.f32 1.442695, %v1571_v20  ;;  %v6964_v40 = vpop.eup %5261  ;;  %v1968_v9 = vsub.f32 %v9165_v38, %v1940_v63 }
 0x3c1   : > { %v1555_v13 = vpop.xlane.xlu1 %1554  ;;  %1612 = vadd.xlane.f32.xlu0 %v6953_v30  ;;  %1614 = vadd.xlane.f32.xlu1 %v6955_v27  ;;  %9161 = vst [vmem:[#allocation38_spill] sm:$0xff] %v6964_v40 }
 0x3c2   : > { %v1573_v23 = vsub.f32 %v6685_v49, %v1555_v13  ;;  %5273 = vpow2.f32 %v1598_v36  ;;  %v6971_v49 = vpop.eup %5263  ;;  %v1948_v29 = vpop.xlane.xlu0 %1947 }
 0x3c3   : > { %5275 = vpow2.f32 %v1600_v10  ;;  %v1981_v10 = vmul.f32 1.442695, %v1965_v31  ;;  %v1970_v31 = vsub.f32 %v6674_v22, %v1944_v51 }
 0x3c4   : > { %v1602_v0 = vmul.f32 1.442695, %v1573_v23  ;;  %v6973_v20 = vpop.eup %5265 }
 0x3c5   : > { %v1559_v12 = vpop.xlane.xlu1 %1558  ;;  %1616 = vadd.xlane.f32.xlu0 %v6962_v46  ;;  %1618 = vadd.xlane.f32.xlu1 %v6964_v40  ;;  %9162 = vst [vmem:[#allocation56_spill] sm:$0xff] %v6973_v20  ;;  %v1967_v40 = vsub.f32 %v9164_v11, %v6937_v33  ;;  %v1987_v33 = vmul.f32 1.442695, %v1968_v9  ;;  %v1991_v38 = vmul.f32 1.442695, %v1970_v31 }
 0x3c6   : > { %v1575_v50 = vsub.f32 %v6696_v59, %v1559_v12  ;;  %5277 = vpow2.f32 %v1602_v0  ;;  %v6980_v59 = vpop.eup %5267 }
 0x3c7   : > { %5279 = vpow2.f32 %v1604_v17  ;;  %v1985_v17 = vmul.f32 1.442695, %v1967_v40 }
 0x3c8   : > { %v1606_v2 = vmul.f32 1.442695, %v1575_v50  ;;  %v6982_v23 = vpop.eup %5269 }
 0x3c9   : > { %v1936_v13 = vpop.xlane.xlu1 %1935  ;;  %1620 = vadd.xlane.f32.xlu0 %v6971_v49  ;;  %1622 = vadd.xlane.f32.xlu1 %v6973_v20  ;;  %v6989_v50 = vpop.eup %5271 }
 0x3ca   : > { %v1966_v36 = vsub.f32 %v6707_v55, %v1936_v13  ;;  %5281 = vpow2.f32 %v1606_v2  ;;  %v1952_v13 = vpop.xlane.xlu0 %1951 }
 0x3cb   : > { %5283 = vpow2.f32 %v1981_v10  ;;  %v1972_v10 = vsub.f32 %v6682_v5, %v1948_v29 }
 0x3cc   : > { %v1983_v0 = vmul.f32 1.442695, %v1966_v36  ;;  %v6991_v55 = vpop.eup %5273 }
 0x3cd   : > { %v1942_v12 = vpop.xlane.xlu1 %1941  ;;  %1624 = vadd.xlane.f32.xlu0 %v6980_v59  ;;  %1626 = vadd.xlane.f32.xlu1 %v6982_v23  ;;  %v6997_v2 = vpop.eup %5275 }
 0x3ce   : > { %5285 = vpow2.f32 %v1983_v0  ;;  %v1969_v63 = vsub.f32 %v6719_v7, %v1942_v12  ;;  %v1956_v22 = vpop.xlane.xlu0 %1955  ;;  %v1995_v0 = vmul.f32 1.442695, %v1972_v10 }
 0x3cf   : > { %5287 = vpow2.f32 %v1985_v17  ;;  %v1974_v17 = vsub.f32 %v6693_v48, %v1952_v13 }
 0x3d0   : > { %v6999_v36 = vpop.eup %5277  ;;  %5289 = vpow2.f32 %v1987_v33  ;;  %v1989_v40 = vmul.f32 1.442695, %v1969_v63  ;;  %v1976_v63 = vsub.f32 %v6704_v52, %v1956_v22 }
 0x3d1   : > { %v1946_v20 = vpop.xlane.xlu1 %1945  ;;  %1628 = vadd.xlane.f32.xlu0 %v6989_v50  ;;  %1630 = vadd.xlane.f32.xlu1 %v6991_v55  ;;  %v7005_v9 = vpop.eup %5279  ;;  %5291 = vpow2.f32 %v1991_v38  ;;  %v1999_v33 = vmul.f32 1.442695, %v1974_v17 }
 0x3d2   : > { %v1971_v51 = vsub.f32 %v6729_v56, %v1946_v20  ;;  %5293 = vpow2.f32 %v1989_v40  ;;  %v1960_v20 = vpop.xlane.xlu0 %1959 }
 0x3d3   : > { %5295 = vpow2.f32 %v1995_v0  ;;  %v1978_v40 = vsub.f32 %v6716_v45, %v1960_v20 }
 0x3d4   : > { %v7007_v7 = vpop.eup %5281  ;;  %v1993_v5 = vmul.f32 1.442695, %v1971_v51 }
 0x3d5   : > { %v1950_v11 = vpop.xlane.xlu1 %1949  ;;  %1632 = vadd.xlane.f32.xlu0 %v6997_v2  ;;  %1634 = vadd.xlane.f32.xlu1 %v6999_v36  ;;  %v7013_v31 = vpop.eup %5283  ;;  %v2007_v17 = vmul.f32 1.442695, %v1978_v40 }
 0x3d6   : > { %v1973_v29 = vsub.f32 %v6734_v16, %v1950_v11  ;;  %5297 = vpow2.f32 %v1993_v5  ;;  %v2003_v11 = vmul.f32 1.442695, %v1976_v63  ;;  %v1964_v52 = vpop.xlane.xlu0 %1963 }
 0x3d7   : > { %5299 = vpow2.f32 %v1999_v33  ;;  %v1980_v5 = vsub.f32 %v6726_v57, %v1964_v52 }
 0x3d8   : > { %v7015_v56 = vpop.eup %5285  ;;  %v1997_v13 = vmul.f32 1.442695, %v1973_v29 }
 0x3d9   : > { %v1954_v12 = vpop.xlane.xlu1 %1953  ;;  %1636 = vadd.xlane.f32.xlu0 %v7005_v9  ;;  %1638 = vadd.xlane.f32.xlu1 %v7007_v7  ;;  %v7021_v10 = vpop.eup %5287  ;;  %v2011_v33 = vmul.f32 1.442695, %v1980_v5 }
 0x3da   : > { %v1975_v38 = vsub.f32 %v6740_v60, %v1954_v12  ;;  %v7023_v16 = vpop.eup %5289  ;;  %5301 = vpow2.f32 %v1997_v13 }
 0x3db   : > { %v7029_v0 = vpop.eup %5291  ;;  %5303 = vpow2.f32 %v2003_v11 }
 0x3dc   : > { %v2001_v22 = vmul.f32 1.442695, %v1975_v38  ;;  %v7031_v12 = vpop.eup %5293 }
 0x3dd   : > { %2013 = vadd.xlane.f32.xlu1 %v7013_v31  ;;  %2015 = vadd.xlane.f32.xlu0 %v7015_v56  ;;  %v1958_v48 = vpop.xlane.xlu1 %1957  ;;  %v7037_v20 = vpop.eup %5295 }
 0x3de   : > { %v1977_v51 = vsub.f32 %v6744_v18, %v1958_v48  ;;  %5305 = vpow2.f32 %v2001_v22 }
 0x3df   : > { %5307 = vpow2.f32 %v2007_v17 }
 0x3e0   : > { %v2005_v45 = vmul.f32 1.442695, %v1977_v51  ;;  %v7039_v18 = vpop.eup %5297 }
 0x3e1   : > { %2017 = vadd.xlane.f32.xlu1 %v7021_v10  ;;  %2019 = vadd.xlane.f32.xlu0 %v7023_v16  ;;  %v1962_v60 = vpop.xlane.xlu1 %1961  ;;  %v7043_v63 = vpop.eup %5299 }
 0x3e2   : > { %v1979_v29 = vsub.f32 %v6748_v28, %v1962_v60  ;;  %5309 = vpow2.f32 %v2005_v45 }
 0x3e3   : > { %5311 = vpow2.f32 %v2011_v33 }
 0x3e4   : > { %v2009_v57 = vmul.f32 1.442695, %v1979_v29  ;;  %v7045_v48 = vpop.eup %5301 }
 0x3e5   : > { %2023 = vadd.xlane.f32.xlu0 %v7029_v0  ;;  %2021 = vadd.xlane.f32.xlu1 %v7031_v12  ;;  %v7049_v28 = vpop.eup %5303 }
 0x3e6   : > { %5313 = vpow2.f32 %v2009_v57 }
 0x3e8   : > { %v7051_v13 = vpop.eup %5305 }
 0x3e9   : > { %2027 = vadd.xlane.f32.xlu0 %v7037_v20  ;;  %2025 = vadd.xlane.f32.xlu1 %v7039_v18  ;;  %v7055_v38 = vpop.eup %5307 }
 0x3ea   : > { %9166 = vst [vmem:[#allocation57_spill] sm:$0xff] %v7055_v38 }
 0x3ec   : > { %v7057_v11 = vpop.eup %5309 }
 0x3ed   : > { %2031 = vadd.xlane.f32.xlu0 %v7043_v63  ;;  %2029 = vadd.xlane.f32.xlu1 %v7045_v48  ;;  %v7061_v40 = vpop.eup %5311 }
 0x3ee   : > { %9167 = vst [vmem:[#allocation58_spill] sm:$0xff] %v7061_v40 }
 0x3f0   : > { %v7063_v52 = vpop.eup %5313 }
 0x3f1   : > { %2035 = vadd.xlane.f32.xlu0 %v7049_v28  ;;  %2033 = vadd.xlane.f32.xlu1 %v7051_v13  ;;  %9168 = vst [vmem:[#allocation60_spill] sm:$0xff] %v7063_v52 }
 0x3f5   : > { %2039 = vadd.xlane.f32.xlu0 %v7055_v38  ;;  %2037 = vadd.xlane.f32.xlu1 %v7057_v11 }
 0x3f9   : > { %2043 = vadd.xlane.f32.xlu0 %v7061_v40  ;;  %2041 = vadd.xlane.f32.xlu1 %v7063_v52  ;;  %v817_v22 = vpop.xlane.xlu0 %816  ;;  %v9169_v52 = vld [vmem:[#allocation13_spill] sm:$0xff] }
 0x3fa   : > { %5315 = vrcp.f32 %v817_v22  ;;  %v815_v51 = vpop.xlane.xlu1 %814 }
 0x3fb   : > { %5317 = vrcp.f32 %v815_v51 }
 0x3fe   : > { %v819_v60 = vpop.xlane.xlu1 %818 }
 0x3ff   : > { %5319 = vrcp.f32 %v819_v60  ;;  %v9170_v60 = vld [vmem:[#allocation19_spill] sm:$0xff] }
 0x401   : > { %v821_v17 = vpop.xlane.xlu0 %820 }
 0x402   : > { %5321 = vrcp.f32 %v821_v17 }
 0x404   : > { %v5316_v5 = vpop.eup %5315 }
 0x405   : > { %v5318_v45 = vpop.eup %5317  ;;  %v863_v29 = vmul.f32 %v5316_v5, %v6758_v54  ;;  %v823_v33 = vpop.xlane.xlu1 %822 }
 0x406   : > { %v862_v57 = vmul.f32 %v5318_v45, %v6760_v47  ;;  %5323 = vrcp.f32 %v823_v33  ;;  %v9171_v47 = vld [vmem:[#allocation11_spill] sm:$0xff]  ;;  %v9172_v33 = vld [vmem:[#allocation17_spill] sm:$0xff] }
 0x408   : > { %v878_v38 = vpack.c.bf16 %v863_v29, %v862_v57  ;;  %v9174_v57 = vld [vmem:[#allocation25_spill] sm:$0xff] }
 0x409   : > { %v5320_v22 = vpop.eup %5319 }
 0x40a   : > { %v825_v40 = vpop.xlane.xlu0 %824  ;;  %2085 = vrot.lane.b32.xlu1 %v9169_v52, %s5786_s30  ;;  %4809 = vmatprep.mubr.bf16.mxu1 %v878_v38  ;;  %v864_v54 = vmul.f32 %v5320_v22, %v6767_v62  ;;  %v9175_v62 = vld [vmem:[#allocation40_spill] sm:$0xff]  ;;  %v9176_v22 = vld [vmem:[#allocation23_spill] sm:$0xff] }
 0x40b   : > { %5325 = vrcp.f32 %v825_v40  ;;  %v9173_v40 = vld [vmem:[#allocation36_spill] sm:$0xff] }
 0x40c   : > { %v5322_v51 = vpop.eup %5321 }
 0x40d   : > { %v865_v5 = vmul.f32 %v5322_v51, %v6773_v39 }
 0x40e   : > { %2089 = vrot.lane.b32.xlu1 %v9170_v60, %s5786_s30  ;;  %v827_v17 = vpop.xlane.xlu1 %826 }
 0x40f   : > { %2087 = vrot.lane.b32.xlu0 %v9171_v47, %s5786_s30  ;;  %v879_v45 = vpack.c.bf16 %v865_v5, %v864_v54  ;;  %5327 = vrcp.f32 %v827_v17  ;;  %v9177_v17 = vld [vmem:[#allocation47_spill] sm:$0xff]  ;;  %v9178_v5 = vld [vmem:[#allocation46_spill] sm:$0xff] }
 0x410   : > { %v5324_v38 = vpop.eup %5323 }
 0x411   : > { %4810 = vmatmul.mubr.bf16.vlgmr.msra.gmra.mrb[0].mxu1 %v879_v45  ;;  %v866_v54 = vmul.f32 %v5324_v38, %v9177_v17  ;;  %v9179_v45 = vld [vmem:[#allocation31_spill] sm:$0xff]  ;;  %v9182_v38 = vld [vmem:[#allocation9_spill] sm:$0xff] }
 0x412   : > { %v829_v29 = vpop.xlane.xlu0 %828  ;;  %2091 = vrot.lane.b32.xlu1 %v9172_v33, %s5786_s30  ;;  %4858 = vmatpush3.bf16.msra.mxu1 %v9173_v40 }
 0x413   : > { %5329 = vrcp.f32 %v829_v29  ;;  %2093 = vrot.lane.b32.xlu0 %v9174_v57, %s5786_s30  ;;  %4859 = vmatprep.subr.bf16.mxu1 %v9175_v62  ;;  %v9180_v29 = vld [vmem:[#allocation49_spill] sm:$0xff] }
 0x414   : > { %v9181_v57 = vld [vmem:[#allocation29_spill] sm:$0xff] }
 0x415   : > { %v5326_v39 = vpop.eup %5325 }
 0x416   : > { %2095 = vrot.lane.b32.xlu1 %v9176_v22, %s5786_s30  ;;  %v831_v51 = vpop.xlane.xlu1 %830  ;;  %v867_v52 = vmul.f32 %v5326_v39, %v9178_v5  ;;  %4860 = vmatpush3.bf16.msra.mxu1 %v9175_v62  ;;  %v9183_v39 = vld [vmem:[#allocation44_spill] sm:$0xff] }
 0x417   : > { %2097 = vrot.lane.b32.xlu0 %v9179_v45, %s5786_s30  ;;  %4861 = vmatprep.subr.bf16.mxu1 %v9180_v29  ;;  %5331 = vrcp.f32 %v831_v51  ;;  %v9184_v5 = vld [vmem:[#allocation12_spill] sm:$0xff] }
 0x418   : > { %v880_v40 = vpack.c.bf16 %v867_v52, %v866_v54  ;;  %v9185_v54 = vld [vmem:[#allocation10_spill] sm:$0xff] }
 0x419   : > { %v5328_v22 = vpop.eup %5327 }
 0x41a   : > { %v833_v33 = vpop.xlane.xlu0 %832  ;;  %2099 = vrot.lane.b32.xlu1 %v9181_v57, %s5786_s30  ;;  %4813 = vmatprep.mubr.bf16.mxu1 %v880_v40  ;;  %v868_v52 = vmul.f32 %v5328_v22, %v6792_v4  ;;  %v9187_v57 = vld [vmem:[#allocation8_spill] sm:$0xff]  ;;  %v9188_v4 = vld [vmem:[#allocation18_spill] sm:$0xff]  ;;  %s4561_s30 = sshll.u32 %s246_s21, 7 }
 0x41b   : > { %5333 = vrcp.f32 %v833_v33  ;;  %4862 = vmatpush3.bf16.msra.mxu1 %v9180_v29  ;;  %2207 = vperm.xlu0 %5163, %v9182_v38   ;;  %v9186_v33 = vld [vmem:[#allocation53_spill] sm:$0xff] }
 0x41c   : > { %4863 = vmatprep.subr.bf16.mxu1 %v9183_v39 }
 0x41d   : > { %v5330_v62 = vpop.eup %5329 }
 0x41e   : > { %v837_v17 = vpop.xlane.xlu0 %836  ;;  %2211 = vperm.xlu1 %5164, %v9184_v5   ;;  %v835_v45 = vpop.xlane.xlu1 %834  ;;  %v869_v51 = vmul.f32 %v5330_v62, %v6799_v14  ;;  %v9189_v14 = vld [vmem:[#allocation48_spill] sm:$0xff] }
 0x41f   : > { %5335 = vrcp.f32 %v837_v17  ;;  %4864 = vmatpush3.bf16.msra.mxu1 %v9183_v39  ;;  %2219 = vperm.xlu0 %5163, %v9185_v54   ;;  %v9193_v54 = vld [vmem:[#allocation14_spill] sm:$0xff] }
 0x420   : > { %5337 = vrcp.f32 %v835_v45  ;;  %4865 = vmatprep.subr.bf16.mxu1 %v9186_v33  ;;  %v881_v29 = vpack.c.bf16 %v869_v51, %v868_v52  ;;  %v9190_v45 = vld [vmem:[#allocation15_spill] sm:$0xff]  ;;  %v9191_v51 = vld [vmem:[#allocation16_spill] sm:$0xff] }
 0x421   : > { %v5332_v5 = vpop.eup %5331 }
 0x422   : > { %v841_v40 = vpop.xlane.xlu0 %840  ;;  %2215 = vperm.xlu1 %5164, %v9187_v57   ;;  %v839_v38 = vpop.xlane.xlu1 %838  ;;  %4814 = vmatmul.mubr.bf16.gmra.mrb[4].mxu1 %v881_v29  ;;  %v870_v17 = vmul.f32 %v5332_v5, %v6807_v58 }
 0x423   : > { %5339 = vrcp.f32 %v841_v40  ;;  %4866 = vmatpush3.bf16.msra.mxu1 %v9186_v33  ;;  %2227 = vperm.xlu0 %5163, %v9188_v4   ;;  %v9192_v33 = vld [vmem:[#allocation37_spill] sm:$0xff] }
 0x424   : > { %5341 = vrcp.f32 %v839_v38  ;;  %4867 = vmatprep.subr.bf16.mxu1 %v9189_v14 }
 0x425   : > { %v5334_v22 = vpop.eup %5333 }
 0x426   : > { %v845_v39 = vpop.xlane.xlu0 %844  ;;  %2223 = vperm.xlu1 %5164, %v9190_v45   ;;  %v843_v62 = vpop.xlane.xlu1 %842  ;;  %v871_v52 = vmul.f32 %v5334_v22, %v6815_v1  ;;  %v9194_v1 = vld [vmem:[#allocation24_spill] sm:$0xff] }
 0x427   : > { %5343 = vrcp.f32 %v845_v39  ;;  %4868 = vmatpush3.bf16.msra.mxu1 %v9189_v14  ;;  %2235 = vperm.xlu0 %5163, %v9191_v51   ;;  %v9195_v14 = vld [vmem:[#allocation52_spill] sm:$0xff] }
 0x428   : > { %5345 = vrcp.f32 %v843_v62  ;;  %4869 = vmatprep.subr.bf16.mxu1 %v9192_v33  ;;  %v882_v38 = vpack.c.bf16 %v871_v52, %v870_v17  ;;  %v9196_v52 = vld [vmem:[#allocation21_spill] sm:$0xff] }
 0x429   : > { %v5336_v29 = vpop.eup %5335 }
 0x42a   : > { %v5338_v40 = vpop.eup %5337  ;;  %v1198_v4 = vpop.xlane.xlu0 %1197  ;;  %2231 = vperm.xlu1 %5164, %v9193_v54   ;;  %4817 = vmatprep.mubr.bf16.mxu1 %v882_v38  ;;  %v873_v58 = vmul.f32 %v5336_v29, %v6825_v42  ;;  %v9197_v42 = vld [vmem:[#allocation22_spill] sm:$0xff] }
 0x42b   : > { %v1196_v45 = vpop.xlane.xlu1 %1195  ;;  %5347 = vrcp.f32 %v1198_v4  ;;  %4870 = vmatpush3.bf16.msra.mxu1 %v9192_v33  ;;  %2243 = vperm.xlu0 %5163, %v9194_v1   ;;  %v872_v5 = vmul.f32 %v5338_v40, %v6827_v15  ;;  %v9198_v40 = vld [vmem:[#allocation20_spill] sm:$0xff] }
 0x42c   : > { %5349 = vrcp.f32 %v1196_v45  ;;  %4871 = vmatprep.subr.bf16.mxu1 %v9195_v14 }
 0x42d   : > { %v5340_v22 = vpop.eup %5339  ;;  %v883_v39 = vpack.c.bf16 %v873_v58, %v872_v5 }
 0x42e   : > { %v5342_v62 = vpop.eup %5341  ;;  %v1202_v17 = vpop.xlane.xlu0 %1201  ;;  %2239 = vperm.xlu1 %5164, %v9196_v52   ;;  %v875_v38 = vmul.f32 %v5340_v22, %v6836_v43  ;;  %v9199_v43 = vld [vmem:[#allocation30_spill] sm:$0xff] }
 0x42f   : > { %v1200_v51 = vpop.xlane.xlu1 %1199  ;;  %5351 = vrcp.f32 %v1202_v17  ;;  %4818 = vmatmul.mubr.bf16.gmra.mrb[8].mxu1 %v883_v39  ;;  %2251 = vperm.xlu0 %5163, %v9197_v42   ;;  %v874_v4 = vmul.f32 %v5342_v62, %v6838_v44  ;;  %v9200_v62 = vld [vmem:[#allocation27_spill] sm:$0xff] }
 0x430   : > { %5353 = vrcp.f32 %v1200_v51  ;;  %4872 = vmatpush3.bf16.msra.mxu1 %v9195_v14 }
 0x431   : > { %v5344_v15 = vpop.eup %5343  ;;  %v884_v45 = vpack.c.bf16 %v875_v38, %v874_v4  ;;  %v9201_v4 = vld [vmem:[#allocation28_spill] sm:$0xff] }
 0x432   : > { %v5346_v33 = vpop.eup %5345  ;;  %v1206_v29 = vpop.xlane.xlu0 %1205  ;;  %2247 = vperm.xlu1 %5164, %v9198_v40   ;;  %v877_v5 = vmul.f32 %v5344_v15, %v6847_v34 }
 0x433   : > { %v1204_v58 = vpop.xlane.xlu1 %1203  ;;  %5355 = vrcp.f32 %v1206_v29  ;;  %4821 = vmatprep.mubr.bf16.mxu1 %v884_v45  ;;  %2259 = vperm.xlu0 %5163, %v9199_v43   ;;  %v876_v22 = vmul.f32 %v5346_v33, %v6849_v24 }
 0x434   : > { %5357 = vrcp.f32 %v1204_v58  ;;  %v9202_v58 = vld [vmem:[#allocation26_spill] sm:$0xff] }
 0x435   : > { %v5348_v44 = vpop.eup %5347  ;;  %v885_v51 = vpack.c.bf16 %v877_v5, %v876_v22 }
 0x436   : > { %v5350_v39 = vpop.eup %5349  ;;  %v1210_v14 = vpop.xlane.xlu0 %1209  ;;  %2255 = vperm.xlu1 %5164, %v9200_v62   ;;  %v1244_v38 = vmul.f32 %v5348_v44, %v6860_v21 }
 0x437   : > { %v1208_v17 = vpop.xlane.xlu1 %1207  ;;  %5359 = vrcp.f32 %v1210_v14  ;;  %4822 = vmatmul.mubr.bf16.gmra.mrb[12].mxu1 %v885_v51  ;;  %2267 = vperm.xlu0 %5163, %v9201_v4   ;;  %v1243_v34 = vmul.f32 %v5350_v39, %v6858_v25 }
 0x438   : > { %5361 = vrcp.f32 %v1208_v17  ;;  %v9203_v17 = vld [vmem:[#allocation45_spill] sm:$0xff] }
 0x439   : > { %v5352_v15 = vpop.eup %5351  ;;  %v1259_v45 = vpack.c.bf16 %v1244_v38, %v1243_v34 }
 0x43a   : > { %v5354_v24 = vpop.eup %5353  ;;  %v1246_v33 = vmul.f32 %v5352_v15, %v6871_v19  ;;  %v1214_v29 = vpop.xlane.xlu0 %1213  ;;  %2263 = vperm.xlu1 %5164, %v9202_v58  }
 0x43b   : > { %v1212_v5 = vpop.xlane.xlu1 %1211  ;;  %v1245_v22 = vmul.f32 %v5354_v24, %v6869_v41  ;;  %5363 = vrcp.f32 %v1214_v29  ;;  %4841 = vmatprep.mubr.bf16.mxu0 %v1259_v45  ;;  %v9204_v24 = vld [vmem:[#allocation51_spill] sm:$0xff] }
 0x43c   : > { %5365 = vrcp.f32 %v1212_v5 }
 0x43d   : > { %v5356_v21 = vpop.eup %5355  ;;  %v1260_v44 = vpack.c.bf16 %v1246_v33, %v1245_v22 }
 0x43e   : > { %v5358_v51 = vpop.eup %5357  ;;  %v1218_v14 = vpop.xlane.xlu0 %1217  ;;  %v1248_v39 = vmul.f32 %v5356_v21, %v6880_v37 }
 0x43f   : > { %v1216_v25 = vpop.xlane.xlu1 %1215  ;;  %5367 = vrcp.f32 %v1218_v14  ;;  %4842 = vmatmul.mubr.bf16.vlgmr.msra.gmra.mrb[16].mxu0 %v1260_v44  ;;  %v1247_v19 = vmul.f32 %v5358_v51, %v9203_v17 }
 0x440   : > { %5369 = vrcp.f32 %v1216_v25 }
 0x441   : > { %v5360_v38 = vpop.eup %5359  ;;  %v1261_v34 = vpack.c.bf16 %v1248_v39, %v1247_v19  ;;  %v9205_v19 = vld [vmem:[#allocation50_spill] sm:$0xff] }
 0x442   : > { %v5362_v15 = vpop.eup %5361  ;;  %v1222_v4 = vpop.xlane.xlu0 %1221  ;;  %v1250_v45 = vmul.f32 %v5360_v38, %v6891_v61 }
 0x443   : > { %v1220_v41 = vpop.xlane.xlu1 %1219  ;;  %5371 = vrcp.f32 %v1222_v4  ;;  %4845 = vmatprep.mubr.bf16.mxu0 %v1261_v34  ;;  %v1249_v33 = vmul.f32 %v5362_v15, %v9204_v24  ;;  %v9206_v24 = vld [vmem:[#allocation35_spill] sm:$0xff] }
 0x444   : > { %5373 = vrcp.f32 %v1220_v41 }
 0x445   : > { %v5364_v29 = vpop.eup %5363  ;;  %v1262_v5 = vpack.c.bf16 %v1250_v45, %v1249_v33 }
 0x446   : > { %v5366_v37 = vpop.eup %5365  ;;  %v1226_v22 = vpop.xlane.xlu0 %1225  ;;  %v1252_v44 = vmul.f32 %v5364_v29, %v6902_v35 }
 0x447   : > { %v1224_v21 = vpop.xlane.xlu1 %1223  ;;  %5375 = vrcp.f32 %v1226_v22  ;;  %4846 = vmatmul.mubr.bf16.gmra.mrb[20].mxu0 %v1262_v5  ;;  %v1251_v51 = vmul.f32 %v5366_v37, %v6904_v8 }
 0x448   : > { %5377 = vrcp.f32 %v1224_v21 }
 0x449   : > { %v5368_v14 = vpop.eup %5367  ;;  %v1263_v25 = vpack.c.bf16 %v1252_v44, %v1251_v51  ;;  %v9207_v44 = vld [vmem:[#allocation41_spill] sm:$0xff] }
 0x44a   : > { %v5370_v61 = vpop.eup %5369  ;;  %v1609_v4 = vpop.xlane.xlu0 %1608  ;;  %v1254_v17 = vmul.f32 %v5368_v14, %v6913_v53 }
 0x44b   : > { %v1611_v39 = vpop.xlane.xlu1 %1610  ;;  %5379 = vrcp.f32 %v1609_v4  ;;  %4849 = vmatprep.mubr.bf16.mxu0 %v1263_v25  ;;  %v1253_v38 = vmul.f32 %v5370_v61, %v9205_v19 }
 0x44c   : > { %5381 = vrcp.f32 %v1611_v39 }
 0x44d   : > { %v5372_v34 = vpop.eup %5371  ;;  %v1264_v15 = vpack.c.bf16 %v1254_v17, %v1253_v38 }
 0x44e   : > { %v5374_v35 = vpop.eup %5373  ;;  %v1613_v41 = vpop.xlane.xlu0 %1612  ;;  %v1256_v8 = vmul.f32 %v5372_v34, %v6924_v26 }
 0x44f   : > { %v1615_v45 = vpop.xlane.xlu1 %1614  ;;  %5383 = vrcp.f32 %v1613_v41  ;;  %4850 = vmatmul.mubr.bf16.gmra.mrb[24].mxu0 %v1264_v15  ;;  %v1255_v33 = vmul.f32 %v5374_v35, %v9206_v24 }
 0x450   : > { %5385 = vrcp.f32 %v1615_v45 }
 0x451   : > { %v5376_v29 = vpop.eup %5375  ;;  %v1265_v5 = vpack.c.bf16 %v1256_v8, %v1255_v33 }
 0x452   : > { %v5378_v53 = vpop.eup %5377  ;;  %v1617_v37 = vpop.xlane.xlu0 %1616  ;;  %v1258_v21 = vmul.f32 %v5376_v29, %v6933_v6  ;;  %v9208_v29 = vld [vmem:[#allocation38_spill] sm:$0xff] }
 0x453   : > { %v1619_v22 = vpop.xlane.xlu1 %1618  ;;  %5387 = vrcp.f32 %v1617_v37  ;;  %4853 = vmatprep.mubr.bf16.mxu0 %v1265_v5  ;;  %v1257_v51 = vmul.f32 %v5378_v53, %v9207_v44  ;;  %v9209_v44 = vld [vmem:[#allocation56_spill] sm:$0xff] }
 0x454   : > { %5389 = vrcp.f32 %v1619_v22 }
 0x455   : > { %v5380_v14 = vpop.eup %5379  ;;  %v1266_v25 = vpack.c.bf16 %v1258_v21, %v1257_v51 }
 0x456   : > { %v5382_v26 = vpop.eup %5381  ;;  %v1621_v61 = vpop.xlane.xlu0 %1620  ;;  %v1656_v39 = vmul.f32 %v5380_v14, %v6946_v32 }
 0x457   : > { %v1623_v4 = vpop.xlane.xlu1 %1622  ;;  %5391 = vrcp.f32 %v1621_v61  ;;  %4854 = vmatmul.mubr.bf16.gmra.mrb[28].mxu0 %v1266_v25  ;;  %v1657_v17 = vmul.f32 %v5382_v26, %v6944_v3 }
 0x458   : > { %5393 = vrcp.f32 %v1623_v4 }
 0x459   : > { %v5384_v19 = vpop.eup %5383  ;;  %v1672_v38 = vpack.c.bf16 %v1657_v17, %v1656_v39 }
 0x45a   : > { %v5386_v6 = vpop.eup %5385  ;;  %v1658_v34 = vmul.f32 %v5384_v19, %v6953_v30  ;;  %v1625_v15 = vpop.xlane.xlu0 %1624 }
 0x45b   : > { %v1627_v35 = vpop.xlane.xlu1 %1626  ;;  %v1659_v41 = vmul.f32 %v5386_v6, %v6955_v27  ;;  %5395 = vrcp.f32 %v1625_v15  ;;  %4873 = vmatprep.mubr.bf16.mxu1 %v1672_v38 }
 0x45c   : > { %5397 = vrcp.f32 %v1627_v35 }
 0x45d   : > { %v5388_v45 = vpop.eup %5387  ;;  %v1673_v8 = vpack.c.bf16 %v1659_v41, %v1658_v34 }
 0x45e   : > { %v5390_v32 = vpop.eup %5389  ;;  %v1629_v24 = vpop.xlane.xlu0 %1628  ;;  %v1660_v3 = vmul.f32 %v5388_v45, %v6962_v46 }
 0x45f   : > { %v1631_v33 = vpop.xlane.xlu1 %1630  ;;  %5399 = vrcp.f32 %v1629_v24  ;;  %4874 = vmatmul.mubr.bf16.vlgmr.msra.gmra.mrb[16].mxu1 %v1673_v8  ;;  %v1661_v5 = vmul.f32 %v5390_v32, %v9208_v29 }
 0x460   : > { %5401 = vrcp.f32 %v1631_v33 }
 0x461   : > { %v5392_v30 = vpop.eup %5391  ;;  %v1674_v53 = vpack.c.bf16 %v1661_v5, %v1660_v3 }
 0x462   : > { %v5394_v37 = vpop.eup %5393  ;;  %v1633_v22 = vpop.xlane.xlu0 %1632  ;;  %v1662_v21 = vmul.f32 %v5392_v30, %v6971_v49 }
 0x463   : > { %v1635_v27 = vpop.xlane.xlu1 %1634  ;;  %5403 = vrcp.f32 %v1633_v22  ;;  %4877 = vmatprep.mubr.bf16.mxu1 %v1674_v53  ;;  %v1663_v51 = vmul.f32 %v5394_v37, %v9209_v44 }
 0x464   : > { %5405 = vrcp.f32 %v1635_v27 }
 0x465   : > { %v5396_v14 = vpop.eup %5395  ;;  %v1675_v25 = vpack.c.bf16 %v1663_v51, %v1662_v21 }
 0x466   : > { %v5398_v46 = vpop.eup %5397  ;;  %v1637_v26 = vpop.xlane.xlu0 %1636  ;;  %v1664_v4 = vmul.f32 %v5396_v14, %v6980_v59 }
 0x467   : > { %v1639_v61 = vpop.xlane.xlu1 %1638  ;;  %5407 = vrcp.f32 %v1637_v26  ;;  %4878 = vmatmul.mubr.bf16.gmra.mrb[20].mxu1 %v1675_v25  ;;  %v1665_v39 = vmul.f32 %v5398_v46, %v6982_v23 }
 0x468   : > { %5409 = vrcp.f32 %v1639_v61 }
 0x469   : > { %v5400_v17 = vpop.eup %5399  ;;  %v1676_v19 = vpack.c.bf16 %v1665_v39, %v1664_v4 }
 0x46a   : > { %v5402_v49 = vpop.eup %5401  ;;  %v2016_v38 = vpop.xlane.xlu0 %2015  ;;  %v1666_v34 = vmul.f32 %v5400_v17, %v6989_v50  ;;  %v9210_v17 = vld [vmem:[#allocation59_spill] sm:$0xff] }
 0x46b   : > { %v2014_v6 = vpop.xlane.xlu1 %2013  ;;  %5411 = vrcp.f32 %v2016_v38  ;;  %4881 = vmatprep.mubr.bf16.mxu1 %v1676_v19  ;;  %v1667_v15 = vmul.f32 %v5402_v49, %v6991_v55  ;;  %v2272_v19 = vsub.s32 4, %v9210_v17 }
 0x46c   : > { %5413 = vrcp.f32 %v2014_v6  ;;  %v9211_v6 = vld [vmem:[#allocation61_spill] sm:$0xff] }
 0x46d   : > { %v5404_v35 = vpop.eup %5403  ;;  %v1677_v41 = vpack.c.bf16 %v1667_v15, %v1666_v34  ;;  %v7174_v34 = vrot.slane %v9211_v6, %v2272_v19 }
 0x46e   : > { %v5406_v59 = vpop.eup %5405  ;;  %v2020_v45 = vpop.xlane.xlu0 %2019  ;;  %v1668_v23 = vmul.f32 %v5404_v35, %v6997_v2 }
 0x46f   : > { %v2018_v8 = vpop.xlane.xlu1 %2017  ;;  %4882 = vmatmul.mubr.bf16.gmra.mrb[24].mxu1 %v1677_v41  ;;  %v1669_v32 = vmul.f32 %v5406_v59, %v6999_v36  ;;  %5415 = vrcp.f32 %v2020_v45 }
 0x470   : > { %5417 = vrcp.f32 %v2018_v8 }
 0x471   : > { %v5408_v24 = vpop.eup %5407  ;;  %v1678_v33 = vpack.c.bf16 %v1669_v32, %v1668_v23 }
 0x472   : > { %v5410_v3 = vpop.eup %5409  ;;  %v2024_v29 = vpop.xlane.xlu0 %2023  ;;  %v1670_v5 = vmul.f32 %v5408_v24, %v7005_v9 }
 0x473   : > { %v2022_v50 = vpop.xlane.xlu1 %2021  ;;  %4885 = vmatprep.mubr.bf16.mxu1 %v1678_v33  ;;  %v1671_v55 = vmul.f32 %v5410_v3, %v7007_v7  ;;  %5419 = vrcp.f32 %v2024_v29 }
 0x474   : > { %5421 = vrcp.f32 %v2022_v50 }
 0x475   : > { %v5412_v30 = vpop.eup %5411  ;;  %v1679_v53 = vpack.c.bf16 %v1671_v55, %v1670_v5  ;;  %v9212_v5 = vld [vmem:[#allocation62_spill] sm:$0xff] }
 0x476   : > { %v5414_v37 = vpop.eup %5413  ;;  %v2028_v22 = vpop.xlane.xlu0 %2027  ;;  %v2062_v2 = vmul.f32 %v5412_v30, %v7015_v56 }
 0x477   : > { %v2026_v27 = vpop.xlane.xlu1 %2025  ;;  %4886 = vmatmul.mubr.bf16.gmra.mrb[28].mxu1 %v1679_v53  ;;  %v2061_v36 = vmul.f32 %v5414_v37, %v7013_v31  ;;  %5423 = vrcp.f32 %v2028_v22 }
 0x478   : > { %5425 = vrcp.f32 %v2026_v27 }
 0x479   : > { %v2077_v21 = vpack.c.bf16 %v2062_v2, %v2061_v36  ;;  %v5416_v33 = vpop.eup %5415 }
 0x47a   : > { %v2032_v44 = vpop.xlane.xlu0 %2031  ;;  %v5418_v3 = vpop.eup %5417 }
 0x47b   : > { %v2030_v51 = vpop.xlane.xlu1 %2029  ;;  %4905 = vmatprep.mubr.bf16.mxu0 %v2077_v21  ;;  %5427 = vrcp.f32 %v2032_v44  ;;  %v2064_v44 = vmul.f32 %v5416_v33, %v7023_v16 }
 0x47c   : > { %5429 = vrcp.f32 %v2030_v51 }
 0x47d   : > { %v5420_v30 = vpop.eup %5419 }
 0x47e   : > { %v2036_v14 = vpop.xlane.xlu0 %2035  ;;  %v5422_v22 = vpop.eup %5421  ;;  %v2066_v16 = vmul.f32 %v5420_v30, %v7029_v0  ;;  %v9216_v0 = vld [vmem:[#allocation65_spill] sm:$0xff] }
 0x47f   : > { %v2034_v25 = vpop.xlane.xlu1 %2033  ;;  %5431 = vrcp.f32 %v2036_v14 }
 0x480   : > { %5433 = vrcp.f32 %v2034_v25 }
 0x482   : > { %v7164_v9 = vpop.xlane.xlu0 %2039 }
 0x483   : > { %v7166_v46 = vpop.xlane.xlu1 %2037  ;;  %5435 = vrcp.f32 %v7164_v9 }
 0x484   : > { %5437 = vrcp.f32 %v7166_v46 }
 0x486   : > { %v7168_v7 = vpop.xlane.xlu0 %2043 }
 0x487   : > { %v7170_v26 = vpop.xlane.xlu1 %2041  ;;  %5439 = vrcp.f32 %v7168_v7 }
 0x488   : > { %5441 = vrcp.f32 %v7170_v26 }
 0x48a   : > { %v2088_v61 = vpop.permute.xlu0 %2087 }
 0x48b   : > { %v2086_v4 = vpop.permute.xlu1 %2085 }
 0x48c   : > { %4889 = vmatprep.subr.bf16.mxu0 %v2086_v4 }
 0x48d   : > { %4890 = vmatpush3.bf16.msra.mxu0 %v2086_v4  ;;  %v9213_v4 = vld [vmem:[#allocation68_spill] sm:$0xff] }
 0x48e   : > { %4891 = vmatprep.subr.bf16.mxu0 %v2088_v61  ;;  %v2094_v56 = vpop.permute.xlu0 %2093 }
 0x48f   : > { %v2090_v31 = vpop.permute.xlu1 %2089 }
 0x491   : > { %4892 = vmatpush3.bf16.msra.mxu0 %v2088_v61 }
 0x492   : > { %4893 = vmatprep.subr.bf16.mxu0 %v2090_v31  ;;  %v2098_v49 = vpop.permute.xlu0 %2097 }
 0x493   : > { %v2092_v39 = vpop.permute.xlu1 %2091 }
 0x495   : > { %4894 = vmatpush3.bf16.msra.mxu0 %v2090_v31  ;;  %v9214_v31 = vld [vmem:[#allocation63_spill] sm:$0xff] }
 0x496   : > { %4895 = vmatprep.subr.bf16.mxu0 %v2092_v39 }
 0x497   : > { %v2096_v38 = vpop.permute.xlu1 %2095 }
 0x499   : > { %4896 = vmatpush3.bf16.msra.mxu0 %v2092_v39  ;;  %v2063_v39 = vmul.f32 %v5418_v3, %v7021_v10 }
 0x49a   : > { %4897 = vmatprep.subr.bf16.mxu0 %v2094_v56  ;;  %v2208_v15 = vpop.permute.xlu0 %2207 }
 0x49b   : > { %v2100_v35 = vpop.permute.xlu1 %2099  ;;  %v2274_v41 = vadd.f32 %v7174_v34, %v2208_v15  ;;  %v2065_v15 = vmul.f32 %v5422_v22, %v7031_v12  ;;  %v9215_v12 = vld [vmem:[#allocation75_spill] sm:$0xff] }
 0x49d   : > { %4898 = vmatpush3.bf16.msra.mxu0 %v2094_v56  ;;  %v2290_v59 = vmul.f32 0.2, %v2274_v41 }
 0x49e   : > { %4899 = vmatprep.subr.bf16.mxu0 %v2096_v38  ;;  %v2220_v23 = vpop.permute.xlu0 %2219 }
 0x49f   : > { %v2212_v45 = vpop.permute.xlu1 %2211  ;;  %v2306_v32 = vmax.f32 %v2274_v41, %v2290_v59  ;;  %v2277_v8 = vadd.f32 %v7174_v34, %v2220_v23  ;;  %v5424_v23 = vpop.eup %5423 }
 0x4a0   : > { %v2275_v24 = vadd.f32 %v7174_v34, %v2212_v45  ;;  %v5426_v10 = vpop.eup %5425 }
 0x4a1   : > { %4900 = vmatpush3.bf16.msra.mxu0 %v2096_v38  ;;  %v2293_v29 = vmul.f32 0.2, %v2277_v8  ;;  %v7180_v55 = vadd.f32 %v9212_v5, %v2306_v32 }
 0x4a2   : > { %v2291_v50 = vmul.f32 0.2, %v2275_v24  ;;  %4901 = vmatprep.subr.bf16.mxu0 %v2098_v49  ;;  %v2228_v53 = vpop.permute.xlu0 %2227 }
 0x4a3   : > { %v2216_v37 = vpop.permute.xlu1 %2215  ;;  %v2309_v27 = vmax.f32 %v2277_v8, %v2293_v29  ;;  %v2279_v36 = vadd.f32 %v7174_v34, %v2228_v53  ;;  %2338 = vmax.xlane.f32.xlu1 %v7180_v55  ;;  %v2078_v29 = vpack.c.bf16 %v2064_v44, %v2063_v39 }
 0x4a4   : > { %v2307_v2 = vmax.f32 %v2275_v24, %v2291_v50  ;;  %v2276_v21 = vadd.f32 %v7174_v34, %v2216_v37  ;;  %v5428_v24 = vpop.eup %5427  ;;  %v2079_v50 = vpack.c.bf16 %v2066_v16, %v2065_v15  ;;  %v2067_v15 = vmul.f32 %v5426_v10, %v7039_v18  ;;  %v9219_v18 = vld [vmem:[#allocation81_spill] sm:$0xff] }
 0x4a5   : > { %4902 = vmatpush3.bf16.msra.mxu0 %v2098_v49  ;;  %v2295_v51 = vmul.f32 0.2, %v2279_v36  ;;  %v7187_v14 = vadd.f32 %v9213_v4, %v2309_v27  ;;  %v5430_v30 = vpop.eup %5429  ;;  %v2068_v27 = vmul.f32 %v5424_v23, %v7037_v20  ;;  %v2070_v20 = vmul.f32 %v5428_v24, %v7043_v63 }
 0x4a6   : > { %v2292_v61 = vmul.f32 0.2, %v2276_v21  ;;  %4903 = vmatprep.subr.bf16.mxu0 %v2100_v35  ;;  %v7190_v56 = vadd.f32 %v9214_v31, %v2307_v2  ;;  %v2236_v19 = vpop.permute.xlu0 %2235  ;;  %v5432_v22 = vpop.eup %5431  ;;  %v2069_v16 = vmul.f32 %v5430_v30, %v7045_v48  ;;  %v9220_v48 = vld [vmem:[#allocation78_spill] sm:$0xff] }
 0x4a7   : > { %v2224_v38 = vpop.permute.xlu1 %2223  ;;  %v2311_v25 = vmax.f32 %v2279_v36, %v2295_v51  ;;  %v2281_v41 = vadd.f32 %v7174_v34, %v2236_v19  ;;  %2344 = vmax.xlane.f32.xlu1 %v7187_v14  ;;  %v9218_v51 = vld [vmem:[#allocation72_spill] sm:$0xff]  ;;  %v5434_v39 = vpop.eup %5433 }
 0x4a8   : > { %v2308_v49 = vmax.f32 %v2276_v21, %v2292_v61  ;;  %v2278_v59 = vadd.f32 %v7174_v34, %v2224_v38  ;;  %2340 = vmax.xlane.f32.xlu0 %v7190_v56  ;;  %v9217_v21 = vld [vmem:[#allocation79_spill] sm:$0xff]  ;;  %v5436_v23 = vpop.eup %5435 }
 0x4a9   : > { %4904 = vmatpush3.bf16.msra.mxu0 %v2100_v35  ;;  %v2297_v9 = vmul.f32 0.2, %v2281_v41  ;;  %v7202_v32 = vadd.f32 %v9215_v12, %v2311_v25 }
 0x4aa   : > { %v2294_v45 = vmul.f32 0.2, %v2278_v59  ;;  %v7205_v8 = vadd.f32 %v9216_v0, %v2308_v49  ;;  %v2244_v33 = vpop.permute.xlu0 %2243 }
 0x4ab   : > { %v2232_v3 = vpop.permute.xlu1 %2231  ;;  %v2313_v53 = vmax.f32 %v2281_v41, %v2297_v9  ;;  %v2283_v37 = vadd.f32 %v7174_v34, %v2244_v33  ;;  %2348 = vmax.xlane.f32.xlu1 %v7202_v32 }
 0x4ac   : > { %v2310_v46 = vmax.f32 %v2278_v59, %v2294_v45  ;;  %v2280_v35 = vadd.f32 %v7174_v34, %v2232_v3  ;;  %4906 = vmatmul.mubr.bf16.vlgmr.msra.gmra.mrb[32].mxu0 %v2078_v29  ;;  %2342 = vmax.xlane.f32.xlu0 %v7205_v8  ;;  %v5438_v45 = vpop.eup %5437  ;;  %v2080_v3 = vpack.c.bf16 %v2068_v27, %v2067_v15 }
 0x4ad   : > { %v2299_v2 = vmul.f32 0.2, %v2283_v37  ;;  %4909 = vmatprep.mubr.bf16.mxu0 %v2079_v50  ;;  %v7213_v44 = vadd.f32 %v9217_v21, %v2313_v53  ;;  %v2081_v29 = vpack.c.bf16 %v2070_v20, %v2069_v16  ;;  %v2071_v15 = vmul.f32 %v5434_v39, %v7051_v13  ;;  %v9224_v13 = vld [vmem:[#allocation67_spill] sm:$0xff] }
 0x4ae   : > { %v2296_v36 = vmul.f32 0.2, %v2280_v35  ;;  %v7216_v61 = vadd.f32 %v9218_v51, %v2310_v46  ;;  %v2252_v19 = vpop.permute.xlu0 %2251  ;;  %v2072_v16 = vmul.f32 %v5432_v22, %v7049_v28  ;;  %v2073_v20 = vmul.f32 %v5438_v45, %v7057_v11  ;;  %v9225_v28 = vld [vmem:[#allocation83_spill] sm:$0xff] }
 0x4af   : > { %v2240_v38 = vpop.permute.xlu1 %2239  ;;  %v2315_v25 = vmax.f32 %v2283_v37, %v2299_v2  ;;  %v2285_v41 = vadd.f32 %v7174_v34, %v2252_v19  ;;  %2352 = vmax.xlane.f32.xlu1 %v7213_v44 }
 0x4b0   : > { %v2312_v49 = vmax.f32 %v2280_v35, %v2296_v36  ;;  %v2282_v59 = vadd.f32 %v7174_v34, %v2240_v38  ;;  %2346 = vmax.xlane.f32.xlu0 %v7216_v61  ;;  %v9221_v35 = vld [vmem:[#allocation64_spill] sm:$0xff]  ;;  %v2082_v45 = vpack.c.bf16 %v2072_v16, %v2071_v15  ;;  %v9229_v16 = vld [vmem:[#allocation58_spill] sm:$0xff] }
 0x4b1   : > { %v2301_v7 = vmul.f32 0.2, %v2285_v41  ;;  %v7228_v10 = vadd.f32 %v9219_v18, %v2315_v25  ;;  %v9222_v36 = vld [vmem:[#allocation80_spill] sm:$0xff]  ;;  %v9223_v25 = vld [vmem:[#allocation57_spill] sm:$0xff] }
 0x4b2   : > { %v2298_v9 = vmul.f32 0.2, %v2282_v59  ;;  %v7231_v63 = vadd.f32 %v9220_v48, %v2312_v49  ;;  %v2260_v24 = vpop.permute.xlu0 %2259  ;;  %v2074_v49 = vmul.f32 %v5436_v23, %v9223_v25  ;;  %v9228_v25 = vld [vmem:[#allocation60_spill] sm:$0xff] }
 0x4b3   : > { %v2248_v33 = vpop.permute.xlu1 %2247  ;;  %v2317_v50 = vmax.f32 %v2285_v41, %v2301_v7  ;;  %v2287_v53 = vadd.f32 %v7174_v34, %v2260_v24  ;;  %2356 = vmax.xlane.f32.xlu1 %v7228_v10  ;;  %v5440_v24 = vpop.eup %5439 }
 0x4b4   : > { %v2314_v30 = vmax.f32 %v2282_v59, %v2298_v9  ;;  %v2284_v26 = vadd.f32 %v7174_v34, %v2248_v33  ;;  %4910 = vmatmul.mubr.bf16.gmra.mrb[36].mxu0 %v2080_v3  ;;  %2350 = vmax.xlane.f32.xlu0 %v7231_v63  ;;  %v5442_v22 = vpop.eup %5441 }
 0x4b5   : > { %v2303_v46 = vmul.f32 0.2, %v2287_v53  ;;  %4913 = vmatprep.mubr.bf16.mxu0 %v2081_v29  ;;  %v7238_v2 = vadd.f32 %v9221_v35, %v2317_v50  ;;  %v2075_v15 = vmul.f32 %v5442_v22, %v9228_v25 }
 0x4b6   : > { %v2300_v37 = vmul.f32 0.2, %v2284_v26  ;;  %v7241_v27 = vadd.f32 %v9222_v36, %v2314_v30  ;;  %v2268_v19 = vpop.permute.xlu0 %2267 }
 0x4b7   : > { %v2256_v38 = vpop.permute.xlu1 %2255  ;;  %v2319_v41 = vmax.f32 %v2287_v53, %v2303_v46  ;;  %v2289_v7 = vadd.f32 %v7174_v34, %v2268_v19  ;;  %2360 = vmax.xlane.f32.xlu1 %v7238_v2  ;;  %v2083_v53 = vpack.c.bf16 %v2074_v49, %v2073_v20  ;;  %v9226_v46 = vld [vmem:[#allocation71_spill] sm:$0xff]  ;;  %v9227_v19 = vld [vmem:[#allocation84_spill] sm:$0xff] }
 0x4b8   : > { %v2316_v59 = vmax.f32 %v2284_v26, %v2300_v37  ;;  %v2286_v9 = vadd.f32 %v7174_v34, %v2256_v38  ;;  %2354 = vmax.xlane.f32.xlu0 %v7241_v27 }
 0x4b9   : > { %v2305_v33 = vmul.f32 0.2, %v2289_v7  ;;  %v7252_v39 = vadd.f32 %v9224_v13, %v2319_v41  ;;  %v2076_v41 = vmul.f32 %v5440_v24, %v9229_v16 }
 0x4ba   : > { %v2302_v3 = vmul.f32 0.2, %v2286_v9  ;;  %v7255_v11 = vadd.f32 %v9225_v28, %v2316_v59 }
 0x4bb   : > { %v2264_v23 = vpop.permute.xlu1 %2263  ;;  %v2321_v29 = vmax.f32 %v2289_v7, %v2305_v33  ;;  %2364 = vmax.xlane.f32.xlu1 %v7252_v39  ;;  %v2084_v49 = vpack.c.bf16 %v2076_v41, %v2075_v15 }
 0x4bc   : > { %v2318_v50 = vmax.f32 %v2286_v9, %v2302_v3  ;;  %v2288_v30 = vadd.f32 %v7174_v34, %v2264_v23  ;;  %4914 = vmatmul.mubr.bf16.gmra.mrb[40].mxu0 %v2082_v45  ;;  %2358 = vmax.xlane.f32.xlu0 %v7255_v11  ;;  %v9230_v34 = vld [vmem:[#allocation85_spill] sm:$0xff] }
 0x4bd   : > { %4917 = vmatprep.mubr.bf16.mxu0 %v2083_v53  ;;  %v7261_v37 = vadd.f32 %v9226_v46, %v2321_v29  ;;  %v5787_v29 = vmov 77  }
 0x4be   : > { %v2304_v26 = vmul.f32 0.2, %v2288_v30  ;;  %v7264_v38 = vadd.f32 %v9227_v19, %v2318_v50  ;;  %5165 = vset.pattern.permute.xlu1 %v5787_v29  ;;  %5166 = vset.pattern.permute.xlu0 %v5787_v29 }
 0x4bf   : > { %2368 = vmax.xlane.f32.xlu1 %v7261_v37 }
 0x4c0   : > { %v2320_v59 = vmax.f32 %v2288_v30, %v2304_v26  ;;  %2362 = vmax.xlane.f32.xlu0 %v7264_v38 }
 0x4c2   : > { %v7271_v20 = vadd.f32 %v9230_v34, %v2320_v59 }
 0x4c4   : > { %4918 = vmatmul.mubr.bf16.gmra.mrb[44].mxu0 %v2084_v49  ;;  %2366 = vmax.xlane.f32.xlu0 %v7271_v20 }
 0x4e4   : > { %v7274_v7 = vpop.f32.mrb[0].mxu1 }
 0x4e5   : > { %9231 = vst [vmem:[#allocation66_spill] sm:$0xff] %v7274_v7  ;;  %v7276_v9 = vpop.f32.mrb[1].mxu1 }
 0x4e6   : > { %9232 = vst [vmem:[#allocation70_spill] sm:$0xff] %v7276_v9  ;;  %v7278_v33 = vpop.f32.mrb[2].mxu1 }
 0x4e7   : > { %9233 = vst [vmem:[#allocation74_spill] sm:$0xff] %v7278_v33  ;;  %v7280_v3 = vpop.f32.mrb[3].mxu1 }
 0x4e8   : > { %9234 = vst [vmem:[#allocation77_spill] sm:$0xff] %v7280_v3 }
 0x4f5   : > { %v7282_v24 = vpop.f32.mrb[4].mxu1 }
 0x4f6   : > { %9235 = vst [vmem:[#allocation69_spill] sm:$0xff] %v7282_v24  ;;  %v7284_v22 = vpop.f32.mrb[5].mxu1 }
 0x4f7   : > { %9236 = vst [vmem:[#allocation73_spill] sm:$0xff] %v7284_v22  ;;  %v7286_v23 = vpop.f32.mrb[6].mxu1 }
 0x4f8   : > { %9237 = vst [vmem:[#allocation76_spill] sm:$0xff] %v7286_v23  ;;  %v7288_v45 = vpop.f32.mrb[7].mxu1 }
 0x4f9   : > { %9238 = vst [vmem:[#allocation82_spill] sm:$0xff] %v7288_v45 }
 0x502   : > { %v7290_v50 = vpop.f32.mrb[8].mxu1 }
 0x503   : > { %9239 = vst [vmem:[#allocation86_spill] sm:$0xff] %v7290_v50  ;;  %v7292_v30 = vpop.f32.mrb[9].mxu1 }
 0x504   : > { %9240 = vst [vmem:[#allocation33_spill] sm:$0xff] %v7292_v30  ;;  %v7294_v53 = vpop.f32.mrb[10].mxu1 }
 0x505   : > { %9241 = vst [vmem:[#allocation87_spill] sm:$0xff] %v7294_v53  ;;  %v7296_v26 = vpop.f32.mrb[11].mxu1 }
 0x506   : > { %9242 = vst [vmem:[#allocation90_spill] sm:$0xff] %v7296_v26 }
 0x50a   : > { %v7298_v25 = vpop.f32.mrb[12].mxu1 }
 0x50b   : > { %9243 = vst [vmem:[#allocation88_spill] sm:$0xff] %v7298_v25  ;;  %v7300_v15 = vpop.f32.mrb[13].mxu1 }
 0x50c   : > { %9244 = vst [vmem:[#allocation89_spill] sm:$0xff] %v7300_v15  ;;  %v7302_v16 = vpop.f32.mrb[14].mxu1 }
 0x50d   : > { %9245 = vst [vmem:[#allocation55_spill] sm:$0xff] %v7302_v16  ;;  %v7304_v41 = vpop.f32.mrb[15].mxu1 }
 0x50e   : > { %9246 = vst [vmem:[#allocation32_spill] sm:$0xff] %v7304_v41 }
 0x512   : > { %v7306_v59 = vpop.f32.mrb[16].mxu0 }
 0x513   : > { %9247 = vst [vmem:[#allocation54_spill] sm:$0xff] %v7306_v59  ;;  %v7308_v49 = vpop.f32.mrb[17].mxu0 }
 0x514   : > { %9248 = vst [vmem:[#allocation43_spill] sm:$0xff] %v7308_v49  ;;  %v7310_v29 = vpop.f32.mrb[18].mxu0 }
 0x515   : > { %9249 = vst [vmem:[#allocation34_spill] sm:$0xff] %v7310_v29  ;;  %v7312_v50 = vpop.f32.mrb[19].mxu0 }
 0x516   : > { %9250 = vst [vmem:[#allocation42_spill] sm:$0xff] %v7312_v50 }
 0x51a   : > { %v7314_v30 = vpop.f32.mrb[20].mxu0 }
 0x51b   : > { %9251 = vst [vmem:[#allocation39_spill] sm:$0xff] %v7314_v30  ;;  %v7316_v24 = vpop.f32.mrb[21].mxu0 }
 0x51c   : > { %9252 = vst [vmem:[#allocation19_spill] sm:$0xff] %v7316_v24  ;;  %v7318_v22 = vpop.f32.mrb[22].mxu0 }
 0x51d   : > { %9253 = vst [vmem:[#allocation11_spill] sm:$0xff] %v7318_v22  ;;  %v7320_v53 = vpop.f32.mrb[23].mxu0 }
 0x51e   : > { %9254 = vst [vmem:[#allocation36_spill] sm:$0xff] %v7320_v53 }
 0x522   : > { %v7322_v15 = vpop.f32.mrb[24].mxu0 }
 0x523   : > { %9255 = vst [vmem:[#allocation40_spill] sm:$0xff] %v7322_v15  ;;  %v7324_v7 = vpop.f32.mrb[25].mxu0 }
 0x524   : > { %9256 = vst [vmem:[#allocation47_spill] sm:$0xff] %v7324_v7  ;;  %v7326_v41 = vpop.f32.mrb[26].mxu0 }
 0x525   : > { %9257 = vst [vmem:[#allocation46_spill] sm:$0xff] %v7326_v41  ;;  %v7328_v26 = vpop.f32.mrb[27].mxu0 }
 0x526   : > { %9258 = vst [vmem:[#allocation49_spill] sm:$0xff] %v7328_v26 }
 0x52a   : > { %v7330_v9 = vpop.f32.mrb[28].mxu0 }
 0x52b   : > { %9259 = vst [vmem:[#allocation44_spill] sm:$0xff] %v7330_v9  ;;  %v7332_v25 = vpop.f32.mrb[29].mxu0 }
 0x52c   : > { %9260 = vst [vmem:[#allocation53_spill] sm:$0xff] %v7332_v25  ;;  %v7334_v23 = vpop.f32.mrb[30].mxu0 }
 0x52d   : > { %9261 = vst [vmem:[#allocation48_spill] sm:$0xff] %v7334_v23  ;;  %v7336_v45 = vpop.f32.mrb[31].mxu0 }
 0x52e   : > { %9262 = vst [vmem:[#allocation37_spill] sm:$0xff] %v7336_v45 }
 0x530   : > { %v2339_v33 = vpop.xlane.xlu1 %2338 }
 0x531   : > { %v2370_v3 = vsub.f32 %v7180_v55, %v2339_v33 }
 0x532   : > { %v7339_v16 = vpop.f32.mrb[16].mxu1 }
 0x533   : > { %9263 = vst [vmem:[#allocation52_spill] sm:$0xff] %v7339_v16  ;;  %v2386_v15 = vmul.f32 1.442695, %v2370_v3  ;;  %v7341_v30 = vpop.f32.mrb[17].mxu1 }
 0x534   : > { %9264 = vst [vmem:[#allocation45_spill] sm:$0xff] %v7341_v30  ;;  %v7343_v7 = vpop.f32.mrb[18].mxu1  ;;  %v2345_v24 = vpop.xlane.xlu1 %2344 }
 0x535   : > { %9265 = vst [vmem:[#allocation51_spill] sm:$0xff] %v7343_v7  ;;  %5443 = vpow2.f32 %v2386_v15  ;;  %v2341_v41 = vpop.xlane.xlu0 %2340  ;;  %v2373_v9 = vsub.f32 %v7187_v14, %v2345_v24  ;;  %v7346_v25 = vpop.f32.mrb[19].mxu1 }
 0x536   : > { %9266 = vst [vmem:[#allocation50_spill] sm:$0xff] %v7346_v25  ;;  %v2371_v23 = vsub.f32 %v7190_v56, %v2341_v41 }
 0x537   : > { %v2392_v22 = vmul.f32 1.442695, %v2373_v9 }
 0x538   : > { %v2388_v45 = vmul.f32 1.442695, %v2371_v23  ;;  %v2349_v26 = vpop.xlane.xlu1 %2348 }
 0x539   : > { %v2343_v55 = vpop.xlane.xlu0 %2342  ;;  %v2375_v33 = vsub.f32 %v7202_v32, %v2349_v26 }
 0x53a   : > { %5445 = vpow2.f32 %v2388_v45  ;;  %v2372_v3 = vsub.f32 %v7205_v8, %v2343_v55  ;;  %v7351_v16 = vpop.f32.mrb[20].mxu1 }
 0x53b   : > { %9267 = vst [vmem:[#allocation35_spill] sm:$0xff] %v7351_v16  ;;  %v7353_v30 = vpop.f32.mrb[21].mxu1  ;;  %5447 = vpow2.f32 %v2392_v22  ;;  %v2396_v24 = vmul.f32 1.442695, %v2375_v33 }
 0x53c   : > { %9268 = vst [vmem:[#allocation41_spill] sm:$0xff] %v7353_v30  ;;  %v2390_v15 = vmul.f32 1.442695, %v2372_v3  ;;  %v7355_v7 = vpop.f32.mrb[22].mxu1  ;;  %v2353_v14 = vpop.xlane.xlu1 %2352 }
 0x53d   : > { %9269 = vst [vmem:[#allocation38_spill] sm:$0xff] %v7355_v7  ;;  %v2347_v56 = vpop.xlane.xlu0 %2346  ;;  %v2377_v23 = vsub.f32 %v7213_v44, %v2353_v14  ;;  %v7358_v9 = vpop.f32.mrb[23].mxu1 }
 0x53e   : > { %9270 = vst [vmem:[#allocation56_spill] sm:$0xff] %v7358_v9  ;;  %5449 = vpow2.f32 %v2390_v15  ;;  %v2374_v32 = vsub.f32 %v7216_v61, %v2347_v56  ;;  %v9291_v9 = vld [vmem:[#allocation12_spill] sm:$0xff] }
 0x53f   : > { %v7361_v45 = vpop.eup %5443  ;;  %5451 = vpow2.f32 %v2396_v24  ;;  %v2400_v41 = vmul.f32 1.442695, %v2377_v23 }
 0x540   : > { %v2394_v8 = vmul.f32 1.442695, %v2374_v32  ;;  %2418 = vadd.xlane.f32.xlu0 %v7361_v45  ;;  %v2357_v26 = vpop.xlane.xlu1 %2356 }
 0x541   : > { %v2351_v55 = vpop.xlane.xlu0 %2350  ;;  %v2379_v22 = vsub.f32 %v7228_v10, %v2357_v26 }
 0x542   : > { %5453 = vpow2.f32 %v2394_v8  ;;  %v2376_v33 = vsub.f32 %v7231_v63, %v2351_v55  ;;  %v7366_v44 = vpop.f32.mrb[24].mxu1 }
 0x543   : > { %9271 = vst [vmem:[#allocation68_spill] sm:$0xff] %v7366_v44  ;;  %v7368_v3 = vpop.f32.mrb[25].mxu1  ;;  %5455 = vpow2.f32 %v2400_v41  ;;  %v2404_v32 = vmul.f32 1.442695, %v2379_v22 }
 0x544   : > { %9272 = vst [vmem:[#allocation63_spill] sm:$0xff] %v7368_v3  ;;  %v7370_v15 = vpop.eup %5445  ;;  %v2398_v61 = vmul.f32 1.442695, %v2376_v33  ;;  %v7372_v14 = vpop.f32.mrb[26].mxu1 }
 0x545   : > { %9273 = vst [vmem:[#allocation75_spill] sm:$0xff] %v7372_v14  ;;  %v2361_v56 = vpop.xlane.xlu1 %2360  ;;  %2420 = vadd.xlane.f32.xlu1 %v7370_v15  ;;  %v2355_v24 = vpop.xlane.xlu0 %2354  ;;  %v9288_v14 = vld [vmem:[#allocation9_spill] sm:$0xff] }
 0x546   : > { %v2381_v10 = vsub.f32 %v7238_v2, %v2361_v56  ;;  %v7376_v23 = vpop.f32.mrb[27].mxu1  ;;  %5457 = vpow2.f32 %v2398_v61  ;;  %v2378_v63 = vsub.f32 %v7241_v27, %v2355_v24  ;;  %v7379_v8 = vpop.eup %5447 }
 0x547   : > { %9274 = vst [vmem:[#allocation65_spill] sm:$0xff] %v7376_v23  ;;  %5459 = vpow2.f32 %v2404_v32  ;;  %v9289_v23 = vld [vmem:[#allocation29_spill] sm:$0xff] }
 0x548   : > { %v7381_v26 = vpop.eup %5449  ;;  %v2402_v55 = vmul.f32 1.442695, %v2378_v63  ;;  %v2408_v44 = vmul.f32 1.442695, %v2381_v10 }
 0x549   : > { %v2365_v33 = vpop.xlane.xlu1 %2364  ;;  %v2359_v41 = vpop.xlane.xlu0 %2358  ;;  %2422 = vadd.xlane.f32.xlu0 %v7381_v26  ;;  %2424 = vadd.xlane.f32.xlu1 %v7379_v8 }
 0x54a   : > { %v2383_v2 = vsub.f32 %v7252_v39, %v2365_v33  ;;  %5461 = vpow2.f32 %v2402_v55  ;;  %v2380_v22 = vsub.f32 %v7255_v11, %v2359_v41  ;;  %v7387_v61 = vpop.f32.mrb[28].mxu1  ;;  %v7389_v27 = vpop.eup %5451 }
 0x54b   : > { %9275 = vst [vmem:[#allocation79_spill] sm:$0xff] %v7387_v61  ;;  %v7391_v56 = vpop.f32.mrb[29].mxu1  ;;  %5463 = vpow2.f32 %v2408_v44 }
 0x54c   : > { %9276 = vst [vmem:[#allocation72_spill] sm:$0xff] %v7391_v56  ;;  %v7393_v24 = vpop.eup %5453  ;;  %v2406_v32 = vmul.f32 1.442695, %v2380_v22  ;;  %v7395_v10 = vpop.f32.mrb[30].mxu1  ;;  %v2412_v3 = vmul.f32 1.442695, %v2383_v2 }
 0x54d   : > { %9277 = vst [vmem:[#allocation81_spill] sm:$0xff] %v7395_v10  ;;  %v2369_v63 = vpop.xlane.xlu1 %2368  ;;  %v2363_v16 = vpop.xlane.xlu0 %2362  ;;  %2426 = vadd.xlane.f32.xlu0 %v7393_v24  ;;  %2428 = vadd.xlane.f32.xlu1 %v7389_v27  ;;  %v9284_v56 = vld [vmem:[#allocation23_spill] sm:$0xff] }
 0x54e   : > { %v2385_v39 = vsub.f32 %v7261_v37, %v2369_v63  ;;  %v7400_v11 = vpop.f32.mrb[31].mxu1  ;;  %5465 = vpow2.f32 %v2406_v32  ;;  %v2382_v55 = vsub.f32 %v7264_v38, %v2363_v16  ;;  %v7403_v33 = vpop.eup %5455 }
 0x54f   : > { %9278 = vst [vmem:[#allocation78_spill] sm:$0xff] %v7400_v11  ;;  %5467 = vpow2.f32 %v2412_v3 }
 0x550   : > { %v7405_v41 = vpop.eup %5457  ;;  %v2410_v22 = vmul.f32 1.442695, %v2382_v55  ;;  %v2416_v44 = vmul.f32 1.442695, %v2385_v39 }
 0x551   : > { %v2367_v2 = vpop.xlane.xlu0 %2366  ;;  %2430 = vadd.xlane.f32.xlu0 %v7405_v41  ;;  %2432 = vadd.xlane.f32.xlu1 %v7403_v33  ;;  %v7410_v63 = vpop.eup %5459 }
 0x552   : > { %5469 = vpow2.f32 %v2410_v22  ;;  %v2384_v37 = vsub.f32 %v7271_v20, %v2367_v2  ;;  %v9280_v2 = vld [vmem:[#allocation25_spill] sm:$0xff] }
 0x553   : > { %5471 = vpow2.f32 %v2416_v44  ;;  %v9279_v44 = vld [vmem:[#allocation13_spill] sm:$0xff] }
 0x554   : > { %v7412_v32 = vpop.eup %5461  ;;  %v2414_v38 = vmul.f32 1.442695, %v2384_v37  ;;  %v9281_v37 = vld [vmem:[#allocation17_spill] sm:$0xff] }
 0x555   : > { %2434 = vadd.xlane.f32.xlu0 %v7412_v32  ;;  %2436 = vadd.xlane.f32.xlu1 %v7410_v63  ;;  %v7416_v16 = vpop.eup %5463 }
 0x556   : > { %5473 = vpow2.f32 %v2414_v38  ;;  %v9282_v38 = vld [vmem:[#allocation31_spill] sm:$0xff] }
 0x558   : > { %v7418_v3 = vpop.eup %5465 }
 0x559   : > { %2438 = vadd.xlane.f32.xlu0 %v7418_v3  ;;  %2440 = vadd.xlane.f32.xlu1 %v7416_v16  ;;  %v7422_v20 = vpop.eup %5467 }
 0x55c   : > { %v7424_v39 = vpop.eup %5469 }
 0x55d   : > { %2442 = vadd.xlane.f32.xlu0 %v7424_v39  ;;  %2444 = vadd.xlane.f32.xlu1 %v7422_v20  ;;  %v7428_v55 = vpop.eup %5471 }
 0x560   : > { %v7430_v22 = vpop.eup %5473 }
 0x561   : > { %2446 = vadd.xlane.f32.xlu0 %v7430_v22  ;;  %2448 = vadd.xlane.f32.xlu1 %v7428_v55 }
 0x572   : > { %2492 = vrot.lane.b32.xlu1 %v9171_v47, %s5788_s9 }
 0x576   : > { %2494 = vrot.lane.b32.xlu1 %v9170_v60, %s5788_s9 }
 0x577   : > { %2490 = vrot.lane.b32.xlu0 %v9279_v44, %s5788_s9 }
 0x57a   : > { %2498 = vrot.lane.b32.xlu1 %v9280_v2, %s5788_s9 }
 0x57b   : > { %2496 = vrot.lane.b32.xlu0 %v9281_v37, %s5788_s9 }
 0x57e   : > { %2502 = vrot.lane.b32.xlu1 %v9282_v38, %s5788_s9 }
 0x57f   : > { %v7440_v61 = vpop.f32.mrb[32].mxu0  ;;  %2500 = vrot.lane.b32.xlu0 %v9284_v56, %s5788_s9 }
 0x580   : > { %9283 = vst [vmem:[#allocation64_spill] sm:$0xff] %v7440_v61  ;;  %v7443_v30 = vpop.f32.mrb[33].mxu0 }
 0x581   : > { %9285 = vst [vmem:[#allocation80_spill] sm:$0xff] %v7443_v30  ;;  %v7445_v10 = vpop.f32.mrb[34].mxu0  ;;  %v9295_v30 = vld [vmem:[#allocation10_spill] sm:$0xff] }
 0x582   : > { %9286 = vst [vmem:[#allocation57_spill] sm:$0xff] %v7445_v10  ;;  %v7447_v11 = vpop.f32.mrb[35].mxu0  ;;  %2612 = vperm.xlu1 %5165, %v9288_v14   ;;  %v9296_v10 = vld [vmem:[#allocation15_spill] sm:$0xff] }
 0x583   : > { %9287 = vst [vmem:[#allocation67_spill] sm:$0xff] %v7447_v11  ;;  %2504 = vrot.lane.b32.xlu0 %v9289_v23, %s5788_s9  ;;  %v9297_v11 = vld [vmem:[#allocation18_spill] sm:$0xff]  ;;  %s8699_s9 = scalar_lea.vmem [#allocation4], %s4561_s30 }
 0x586   : > { %2620 = vperm.xlu1 %5165, %v9187_v57  }
 0x587   : > { %v7452_v7 = vpop.f32.mrb[36].mxu0  ;;  %2616 = vperm.xlu0 %5166, %v9291_v9  }
 0x588   : > { %9290 = vst [vmem:[#allocation83_spill] sm:$0xff] %v7452_v7  ;;  %v7455_v25 = vpop.f32.mrb[37].mxu0 }
 0x589   : > { %9292 = vst [vmem:[#allocation71_spill] sm:$0xff] %v7455_v25  ;;  %v7457_v61 = vpop.f32.mrb[38].mxu0  ;;  %v9302_v25 = vld [vmem:[#allocation16_spill] sm:$0xff] }
 0x58a   : > { %9293 = vst [vmem:[#allocation84_spill] sm:$0xff] %v7457_v61  ;;  %v7459_v53 = vpop.f32.mrb[39].mxu0  ;;  %2624 = vperm.xlu1 %5165, %v9295_v30  }
 0x58b   : > { %9294 = vst [vmem:[#allocation60_spill] sm:$0xff] %v7459_v53  ;;  %2628 = vperm.xlu0 %5166, %v9296_v10  }
 0x58e   : > { %2632 = vperm.xlu1 %5165, %v9297_v11  }
 0x58f   : > { %v7464_v29 = vpop.f32.mrb[40].mxu0  ;;  %2636 = vperm.xlu0 %5166, %v9193_v54  }
 0x590   : > { %9298 = vst [vmem:[#allocation58_spill] sm:$0xff] %v7464_v29  ;;  %v7467_v59 = vpop.f32.mrb[41].mxu0 }
 0x591   : > { %9299 = vst [vmem:[#allocation85_spill] sm:$0xff] %v7467_v59  ;;  %v7469_v7 = vpop.f32.mrb[42].mxu0  ;;  %v9307_v59 = vld [vmem:[#allocation28_spill] sm:$0xff] }
 0x592   : > { %9300 = vst [vmem:[#allocation13_spill] sm:$0xff] %v7469_v7  ;;  %v7471_v50 = vpop.f32.mrb[43].mxu0  ;;  %2640 = vperm.xlu1 %5165, %v9302_v25  }
 0x593   : > { %9301 = vst [vmem:[#allocation17_spill] sm:$0xff] %v7471_v50  ;;  %2644 = vperm.xlu0 %5166, %v9196_v52  }
 0x596   : > { %2648 = vperm.xlu1 %5165, %v9194_v1  }
 0x597   : > { %v7476_v61 = vpop.f32.mrb[44].mxu0  ;;  %2652 = vperm.xlu0 %5166, %v9198_v40  }
 0x598   : > { %9303 = vst [vmem:[#allocation91_spill] sm:$0xff] %v7476_v61  ;;  %v7479_v53 = vpop.f32.mrb[45].mxu0 }
 0x599   : > { %9304 = vst [vmem:[#allocation92_spill] sm:$0xff] %v7479_v53  ;;  %v7481_v29 = vpop.f32.mrb[46].mxu0 }
 0x59a   : > { %9305 = vst [vmem:[#allocation93_spill] sm:$0xff] %v7481_v29  ;;  %v7483_v49 = vpop.f32.mrb[47].mxu0  ;;  %2656 = vperm.xlu1 %5165, %v9197_v42  }
 0x59b   : > { %9306 = vst [vmem:[#allocation94_spill] sm:$0xff] %v7483_v49  ;;  %2660 = vperm.xlu0 %5166, %v9200_v62  }
 0x59e   : > { %2664 = vperm.xlu1 %5165, %v9199_v43  }
 0x59f   : > { %2668 = vperm.xlu0 %5166, %v9202_v58  }
 0x5a2   : > { %2672 = vperm.xlu1 %5165, %v9307_v59  }
 0x5cd   : > { %v2419_v7 = vpop.xlane.xlu0 %2418 }
 0x5ce   : > { %5475 = vrcp.f32 %v2419_v7 }
 0x5d2   : > { %v2421_v61 = vpop.xlane.xlu1 %2420 }
 0x5d3   : > { %5477 = vrcp.f32 %v2421_v61 }
 0x5d6   : > { %v2423_v50 = vpop.xlane.xlu0 %2422  ;;  %v2425_v53 = vpop.xlane.xlu1 %2424 }
 0x5d7   : > { %5479 = vrcp.f32 %v2423_v50 }
 0x5d8   : > { %v5476_v1 = vpop.eup %5475  ;;  %5481 = vrcp.f32 %v2425_v53 }
 0x5d9   : > { %v2466_v62 = vmul.f32 %v5476_v1, %v7361_v45 }
 0x5da   : > { %v2427_v40 = vpop.xlane.xlu0 %2426  ;;  %v2429_v29 = vpop.xlane.xlu1 %2428 }
 0x5db   : > { %5483 = vrcp.f32 %v2427_v40 }
 0x5dc   : > { %5485 = vrcp.f32 %v2429_v29 }
 0x5dd   : > { %v5478_v49 = vpop.eup %5477 }
 0x5de   : > { %v2431_v54 = vpop.xlane.xlu0 %2430  ;;  %v2433_v11 = vpop.xlane.xlu1 %2432  ;;  %v2467_v43 = vmul.f32 %v5478_v49, %v7370_v15  ;;  %v2677_v49 = vsub.s32 5, %v9210_v17 }
 0x5df   : > { %5487 = vrcp.f32 %v2431_v54 }
 0x5e0   : > { %v2482_v42 = vpack.c.bf16 %v2467_v43, %v2466_v62  ;;  %v7502_v15 = vrot.slane %v9211_v6, %v2677_v49  ;;  %5489 = vrcp.f32 %v2433_v11 }
 0x5e2   : > { %v2435_v58 = vpop.xlane.xlu0 %2434  ;;  %v2437_v52 = vpop.xlane.xlu1 %2436  ;;  %4937 = vmatprep.mubr.bf16.mxu1 %v2482_v42 }
 0x5e3   : > { %5491 = vrcp.f32 %v2435_v58 }
 0x5e4   : > { %5493 = vrcp.f32 %v2437_v52 }
 0x5e6   : > { %v2439_v59 = vpop.xlane.xlu0 %2438  ;;  %v2441_v7 = vpop.xlane.xlu1 %2440 }
 0x5e7   : > { %5495 = vrcp.f32 %v2439_v59 }
 0x5e8   : > { %5497 = vrcp.f32 %v2441_v7 }
 0x5ea   : > { %v7492_v25 = vpop.xlane.xlu0 %2442  ;;  %v7494_v61 = vpop.xlane.xlu1 %2444 }
 0x5eb   : > { %5499 = vrcp.f32 %v7492_v25 }
 0x5ec   : > { %5501 = vrcp.f32 %v7494_v61 }
 0x5ee   : > { %v7496_v10 = vpop.xlane.xlu0 %2446  ;;  %v7498_v30 = vpop.xlane.xlu1 %2448 }
 0x5ef   : > { %5503 = vrcp.f32 %v7496_v10 }
 0x5f0   : > { %5505 = vrcp.f32 %v7498_v30 }
 0x5f2   : > { %v2491_v57 = vpop.permute.xlu0 %2490  ;;  %v2493_v14 = vpop.permute.xlu1 %2492 }
 0x5f3   : > { %4921 = vmatprep.subr.bf16.mxu1 %v2491_v57 }
 0x5f4   : > { %4922 = vmatpush3.bf16.msra.mxu1 %v2491_v57 }
 0x5f5   : > { %4923 = vmatprep.subr.bf16.mxu1 %v2493_v14 }
 0x5f6   : > { %v2497_v1 = vpop.permute.xlu0 %2496  ;;  %v2495_v43 = vpop.permute.xlu1 %2494 }
 0x5f8   : > { %4924 = vmatpush3.bf16.msra.mxu1 %v2493_v14 }
 0x5f9   : > { %4925 = vmatprep.subr.bf16.mxu1 %v2495_v43 }
 0x5fa   : > { %v2499_v42 = vpop.permute.xlu1 %2498  ;;  %v2501_v62 = vpop.permute.xlu0 %2500 }
 0x5fc   : > { %4926 = vmatpush3.bf16.msra.mxu1 %v2495_v43 }
 0x5fd   : > { %4927 = vmatprep.subr.bf16.mxu1 %v2497_v1 }
 0x5fe   : > { %v2503_v45 = vpop.permute.xlu1 %2502  ;;  %v2505_v57 = vpop.permute.xlu0 %2504 }
 0x600   : > { %4928 = vmatpush3.bf16.msra.mxu1 %v2497_v1  ;;  %v5480_v1 = vpop.eup %5479 }
 0x601   : > { %4929 = vmatprep.subr.bf16.mxu1 %v2499_v42  ;;  %v5482_v29 = vpop.eup %5481  ;;  %v2468_v52 = vmul.f32 %v5480_v1, %v7381_v26 }
 0x602   : > { %v2613_v9 = vpop.permute.xlu1 %2612  ;;  %v5484_v54 = vpop.eup %5483 }
 0x603   : > { %v2679_v14 = vadd.f32 %v7502_v15, %v2613_v9 }
 0x604   : > { %4930 = vmatpush3.bf16.msra.mxu1 %v2499_v42 }
 0x605   : > { %v2695_v38 = vmul.f32 0.2, %v2679_v14  ;;  %4931 = vmatprep.subr.bf16.mxu1 %v2501_v62 }
 0x606   : > { %v2617_v43 = vpop.permute.xlu0 %2616  ;;  %v2621_v17 = vpop.permute.xlu1 %2620 }
 0x607   : > { %v2711_v50 = vmax.f32 %v2679_v14, %v2695_v38  ;;  %v2680_v40 = vadd.f32 %v7502_v15, %v2617_v43  ;;  %v2681_v53 = vadd.f32 %v7502_v15, %v2621_v17  ;;  %v5486_v38 = vpop.eup %5485 }
 0x608   : > { %4932 = vmatpush3.bf16.msra.mxu1 %v2501_v62  ;;  %v2471_v26 = vmul.f32 %v5486_v38, %v7389_v27 }
 0x609   : > { %v2696_v49 = vmul.f32 0.2, %v2680_v40  ;;  %v2697_v6 = vmul.f32 0.2, %v2681_v53  ;;  %4933 = vmatprep.subr.bf16.mxu1 %v2503_v45  ;;  %v7508_v9 = vadd.f32 %v9212_v5, %v2711_v50 }
 0x60a   : > { %v2629_v42 = vpop.permute.xlu0 %2628  ;;  %v2625_v11 = vpop.permute.xlu1 %2624 }
 0x60b   : > { %v2712_v14 = vmax.f32 %v2680_v40, %v2696_v49  ;;  %v2713_v43 = vmax.f32 %v2681_v53, %v2697_v6  ;;  %v2683_v17 = vadd.f32 %v7502_v15, %v2629_v42  ;;  %v2682_v58 = vadd.f32 %v7502_v15, %v2625_v11  ;;  %2743 = vmax.xlane.f32.xlu0 %v7508_v9  ;;  %v5488_v11 = vpop.eup %5487 }
 0x60c   : > { %4934 = vmatpush3.bf16.msra.mxu1 %v2503_v45  ;;  %v2469_v6 = vmul.f32 %v5482_v29, %v7379_v8  ;;  %v2470_v49 = vmul.f32 %v5484_v54, %v7393_v24  ;;  %v5490_v25 = vpop.eup %5489 }
 0x60d   : > { %v2699_v62 = vmul.f32 0.2, %v2683_v17  ;;  %v2698_v50 = vmul.f32 0.2, %v2682_v58  ;;  %4935 = vmatprep.subr.bf16.mxu1 %v2505_v57  ;;  %v7515_v59 = vadd.f32 %v9214_v31, %v2712_v14  ;;  %v7518_v5 = vadd.f32 %v9216_v0, %v2713_v43  ;;  %v5492_v54 = vpop.eup %5491 }
 0x60e   : > { %v2637_v40 = vpop.permute.xlu0 %2636  ;;  %v2633_v53 = vpop.permute.xlu1 %2632  ;;  %v2483_v43 = vpack.c.bf16 %v2469_v6, %v2468_v52 }
 0x60f   : > { %v2715_v7 = vmax.f32 %v2683_v17, %v2699_v62  ;;  %v2714_v45 = vmax.f32 %v2682_v58, %v2698_v50  ;;  %v2685_v1 = vadd.f32 %v7502_v15, %v2637_v40  ;;  %v2684_v42 = vadd.f32 %v7502_v15, %v2633_v53  ;;  %2745 = vmax.xlane.f32.xlu1 %v7515_v59  ;;  %v5494_v58 = vpop.eup %5493 }
 0x610   : > { %2747 = vmax.xlane.f32.xlu0 %v7518_v5  ;;  %4936 = vmatpush3.bf16.msra.mxu1 %v2505_v57  ;;  %v2484_v17 = vpack.c.bf16 %v2471_v26, %v2470_v49  ;;  %v5496_v40 = vpop.eup %5495  ;;  %v2472_v53 = vmul.f32 %v5488_v11, %v7405_v41  ;;  %v2475_v41 = vmul.f32 %v5494_v58, %v7410_v63 }
 0x611   : > { %v2701_v8 = vmul.f32 0.2, %v2685_v1  ;;  %v2700_v29 = vmul.f32 0.2, %v2684_v42  ;;  %v7530_v24 = vadd.f32 %v9218_v51, %v2715_v7  ;;  %v7533_v27 = vadd.f32 %v9213_v4, %v2714_v45  ;;  %v5498_v49 = vpop.eup %5497 }
 0x612   : > { %v2645_v38 = vpop.permute.xlu0 %2644  ;;  %v2641_v14 = vpop.permute.xlu1 %2640 }
 0x613   : > { %v2717_v62 = vmax.f32 %v2685_v1, %v2701_v8  ;;  %v2716_v61 = vmax.f32 %v2684_v42, %v2700_v29  ;;  %v2687_v50 = vadd.f32 %v7502_v15, %v2645_v38  ;;  %v2686_v57 = vadd.f32 %v7502_v15, %v2641_v14  ;;  %2751 = vmax.xlane.f32.xlu1 %v7530_v24 }
 0x614   : > { %2749 = vmax.xlane.f32.xlu0 %v7533_v27  ;;  %4938 = vmatmul.mubr.bf16.vlgmr.msra.gmra.mrb[32].mxu1 %v2483_v43  ;;  %v2473_v42 = vmul.f32 %v5490_v25, %v7403_v33  ;;  %v2474_v8 = vmul.f32 %v5492_v54, %v7412_v32  ;;  %v5500_v43 = vpop.eup %5499 }
 0x615   : > { %v2703_v7 = vmul.f32 0.2, %v2687_v50  ;;  %v2702_v45 = vmul.f32 0.2, %v2686_v57  ;;  %4941 = vmatprep.mubr.bf16.mxu1 %v2484_v17  ;;  %v7541_v52 = vadd.f32 %v9220_v48, %v2717_v62  ;;  %v7544_v6 = vadd.f32 %v9215_v12, %v2716_v61  ;;  %v5502_v32 = vpop.eup %5501 }
 0x616   : > { %v2653_v26 = vpop.permute.xlu0 %2652  ;;  %v2649_v1 = vpop.permute.xlu1 %2648  ;;  %v2485_v58 = vpack.c.bf16 %v2473_v42, %v2472_v53  ;;  %v2486_v62 = vpack.c.bf16 %v2475_v41, %v2474_v8  ;;  %v2476_v8 = vmul.f32 %v5496_v40, %v7418_v3  ;;  %v2477_v41 = vmul.f32 %v5498_v49, %v7416_v16 }
 0x617   : > { %v2719_v11 = vmax.f32 %v2687_v50, %v2703_v7  ;;  %v2718_v29 = vmax.f32 %v2686_v57, %v2702_v45  ;;  %v2689_v38 = vadd.f32 %v7502_v15, %v2653_v26  ;;  %v2688_v14 = vadd.f32 %v7502_v15, %v2649_v1  ;;  %2755 = vmax.xlane.f32.xlu1 %v7541_v52 }
 0x618   : > { %2753 = vmax.xlane.f32.xlu0 %v7544_v6  ;;  %v2487_v40 = vpack.c.bf16 %v2477_v41, %v2476_v8 }
 0x619   : > { %v2705_v10 = vmul.f32 0.2, %v2689_v38  ;;  %v2704_v17 = vmul.f32 0.2, %v2688_v14  ;;  %v7556_v33 = vadd.f32 %v9222_v36, %v2719_v11  ;;  %v7559_v63 = vadd.f32 %v9217_v21, %v2718_v29 }
 0x61a   : > { %v2661_v25 = vpop.permute.xlu0 %2660  ;;  %v2657_v54 = vpop.permute.xlu1 %2656  ;;  %v2478_v11 = vmul.f32 %v5500_v43, %v7424_v39  ;;  %v2479_v29 = vmul.f32 %v5502_v32, %v7422_v20 }
 0x61b   : > { %v2721_v61 = vmax.f32 %v2689_v38, %v2705_v10  ;;  %v2720_v50 = vmax.f32 %v2688_v14, %v2704_v17  ;;  %v2691_v57 = vadd.f32 %v7502_v15, %v2661_v25  ;;  %v2690_v30 = vadd.f32 %v7502_v15, %v2657_v54  ;;  %2759 = vmax.xlane.f32.xlu1 %v7556_v33  ;;  %v5504_v25 = vpop.eup %5503 }
 0x61c   : > { %2757 = vmax.xlane.f32.xlu0 %v7559_v63  ;;  %4942 = vmatmul.mubr.bf16.gmra.mrb[36].mxu1 %v2485_v58  ;;  %v5506_v20 = vpop.eup %5505 }
 0x61d   : > { %v2707_v7 = vmul.f32 0.2, %v2691_v57  ;;  %v2706_v45 = vmul.f32 0.2, %v2690_v30  ;;  %4945 = vmatprep.mubr.bf16.mxu1 %v2486_v62  ;;  %v7566_v26 = vadd.f32 %v9225_v28, %v2721_v61  ;;  %v7569_v53 = vadd.f32 %v9219_v18, %v2720_v50 }
 0x61e   : > { %v2669_v1 = vpop.permute.xlu0 %2668  ;;  %v2665_v42 = vpop.permute.xlu1 %2664  ;;  %v2488_v62 = vpack.c.bf16 %v2479_v29, %v2478_v11 }
 0x61f   : > { %v2723_v38 = vmax.f32 %v2691_v57, %v2707_v7  ;;  %v2722_v14 = vmax.f32 %v2690_v30, %v2706_v45  ;;  %v2693_v10 = vadd.f32 %v7502_v15, %v2669_v1  ;;  %v2692_v17 = vadd.f32 %v7502_v15, %v2665_v42  ;;  %2763 = vmax.xlane.f32.xlu1 %v7566_v26 }
 0x620   : > { %2761 = vmax.xlane.f32.xlu0 %v7569_v53  ;;  %v2480_v30 = vmul.f32 %v5504_v25, %v7430_v22  ;;  %v2481_v7 = vmul.f32 %v5506_v20, %v7428_v55  ;;  %v5789_v42 = vmov 78  }
 0x621   : > { %v2709_v54 = vmul.f32 0.2, %v2693_v10  ;;  %v2708_v58 = vmul.f32 0.2, %v2692_v17  ;;  %v7580_v3 = vadd.f32 %v9227_v19, %v2723_v38  ;;  %v7583_v16 = vadd.f32 %v9221_v35, %v2722_v14  ;;  %5168 = vset.pattern.permute.xlu1 %v5789_v42  ;;  %5167 = vset.pattern.permute.xlu0 %v5789_v42 }
 0x622   : > { %v2673_v39 = vpop.permute.xlu1 %2672  ;;  %v2489_v1 = vpack.c.bf16 %v2481_v7, %v2480_v30 }
 0x623   : > { %v2725_v49 = vmax.f32 %v2693_v10, %v2709_v54  ;;  %v2724_v43 = vmax.f32 %v2692_v17, %v2708_v58  ;;  %v2694_v32 = vadd.f32 %v7502_v15, %v2673_v39  ;;  %2767 = vmax.xlane.f32.xlu1 %v7580_v3 }
 0x624   : > { %2765 = vmax.xlane.f32.xlu0 %v7583_v16  ;;  %4946 = vmatmul.mubr.bf16.gmra.mrb[40].mxu1 %v2487_v40 }
 0x625   : > { %v2710_v61 = vmul.f32 0.2, %v2694_v32  ;;  %4949 = vmatprep.mubr.bf16.mxu1 %v2488_v62  ;;  %v7589_v50 = vadd.f32 %v9230_v34, %v2725_v49  ;;  %v7592_v57 = vadd.f32 %v9224_v13, %v2724_v43 }
 0x627   : > { %v2726_v45 = vmax.f32 %v2694_v32, %v2710_v61  ;;  %2771 = vmax.xlane.f32.xlu1 %v7589_v50 }
 0x628   : > { %2769 = vmax.xlane.f32.xlu0 %v7592_v57 }
 0x629   : > { %v7599_v15 = vadd.f32 %v9226_v46, %v2726_v45 }
 0x62c   : > { %2773 = vmax.xlane.f32.xlu0 %v7599_v15  ;;  %4950 = vmatmul.mubr.bf16.gmra.mrb[44].mxu1 %v2489_v1 }
 0x698   : > { %v2744_v22 = vpop.xlane.xlu0 %2743 }
 0x699   : > { %v2775_v55 = vsub.f32 %v7508_v9, %v2744_v22 }
 0x69b   : > { %v2791_v8 = vmul.f32 1.442695, %v2775_v55 }
 0x69c   : > { %v2746_v41 = vpop.xlane.xlu1 %2745 }
 0x69d   : > { %5507 = vpow2.f32 %v2791_v8  ;;  %v2748_v11 = vpop.xlane.xlu0 %2747  ;;  %v2776_v29 = vsub.f32 %v7515_v59, %v2746_v41 }
 0x69e   : > { %v2777_v38 = vsub.f32 %v7518_v5, %v2748_v11 }
 0x69f   : > { %v2793_v14 = vmul.f32 1.442695, %v2776_v29 }
 0x6a0   : > { %v2795_v10 = vmul.f32 1.442695, %v2777_v38  ;;  %v2752_v17 = vpop.xlane.xlu1 %2751 }
 0x6a1   : > { %5509 = vpow2.f32 %v2793_v14  ;;  %v2750_v25 = vpop.xlane.xlu0 %2749  ;;  %v2779_v54 = vsub.f32 %v7530_v24, %v2752_v17 }
 0x6a2   : > { %5511 = vpow2.f32 %v2795_v10  ;;  %v2778_v58 = vsub.f32 %v7533_v27, %v2750_v25 }
 0x6a3   : > { %v2799_v20 = vmul.f32 1.442695, %v2779_v54 }
 0x6a4   : > { %v2797_v9 = vmul.f32 1.442695, %v2778_v58  ;;  %v2756_v39 = vpop.xlane.xlu1 %2755 }
 0x6a5   : > { %5513 = vpow2.f32 %v2799_v20  ;;  %v2754_v40 = vpop.xlane.xlu0 %2753  ;;  %v2781_v49 = vsub.f32 %v7541_v52, %v2756_v39 }
 0x6a6   : > { %5515 = vpow2.f32 %v2797_v9  ;;  %v2780_v5 = vsub.f32 %v7544_v6, %v2754_v40 }
 0x6a7   : > { %v7611_v59 = vpop.eup %5507  ;;  %v2803_v43 = vmul.f32 1.442695, %v2781_v49 }
 0x6a8   : > { %v2801_v32 = vmul.f32 1.442695, %v2780_v5  ;;  %2823 = vadd.xlane.f32.xlu1 %v7611_v59  ;;  %v2760_v24 = vpop.xlane.xlu1 %2759 }
 0x6a9   : > { %5517 = vpow2.f32 %v2803_v43  ;;  %v2758_v62 = vpop.xlane.xlu0 %2757  ;;  %v2783_v27 = vsub.f32 %v7556_v33, %v2760_v24 }
 0x6aa   : > { %5519 = vpow2.f32 %v2801_v32  ;;  %v2782_v61 = vsub.f32 %v7559_v63, %v2758_v62 }
 0x6ab   : > { %v7616_v30 = vpop.eup %5509  ;;  %v2807_v52 = vmul.f32 1.442695, %v2783_v27  ;;  %v9308_v27 = vld [vmem:[#allocation31_spill] sm:$0xff] }
 0x6ac   : > { %v7618_v7 = vpop.eup %5511  ;;  %v2805_v6 = vmul.f32 1.442695, %v2782_v61  ;;  %2825 = vadd.xlane.f32.xlu0 %v7616_v30  ;;  %v2764_v45 = vpop.xlane.xlu1 %2763 }
 0x6ad   : > { %5521 = vpow2.f32 %v2807_v52  ;;  %2827 = vadd.xlane.f32.xlu1 %v7618_v7  ;;  %v2762_v1 = vpop.xlane.xlu0 %2761  ;;  %v2785_v22 = vsub.f32 %v7566_v26, %v2764_v45  ;;  %v9312_v45 = vld [vmem:[#allocation12_spill] sm:$0xff] }
 0x6ae   : > { %5523 = vpow2.f32 %v2805_v6  ;;  %v2784_v33 = vsub.f32 %v7569_v53, %v2762_v1 }
 0x6af   : > { %v7624_v55 = vpop.eup %5513  ;;  %v2811_v63 = vmul.f32 1.442695, %v2785_v22  ;;  %v9314_v22 = vld [vmem:[#allocation9_spill] sm:$0xff] }
 0x6b0   : > { %v7626_v8 = vpop.eup %5515  ;;  %v2809_v41 = vmul.f32 1.442695, %v2784_v33  ;;  %v2768_v11 = vpop.xlane.xlu1 %2767  ;;  %v9315_v33 = vld [vmem:[#allocation8_spill] sm:$0xff] }
 0x6b1   : > { %5525 = vpow2.f32 %v2811_v63  ;;  %v2766_v29 = vpop.xlane.xlu0 %2765  ;;  %2829 = vadd.xlane.f32.xlu0 %v7626_v8  ;;  %2831 = vadd.xlane.f32.xlu1 %v7624_v55  ;;  %v2787_v38 = vsub.f32 %v7580_v3, %v2768_v11  ;;  %v9316_v63 = vld [vmem:[#allocation10_spill] sm:$0xff] }
 0x6b2   : > { %5527 = vpow2.f32 %v2809_v41  ;;  %v2786_v26 = vsub.f32 %v7583_v16, %v2766_v29 }
 0x6b3   : > { %v7632_v14 = vpop.eup %5517  ;;  %v2815_v53 = vmul.f32 1.442695, %v2787_v38  ;;  %v5791_v38 = vmov 79  }
 0x6b4   : > { %v7634_v10 = vpop.eup %5519  ;;  %v2813_v17 = vmul.f32 1.442695, %v2786_v26  ;;  %v2772_v25 = vpop.xlane.xlu1 %2771 }
 0x6b5   : > { %5529 = vpow2.f32 %v2815_v53  ;;  %v2770_v54 = vpop.xlane.xlu0 %2769  ;;  %2833 = vadd.xlane.f32.xlu0 %v7634_v10  ;;  %2835 = vadd.xlane.f32.xlu1 %v7632_v14  ;;  %v2789_v58 = vsub.f32 %v7589_v50, %v2772_v25  ;;  %v9321_v53 = vld [vmem:[#allocation15_spill] sm:$0xff] }
 0x6b6   : > { %5531 = vpow2.f32 %v2813_v17  ;;  %v2788_v3 = vsub.f32 %v7592_v57, %v2770_v54  ;;  %v9322_v17 = vld [vmem:[#allocation16_spill] sm:$0xff] }
 0x6b7   : > { %v7640_v20 = vpop.eup %5521  ;;  %v2819_v16 = vmul.f32 1.442695, %v2789_v58 }
 0x6b8   : > { %v7642_v9 = vpop.eup %5523  ;;  %v2817_v39 = vmul.f32 1.442695, %v2788_v3 }
 0x6b9   : > { %5533 = vpow2.f32 %v2819_v16  ;;  %v2774_v40 = vpop.xlane.xlu0 %2773  ;;  %2837 = vadd.xlane.f32.xlu0 %v7642_v9  ;;  %2839 = vadd.xlane.f32.xlu1 %v7640_v20  ;;  %v9327_v16 = vld [vmem:[#allocation21_spill] sm:$0xff] }
 0x6ba   : > { %5535 = vpow2.f32 %v2817_v39  ;;  %v2790_v49 = vsub.f32 %v7599_v15, %v2774_v40  ;;  %v9328_v39 = vld [vmem:[#allocation22_spill] sm:$0xff] }
 0x6bb   : > { %v7647_v5 = vpop.eup %5525 }
 0x6bc   : > { %v7649_v50 = vpop.eup %5527  ;;  %v2821_v57 = vmul.f32 1.442695, %v2790_v49  ;;  %v9330_v49 = vld [vmem:[#allocation18_spill] sm:$0xff] }
 0x6bd   : > { %2841 = vadd.xlane.f32.xlu0 %v7649_v50  ;;  %2843 = vadd.xlane.f32.xlu1 %v7647_v5 }
 0x6be   : > { %5537 = vpow2.f32 %v2821_v57 }
 0x6bf   : > { %v7653_v43 = vpop.eup %5529 }
 0x6c0   : > { %v7655_v32 = vpop.eup %5531 }
 0x6c1   : > { %2845 = vadd.xlane.f32.xlu0 %v7655_v32  ;;  %2847 = vadd.xlane.f32.xlu1 %v7653_v43 }
 0x6c3   : > { %v7659_v24 = vpop.eup %5533 }
 0x6c4   : > { %v7661_v15 = vpop.eup %5535 }
 0x6c5   : > { %2849 = vadd.xlane.f32.xlu0 %v7661_v15  ;;  %2851 = vadd.xlane.f32.xlu1 %v7659_v24 }
 0x6c8   : > { %v7665_v62 = vpop.eup %5537 }
 0x6c9   : > { %2853 = vadd.xlane.f32.xlu0 %v7665_v62 }
 0x6d6   : > { %2895 = vrot.lane.b32.xlu1 %v9279_v44, %s5790_s10 }
 0x6da   : > { %2899 = vrot.lane.b32.xlu1 %v9170_v60, %s5790_s10 }
 0x6de   : > { %2901 = vrot.lane.b32.xlu1 %v9281_v37, %s5790_s10 }
 0x6df   : > { %2897 = vrot.lane.b32.xlu0 %v9171_v47, %s5790_s10 }
 0x6e2   : > { %2905 = vrot.lane.b32.xlu1 %v9284_v56, %s5790_s10  ;;  %v9343_v56 = vld [vmem:[#allocation62_spill] sm:$0xff] }
 0x6e3   : > { %2903 = vrot.lane.b32.xlu0 %v9280_v2, %s5790_s10 }
 0x6e6   : > { %2909 = vrot.lane.b32.xlu1 %v9289_v23, %s5790_s10 }
 0x6e7   : > { %2907 = vrot.lane.b32.xlu0 %v9308_v27, %s5790_s10  ;;  %v7676_v61 = vpop.f32.mrb[32].mxu1  ;;  %s4595_s10 = sshll.u32 %s5857_s26, 11  ;;  %s8828_s26 = scalar_lea.sflag [#allocation5], %s246_s21 }
 0x6e8   : > { %9309 = vst [vmem:[#allocation95_spill] sm:$0xff] %v7676_v61  ;;  %v7678_v52 = vpop.f32.mrb[33].mxu1 }
 0x6e9   : > { %9310 = vst [vmem:[#allocation96_spill] sm:$0xff] %v7678_v52  ;;  %v7680_v6 = vpop.f32.mrb[34].mxu1 }
 0x6ea   : > { %9311 = vst [vmem:[#allocation97_spill] sm:$0xff] %v7680_v6  ;;  %3021 = vperm.xlu1 %5168, %v9312_v45   ;;  %v7683_v1 = vpop.f32.mrb[35].mxu1 }
 0x6eb   : > { %9313 = vst [vmem:[#allocation12_spill] sm:$0xff] %v7683_v1  ;;  %3017 = vperm.xlu0 %5167, %v9314_v22  }
 0x6ee   : > { %3025 = vperm.xlu1 %5168, %v9315_v33  }
 0x6ef   : > { %3029 = vperm.xlu0 %5167, %v9316_v63   ;;  %v7688_v41 = vpop.f32.mrb[36].mxu1 }
 0x6f0   : > { %9317 = vst [vmem:[#allocation9_spill] sm:$0xff] %v7688_v41  ;;  %v7690_v11 = vpop.f32.mrb[37].mxu1  ;;  %v9336_v41 = vld [vmem:[#allocation28_spill] sm:$0xff] }
 0x6f1   : > { %9318 = vst [vmem:[#allocation8_spill] sm:$0xff] %v7690_v11  ;;  %v7692_v29 = vpop.f32.mrb[38].mxu1 }
 0x6f2   : > { %9319 = vst [vmem:[#allocation10_spill] sm:$0xff] %v7692_v29  ;;  %5169 = vset.pattern.permute.xlu1 %v5791_v38  ;;  %v7694_v26 = vpop.f32.mrb[39].mxu1 }
 0x6f3   : > { %9320 = vst [vmem:[#allocation98_spill] sm:$0xff] %v7694_v26  ;;  %3033 = vperm.xlu0 %5167, %v9321_v53   ;;  %3422 = vperm.xlu1 %5169, %v9314_v22  }
 0x6f7   : > { %3045 = vperm.xlu0 %5167, %v9322_v17   ;;  %3430 = vperm.xlu1 %5169, %v9315_v33   ;;  %v7700_v25 = vpop.f32.mrb[40].mxu1 }
 0x6f8   : > { %9323 = vst [vmem:[#allocation15_spill] sm:$0xff] %v7700_v25  ;;  %v7702_v54 = vpop.f32.mrb[41].mxu1  ;;  %v9334_v25 = vld [vmem:[#allocation27_spill] sm:$0xff] }
 0x6f9   : > { %9324 = vst [vmem:[#allocation16_spill] sm:$0xff] %v7702_v54  ;;  %v7704_v58 = vpop.f32.mrb[42].mxu1  ;;  %v9335_v54 = vld [vmem:[#allocation14_spill] sm:$0xff] }
 0x6fa   : > { %9325 = vst [vmem:[#allocation99_spill] sm:$0xff] %v7704_v58  ;;  %v7706_v3 = vpop.f32.mrb[43].mxu1 }
 0x6fb   : > { %9326 = vst [vmem:[#allocation100_spill] sm:$0xff] %v7706_v3  ;;  %3049 = vperm.xlu0 %5167, %v9327_v16   ;;  %3434 = vperm.xlu1 %5169, %v9316_v63   ;;  %v9337_v63 = vld [vmem:[#allocation24_spill] sm:$0xff] }
 0x6ff   : > { %3061 = vperm.xlu0 %5167, %v9328_v39   ;;  %5170 = vset.pattern.permute.xlu1 %v5789_v42  ;;  %v7712_v40 = vpop.f32.mrb[44].mxu1 }
 0x700   : > { %9329 = vst [vmem:[#allocation21_spill] sm:$0xff] %v7712_v40  ;;  %3037 = vperm.xlu1 %5170, %v9330_v49   ;;  %v7715_v57 = vpop.f32.mrb[45].mxu1  ;;  %v9338_v40 = vld [vmem:[#allocation30_spill] sm:$0xff] }
 0x701   : > { %9331 = vst [vmem:[#allocation22_spill] sm:$0xff] %v7715_v57  ;;  %v7717_v22 = vpop.f32.mrb[46].mxu1  ;;  %v9339_v57 = vld [vmem:[#allocation20_spill] sm:$0xff] }
 0x702   : > { %9332 = vst [vmem:[#allocation18_spill] sm:$0xff] %v7717_v22  ;;  %v7719_v33 = vpop.f32.mrb[47].mxu1 }
 0x703   : > { %9333 = vst [vmem:[#allocation101_spill] sm:$0xff] %v7719_v33  ;;  %3065 = vperm.xlu0 %5167, %v9334_v25  }
 0x704   : > { %3041 = vperm.xlu1 %5170, %v9335_v54  }
 0x707   : > { %3077 = vperm.xlu0 %5167, %v9336_v41  }
 0x708   : > { %5171 = vset.pattern.permute.xlu1 %v5791_v38 }
 0x709   : > { %3438 = vperm.xlu1 %5171, %v9321_v53  }
 0x70b   : > { %5175 = vset.pattern.permute.xlu0 %v5791_v38 }
 0x70c   : > { %3426 = vperm.xlu0 %5175, %v9312_v45   ;;  %v9340_v45 = vld [vmem:[#allocation26_spill] sm:$0xff] }
 0x70d   : > { %3446 = vperm.xlu1 %5171, %v9335_v54  }
 0x710   : > { %3442 = vperm.xlu0 %5175, %v9330_v49  }
 0x711   : > { %3450 = vperm.xlu1 %5171, %v9322_v17  }
 0x714   : > { %3458 = vperm.xlu0 %5175, %v9337_v63  }
 0x715   : > { %5172 = vset.pattern.permute.xlu1 %v5789_v42 }
 0x716   : > { %3053 = vperm.xlu1 %5172, %v9337_v63  }
 0x718   : > { %3474 = vperm.xlu0 %5175, %v9338_v40  }
 0x71a   : > { %3057 = vperm.xlu1 %5172, %v9339_v57  }
 0x71e   : > { %5173 = vset.pattern.permute.xlu1 %v5791_v38 }
 0x71f   : > { %3454 = vperm.xlu1 %5173, %v9327_v16  }
 0x723   : > { %3462 = vperm.xlu1 %5173, %v9339_v57  }
 0x727   : > { %3466 = vperm.xlu1 %5173, %v9328_v39  }
 0x72b   : > { %5174 = vset.pattern.permute.xlu1 %v5789_v42 }
 0x72c   : > { %3069 = vperm.xlu1 %5174, %v9338_v40  }
 0x730   : > { %3073 = vperm.xlu1 %5174, %v9340_v45  }
 0x734   : > { %5176 = vset.pattern.permute.xlu1 %v5791_v38 }
 0x735   : > { %3470 = vperm.xlu1 %5176, %v9334_v25   ;;  %v2824_v53 = vpop.xlane.xlu1 %2823 }
 0x736   : > { %5539 = vrcp.f32 %v2824_v53 }
 0x739   : > { %3478 = vperm.xlu1 %5176, %v9340_v45   ;;  %v2826_v17 = vpop.xlane.xlu0 %2825 }
 0x73a   : > { %5541 = vrcp.f32 %v2826_v17  ;;  %v2828_v54 = vpop.xlane.xlu1 %2827 }
 0x73d   : > { %3482 = vperm.xlu1 %5176, %v9336_v41  }
 0x73e   : > { %v2830_v16 = vpop.xlane.xlu0 %2829  ;;  %v2832_v39 = vpop.xlane.xlu1 %2831 }
 0x73f   : > { %5543 = vrcp.f32 %v2830_v16 }
 0x740   : > { %v5540_v49 = vpop.eup %5539  ;;  %5545 = vrcp.f32 %v2828_v54 }
 0x741   : > { %v2871_v63 = vmul.f32 %v5540_v49, %v7611_v59 }
 0x742   : > { %v2834_v42 = vpop.xlane.xlu0 %2833  ;;  %v2836_v57 = vpop.xlane.xlu1 %2835 }
 0x743   : > { %5547 = vrcp.f32 %v2834_v42 }
 0x744   : > { %v5542_v40 = vpop.eup %5541  ;;  %5549 = vrcp.f32 %v2832_v39 }
 0x745   : > { %v2872_v38 = vmul.f32 %v5542_v40, %v7616_v30  ;;  %5551 = vrcp.f32 %v2836_v57 }
 0x746   : > { %v2838_v25 = vpop.xlane.xlu0 %2837  ;;  %v2840_v11 = vpop.xlane.xlu1 %2839 }
 0x747   : > { %v2887_v53 = vpack.c.bf16 %v2872_v38, %v2871_v63  ;;  %5553 = vrcp.f32 %v2838_v25 }
 0x749   : > { %4969 = vmatprep.mubr.bf16.mxu0 %v2887_v53  ;;  %v9341_v53 = vld [vmem:[#allocation59_spill] sm:$0xff]  ;;  %v5544_v16 = vpop.eup %5543 }
 0x74a   : > { %v2842_v45 = vpop.xlane.xlu0 %2841  ;;  %v7745_v22 = vpop.xlane.xlu1 %2843  ;;  %v3082_v58 = vsub.s32 6, %v9341_v53  ;;  %v3487_v42 = vsub.s32 7, %v9341_v53  ;;  %v2874_v25 = vmul.f32 %v5544_v16, %v7626_v8 }
 0x74b   : > { %5555 = vrcp.f32 %v2842_v45 }
 0x74c   : > { %5557 = vrcp.f32 %v2840_v11 }
 0x74e   : > { %v7747_v17 = vpop.xlane.xlu0 %2845  ;;  %v7749_v41 = vpop.xlane.xlu1 %2847 }
 0x74f   : > { %5559 = vrcp.f32 %v7747_v17 }
 0x752   : > { %v7751_v61 = vpop.xlane.xlu0 %2849  ;;  %v7753_v33 = vpop.xlane.xlu1 %2851 }
 0x753   : > { %5561 = vrcp.f32 %v7751_v61 }
 0x754   : > { %5563 = vrcp.f32 %v7745_v22 }
 0x755   : > { %5565 = vrcp.f32 %v7749_v41 }
 0x756   : > { %v7755_v52 = vpop.xlane.xlu0 %2853  ;;  %v2896_v59 = vpop.permute.xlu1 %2895 }
 0x757   : > { %4953 = vmatprep.subr.bf16.mxu0 %v2896_v59  ;;  %5567 = vrcp.f32 %v7755_v52 }
 0x758   : > { %4954 = vmatpush3.bf16.msra.mxu0 %v2896_v59  ;;  %v9342_v59 = vld [vmem:[#allocation61_spill] sm:$0xff]  ;;  %5569 = vrcp.f32 %v7753_v33 }
 0x759   : > { %v7759_v26 = vrot.slane %v9342_v59, %v3082_v58  ;;  %v7768_v45 = vrot.slane %v9342_v59, %v3487_v42 }
 0x75a   : > { %v2898_v30 = vpop.permute.xlu0 %2897  ;;  %v2900_v49 = vpop.permute.xlu1 %2899 }
 0x75b   : > { %4955 = vmatprep.subr.bf16.mxu0 %v2898_v30 }
 0x75c   : > { %4956 = vmatpush3.bf16.msra.mxu0 %v2898_v30 }
 0x75d   : > { %4957 = vmatprep.subr.bf16.mxu0 %v2900_v49 }
 0x75e   : > { %v2902_v40 = vpop.permute.xlu1 %2901  ;;  %v2904_v63 = vpop.permute.xlu0 %2903 }
 0x760   : > { %4958 = vmatpush3.bf16.msra.mxu0 %v2900_v49 }
 0x761   : > { %4959 = vmatprep.subr.bf16.mxu0 %v2902_v40 }
 0x762   : > { %v2906_v38 = vpop.permute.xlu1 %2905  ;;  %v2908_v3 = vpop.permute.xlu0 %2907 }
 0x764   : > { %4960 = vmatpush3.bf16.msra.mxu0 %v2902_v40 }
 0x765   : > { %4961 = vmatprep.subr.bf16.mxu0 %v2904_v63 }
 0x766   : > { %v2910_v29 = vpop.permute.xlu1 %2909 }
 0x768   : > { %4962 = vmatpush3.bf16.msra.mxu0 %v2904_v63  ;;  %v5546_v63 = vpop.eup %5545 }
 0x769   : > { %4963 = vmatprep.subr.bf16.mxu0 %v2906_v38  ;;  %v5548_v23 = vpop.eup %5547 }
 0x76a   : > { %v3018_v30 = vpop.permute.xlu0 %3017  ;;  %v3022_v6 = vpop.permute.xlu1 %3021  ;;  %v2876_v8 = vmul.f32 %v5548_v23, %v7634_v10 }
 0x76b   : > { %v3084_v49 = vadd.f32 %v7759_v26, %v3018_v30  ;;  %v3085_v54 = vadd.f32 %v7759_v26, %v3022_v6 }
 0x76c   : > { %4964 = vmatpush3.bf16.msra.mxu0 %v2906_v38  ;;  %v5550_v38 = vpop.eup %5549 }
 0x76d   : > { %v3100_v40 = vmul.f32 0.2, %v3084_v49  ;;  %v3101_v39 = vmul.f32 0.2, %v3085_v54  ;;  %4965 = vmatprep.subr.bf16.mxu0 %v2908_v3  ;;  %v2875_v59 = vmul.f32 %v5550_v38, %v7624_v55  ;;  %v5552_v42 = vpop.eup %5551 }
 0x76e   : > { %v3030_v58 = vpop.permute.xlu0 %3029  ;;  %v3026_v1 = vpop.permute.xlu1 %3025 }
 0x76f   : > { %v3116_v27 = vmax.f32 %v3084_v49, %v3100_v40  ;;  %v3117_v57 = vmax.f32 %v3085_v54, %v3101_v39  ;;  %v3087_v30 = vadd.f32 %v7759_v26, %v3030_v58  ;;  %v3086_v6 = vadd.f32 %v7759_v26, %v3026_v1  ;;  %v5554_v10 = vpop.eup %5553 }
 0x770   : > { %4966 = vmatpush3.bf16.msra.mxu0 %v2908_v3  ;;  %v2873_v49 = vmul.f32 %v5546_v63, %v7618_v7 }
 0x771   : > { %v3102_v53 = vmul.f32 0.2, %v3086_v6  ;;  %4967 = vmatprep.subr.bf16.mxu0 %v2910_v29  ;;  %v7771_v11 = vadd.f32 %v9343_v56, %v3116_v27  ;;  %v7774_v2 = vadd.f32 %v9214_v31, %v3117_v57  ;;  %v3103_v54 = vmul.f32 0.2, %v3087_v30  ;;  %v5556_v57 = vpop.eup %5555 }
 0x772   : > { %v3034_v40 = vpop.permute.xlu0 %3033  ;;  %v3423_v1 = vpop.permute.xlu1 %3422  ;;  %v2888_v27 = vpack.c.bf16 %v2874_v25, %v2873_v49  ;;  %v2880_v41 = vmul.f32 %v5556_v57, %v7649_v50 }
 0x773   : > { %v3118_v3 = vmax.f32 %v3086_v6, %v3102_v53  ;;  %v3489_v16 = vadd.f32 %v7768_v45, %v3423_v1  ;;  %3148 = vmax.xlane.f32.xlu0 %v7771_v11  ;;  %3150 = vmax.xlane.f32.xlu1 %v7774_v2  ;;  %v3088_v7 = vadd.f32 %v7759_v26, %v3034_v40  ;;  %v5558_v6 = vpop.eup %5557 }
 0x774   : > { %4968 = vmatpush3.bf16.msra.mxu0 %v2910_v29  ;;  %v3119_v63 = vmax.f32 %v3087_v30, %v3103_v54  ;;  %v2889_v29 = vpack.c.bf16 %v2876_v8, %v2875_v59  ;;  %v2878_v30 = vmul.f32 %v5554_v10, %v7642_v9  ;;  %v2877_v1 = vmul.f32 %v5552_v42, %v7632_v14 }
 0x775   : > { %v3505_v39 = vmul.f32 0.2, %v3489_v16  ;;  %v7786_v23 = vadd.f32 %v9216_v0, %v3118_v3  ;;  %v3104_v25 = vmul.f32 0.2, %v3088_v7 }
 0x776   : > { %v7789_v17 = vpop.permute.xlu0 %3045  ;;  %v3431_v58 = vpop.permute.xlu1 %3430  ;;  %v7799_v54 = vadd.f32 %v9213_v4, %v3119_v63  ;;  %v2890_v9 = vpack.c.bf16 %v2878_v30, %v2877_v1 }
 0x777   : > { %v3521_v55 = vmax.f32 %v3489_v16, %v3505_v39  ;;  %v3491_v61 = vadd.f32 %v7768_v45, %v3431_v58  ;;  %4970 = vmatmul.mubr.bf16.vlgmr.msra.gmra.mrb[48].mxu0 %v2888_v27  ;;  %3152 = vmax.xlane.f32.xlu0 %v7786_v23  ;;  %v3120_v8 = vmax.f32 %v3088_v7, %v3104_v25  ;;  %v5560_v16 = vpop.eup %5559 }
 0x778   : > { %4973 = vmatprep.mubr.bf16.mxu0 %v2889_v29  ;;  %v5562_v59 = vpop.eup %5561 }
 0x779   : > { %v3507_v38 = vmul.f32 0.2, %v3491_v61  ;;  %v7795_v22 = vadd.f32 %v9343_v56, %v3521_v55  ;;  %v2879_v56 = vmul.f32 %v5558_v6, %v7640_v20  ;;  %v5564_v52 = vpop.eup %5563  ;;  %v7815_v20 = vadd.f32 %v9218_v51, %v3120_v8 }
 0x77a   : > { %v3050_v53 = vpop.permute.xlu0 %3049  ;;  %v3435_v49 = vpop.permute.xlu1 %3434  ;;  %v2884_v33 = vmul.f32 %v5562_v59, %v7661_v15  ;;  %v2881_v10 = vmul.f32 %v5564_v52, %v7647_v5 }
 0x77b   : > { %v3523_v40 = vmax.f32 %v3491_v61, %v3507_v38  ;;  %3553 = vmax.xlane.f32.xlu1 %v7795_v22  ;;  %3154 = vmax.xlane.f32.xlu0 %v7799_v54  ;;  %v2891_v27 = vpack.c.bf16 %v2880_v41, %v2879_v56  ;;  %v5566_v42 = vpop.eup %5565  ;;  %v3492_v5 = vadd.f32 %v7768_v45, %v3435_v49 }
 0x77c   : > { %v2883_v58 = vmul.f32 %v5566_v42, %v7653_v43  ;;  %v5568_v57 = vpop.eup %5567  ;;  %v3092_v43 = vadd.f32 %v7759_v26, %v3050_v53 }
 0x77d   : > { %v7808_v3 = vadd.f32 %v9216_v0, %v3523_v40  ;;  %v2882_v0 = vmul.f32 %v5560_v16, %v7655_v32  ;;  %v5570_v32 = vpop.eup %5569  ;;  %v2886_v30 = vmul.f32 %v5568_v57, %v7665_v62  ;;  %v3508_v59 = vmul.f32 0.2, %v3492_v5 }
 0x77e   : > { %v7811_v50 = vpop.permute.xlu0 %3061  ;;  %v2893_v6 = vpack.c.bf16 %v2884_v33, %v2883_v58  ;;  %v2885_v56 = vmul.f32 %v5570_v32, %v7659_v24  ;;  %v3108_v42 = vmul.f32 0.2, %v3092_v43 }
 0x77f   : > { %4974 = vmatmul.mubr.bf16.gmra.mrb[52].mxu0 %v2890_v9  ;;  %3557 = vmax.xlane.f32.xlu1 %v7808_v3  ;;  %v3038_v14 = vpop.permute.xlu1 %3037  ;;  %v2892_v29 = vpack.c.bf16 %v2882_v0, %v2881_v10 }
 0x780   : > { %4977 = vmatprep.mubr.bf16.mxu0 %v2891_v27  ;;  %v2894_v62 = vpack.c.bf16 %v2886_v30, %v2885_v56  ;;  %v3089_v49 = vadd.f32 %v7759_v26, %v3038_v14  ;;  %v3124_v14 = vmax.f32 %v3092_v43, %v3108_v42 }
 0x782   : > { %v7818_v7 = vpop.permute.xlu0 %3065  ;;  %v3105_v58 = vmul.f32 0.2, %v3089_v49 }
 0x783   : > { %3156 = vmax.xlane.f32.xlu1 %v7815_v20  ;;  %v3042_v39 = vpop.permute.xlu1 %3041 }
 0x784   : > { %v3090_v63 = vadd.f32 %v7759_v26, %v3042_v39  ;;  %v3091_v39 = vadd.f32 %v7759_v26, %v7789_v17  ;;  %v3121_v17 = vmax.f32 %v3089_v49, %v3105_v58 }
 0x786   : > { %v3106_v55 = vmul.f32 0.2, %v3090_v63  ;;  %v7825_v61 = vpop.permute.xlu0 %3077  ;;  %v7865_v43 = vadd.f32 %v9215_v12, %v3121_v17 }
 0x787   : > { %4978 = vmatmul.mubr.bf16.gmra.mrb[56].mxu0 %v2892_v29 }
 0x788   : > { %v3122_v25 = vmax.f32 %v3090_v63, %v3106_v55  ;;  %4981 = vmatprep.mubr.bf16.mxu0 %v2893_v6  ;;  %v3439_v15 = vpop.permute.xlu1 %3438  ;;  %v3524_v63 = vmax.f32 %v3492_v5, %v3508_v59  ;;  %v3096_v59 = vadd.f32 %v7759_v26, %v7818_v7 }
 0x789   : > { %v3493_v38 = vadd.f32 %v7768_v45, %v3439_v15 }
 0x78a   : > { %v7831_v41 = vadd.f32 %v9220_v48, %v3122_v25  ;;  %v7855_v25 = vadd.f32 %v9213_v4, %v3524_v63  ;;  %v3112_v58 = vmul.f32 0.2, %v3096_v59 }
 0x78b   : > { %v3509_v40 = vmul.f32 0.2, %v3493_v38  ;;  %v3427_v1 = vpop.permute.xlu0 %3426 }
 0x78c   : > { %v3490_v8 = vadd.f32 %v7768_v45, %v3427_v1  ;;  %3160 = vmax.xlane.f32.xlu1 %v7831_v41  ;;  %v3447_v9 = vpop.permute.xlu1 %3446 }
 0x78d   : > { %v3525_v16 = vmax.f32 %v3493_v38, %v3509_v40  ;;  %v3495_v27 = vadd.f32 %v7768_v45, %v3447_v9 }
 0x78e   : > { %v3506_v52 = vmul.f32 0.2, %v3490_v8 }
 0x78f   : > { %v3511_v0 = vmul.f32 0.2, %v3495_v27  ;;  %4982 = vmatmul.mubr.bf16.gmra.mrb[60].mxu0 %v2894_v62  ;;  %v7840_v53 = vadd.f32 %v9218_v51, %v3525_v16  ;;  %v3443_v57 = vpop.permute.xlu0 %3442  ;;  %v3107_v51 = vmul.f32 0.2, %v3091_v39 }
 0x790   : > { %v3522_v24 = vmax.f32 %v3490_v8, %v3506_v52  ;;  %v3451_v33 = vpop.permute.xlu1 %3450  ;;  %v3494_v32 = vadd.f32 %v7768_v45, %v3443_v57  ;;  %v3095_v52 = vadd.f32 %v7759_v26, %v7811_v50 }
 0x791   : > { %v3527_v10 = vmax.f32 %v3495_v27, %v3511_v0  ;;  %3561 = vmax.xlane.f32.xlu1 %v7840_v53  ;;  %v3123_v15 = vmax.f32 %v3091_v39, %v3107_v51  ;;  %v3496_v30 = vadd.f32 %v7768_v45, %v3451_v33 }
 0x792   : > { %v7846_v29 = vadd.f32 %v9214_v31, %v3522_v24  ;;  %v7858_v31 = vadd.f32 %v9222_v36, %v3124_v14  ;;  %v3510_v38 = vmul.f32 0.2, %v3494_v32  ;;  %v3111_v50 = vmul.f32 0.2, %v3095_v52 }
 0x793   : > { %v7849_v55 = vadd.f32 %v9220_v48, %v3527_v10  ;;  %v7869_v4 = vadd.f32 %v9217_v21, %v3123_v15  ;;  %v3512_v56 = vmul.f32 0.2, %v3496_v30  ;;  %v3459_v39 = vpop.permute.xlu0 %3458 }
 0x794   : > { %3555 = vmax.xlane.f32.xlu0 %v7846_v29  ;;  %v3526_v1 = vmax.f32 %v3494_v32, %v3510_v38  ;;  %v3498_v57 = vadd.f32 %v7768_v45, %v3459_v39  ;;  %v3128_v32 = vmax.f32 %v3096_v59, %v3112_v58 }
 0x795   : > { %3565 = vmax.xlane.f32.xlu1 %v7849_v55  ;;  %v3054_v6 = vpop.permute.xlu1 %3053  ;;  %v3528_v42 = vmax.f32 %v3496_v30, %v3512_v56 }
 0x796   : > { %v3093_v8 = vadd.f32 %v7759_v26, %v3054_v6  ;;  %v7883_v33 = vadd.f32 %v9215_v12, %v3526_v1 }
 0x797   : > { %v7892_v17 = vadd.f32 %v9217_v21, %v3528_v42  ;;  %v3475_v42 = vpop.permute.xlu0 %3474 }
 0x798   : > { %3559 = vmax.xlane.f32.xlu0 %v7855_v25  ;;  %v3109_v0 = vmul.f32 0.2, %v3093_v8 }
 0x799   : > { %3164 = vmax.xlane.f32.xlu1 %v7858_v31  ;;  %v3058_v48 = vpop.permute.xlu1 %3057 }
 0x79a   : > { %v3094_v5 = vadd.f32 %v7759_v26, %v3058_v48  ;;  %v3125_v51 = vmax.f32 %v3093_v8, %v3109_v0  ;;  %v3127_v48 = vmax.f32 %v3095_v52, %v3111_v50 }
 0x79c   : > { %v3110_v40 = vmul.f32 0.2, %v3094_v5  ;;  %3158 = vmax.xlane.f32.xlu0 %v7865_v43  ;;  %v7901_v30 = vadd.f32 %v9219_v18, %v3125_v51  ;;  %v7910_v56 = vadd.f32 %v9221_v35, %v3127_v48 }
 0x79e   : > { %v3126_v9 = vmax.f32 %v3094_v5, %v3110_v40  ;;  %v3455_v16 = vpop.permute.xlu1 %3454  ;;  %v7906_v5 = vadd.f32 %v9227_v19, %v3128_v32 }
 0x79f   : > { %v3497_v27 = vadd.f32 %v7768_v45, %v3455_v16  ;;  %v3099_v16 = vadd.f32 %v7759_v26, %v7825_v61 }
 0x7a0   : > { %3162 = vmax.xlane.f32.xlu0 %v7869_v4  ;;  %v7875_v62 = vadd.f32 %v9225_v28, %v3126_v9 }
 0x7a1   : > { %v3513_v49 = vmul.f32 0.2, %v3497_v27  ;;  %v3115_v39 = vmul.f32 0.2, %v3099_v16 }
 0x7a2   : > { %3168 = vmax.xlane.f32.xlu1 %v7875_v62  ;;  %v3463_v24 = vpop.permute.xlu1 %3462 }
 0x7a3   : > { %v3529_v10 = vmax.f32 %v3497_v27, %v3513_v49  ;;  %v3499_v63 = vadd.f32 %v7768_v45, %v3463_v24  ;;  %v3131_v51 = vmax.f32 %v3099_v16, %v3115_v39 }
 0x7a4   : > { %3563 = vmax.xlane.f32.xlu0 %v7883_v33 }
 0x7a5   : > { %v3515_v7 = vmul.f32 0.2, %v3499_v63  ;;  %v7888_v14 = vadd.f32 %v9222_v36, %v3529_v10  ;;  %v3514_v36 = vmul.f32 0.2, %v3498_v57 }
 0x7a6   : > { %v3467_v6 = vpop.permute.xlu1 %3466 }
 0x7a7   : > { %v3531_v12 = vmax.f32 %v3499_v63, %v3515_v7  ;;  %3569 = vmax.xlane.f32.xlu1 %v7888_v14  ;;  %v3500_v38 = vadd.f32 %v7768_v45, %v3467_v6  ;;  %v3530_v40 = vmax.f32 %v3498_v57, %v3514_v36  ;;  %v3502_v63 = vadd.f32 %v7768_v45, %v3475_v42 }
 0x7a8   : > { %3567 = vmax.xlane.f32.xlu0 %v7892_v17 }
 0x7a9   : > { %v7897_v15 = vadd.f32 %v9225_v28, %v3531_v12  ;;  %v3516_v1 = vmul.f32 0.2, %v3500_v38  ;;  %v7918_v52 = vadd.f32 %v9219_v18, %v3530_v40  ;;  %v3518_v6 = vmul.f32 0.2, %v3502_v63 }
 0x7aa   : > { %v7942_v40 = vadd.f32 %v9226_v46, %v3131_v51 }
 0x7ab   : > { %3573 = vmax.xlane.f32.xlu1 %v7897_v15  ;;  %v3070_v21 = vpop.permute.xlu1 %3069  ;;  %v3532_v27 = vmax.f32 %v3500_v38, %v3516_v1 }
 0x7ac   : > { %3166 = vmax.xlane.f32.xlu0 %v7901_v30  ;;  %v3097_v28 = vadd.f32 %v7759_v26, %v3070_v21  ;;  %v3534_v21 = vmax.f32 %v3502_v63, %v3518_v6 }
 0x7ad   : > { %v7924_v7 = vadd.f32 %v9221_v35, %v3532_v27 }
 0x7ae   : > { %v3113_v59 = vmul.f32 0.2, %v3097_v28 }
 0x7af   : > { %3172 = vmax.xlane.f32.xlu1 %v7906_v5  ;;  %v3074_v8 = vpop.permute.xlu1 %3073 }
 0x7b0   : > { %v3098_v9 = vadd.f32 %v7759_v26, %v3074_v8  ;;  %3170 = vmax.xlane.f32.xlu0 %v7910_v56  ;;  %v3129_v58 = vmax.f32 %v3097_v28, %v3113_v59  ;;  %v7950_v8 = vadd.f32 %v9224_v13, %v3534_v21 }
 0x7b2   : > { %v3114_v49 = vmul.f32 0.2, %v3098_v9  ;;  %v7933_v12 = vadd.f32 %v9224_v13, %v3129_v58 }
 0x7b4   : > { %v3130_v0 = vmax.f32 %v3098_v9, %v3114_v49  ;;  %3571 = vmax.xlane.f32.xlu0 %v7918_v52  ;;  %v3471_v24 = vpop.permute.xlu1 %3470 }
 0x7b5   : > { %v3501_v10 = vadd.f32 %v7768_v45, %v3471_v24 }
 0x7b6   : > { %v7927_v26 = vadd.f32 %v9230_v34, %v3130_v0 }
 0x7b7   : > { %v3517_v61 = vmul.f32 0.2, %v3501_v10 }
 0x7b8   : > { %3575 = vmax.xlane.f32.xlu0 %v7924_v7  ;;  %3176 = vmax.xlane.f32.xlu1 %v7927_v26  ;;  %v3479_v18 = vpop.permute.xlu1 %3478 }
 0x7b9   : > { %v3533_v50 = vmax.f32 %v3501_v10, %v3517_v61  ;;  %v3503_v57 = vadd.f32 %v7768_v45, %v3479_v18 }
 0x7bb   : > { %v3519_v32 = vmul.f32 0.2, %v3503_v57  ;;  %v7936_v35 = vadd.f32 %v9227_v19, %v3533_v50 }
 0x7bc   : > { %3174 = vmax.xlane.f32.xlu0 %v7933_v12  ;;  %v3483_v48 = vpop.permute.xlu1 %3482 }
 0x7bd   : > { %v3535_v36 = vmax.f32 %v3503_v57, %v3519_v32  ;;  %v3504_v38 = vadd.f32 %v7768_v45, %v3483_v48  ;;  %3577 = vmax.xlane.f32.xlu1 %v7936_v35 }
 0x7bf   : > { %v3520_v1 = vmul.f32 0.2, %v3504_v38  ;;  %v7945_v28 = vadd.f32 %v9230_v34, %v3535_v36 }
 0x7c0   : > { %3178 = vmax.xlane.f32.xlu0 %v7942_v40 }
 0x7c1   : > { %3581 = vmax.xlane.f32.xlu1 %v7945_v28  ;;  %v3536_v19 = vmax.f32 %v3504_v38, %v3520_v1 }
 0x7c3   : > { %v7954_v45 = vadd.f32 %v9226_v46, %v3536_v19 }
 0x7c4   : > { %3579 = vmax.xlane.f32.xlu0 %v7950_v8 }
 0x7c8   : > { %3583 = vmax.xlane.f32.xlu0 %v7954_v45 }
 0x7d2   : > { %3300 = vrot.lane.b32.xlu1 %v9279_v44, %s5792_s11 }
 0x7de   : > { %3705 = vrot.lane.b32.xlu0 %v9279_v44, %s5793_s12 }
 0x800   : > { %v3149_v34 = vpop.xlane.xlu0 %3148  ;;  %v3151_v13 = vpop.xlane.xlu1 %3150 }
 0x801   : > { %v3180_v9 = vsub.f32 %v7771_v11, %v3149_v34  ;;  %v3181_v16 = vsub.f32 %v7774_v2, %v3151_v13 }
 0x803   : > { %v3196_v27 = vmul.f32 1.442695, %v3180_v9  ;;  %v3198_v59 = vmul.f32 1.442695, %v3181_v16 }
 0x804   : > { %v3153_v46 = vpop.xlane.xlu0 %3152 }
 0x805   : > { %5571 = vpow2.f32 %v3196_v27  ;;  %v3182_v49 = vsub.f32 %v7786_v23, %v3153_v46 }
 0x806   : > { %5573 = vpow2.f32 %v3198_v59 }
 0x807   : > { %v3200_v42 = vmul.f32 1.442695, %v3182_v49 }
 0x808   : > { %v3554_v0 = vpop.xlane.xlu1 %3553  ;;  %v3155_v24 = vpop.xlane.xlu0 %3154 }
 0x809   : > { %v3585_v39 = vsub.f32 %v7795_v22, %v3554_v0  ;;  %5575 = vpow2.f32 %v3200_v42  ;;  %v3183_v44 = vsub.f32 %v7799_v54, %v3155_v24 }
 0x80b   : > { %v3601_v10 = vmul.f32 1.442695, %v3585_v39  ;;  %v3202_v11 = vmul.f32 1.442695, %v3183_v44 }
 0x80c   : > { %v3558_v63 = vpop.xlane.xlu1 %3557 }
 0x80d   : > { %5577 = vpow2.f32 %v3601_v10  ;;  %v3587_v51 = vsub.f32 %v7808_v3, %v3558_v63 }
 0x80e   : > { %5579 = vpow2.f32 %v3202_v11 }
 0x80f   : > { %v7966_v2 = vpop.eup %5571  ;;  %v3605_v38 = vmul.f32 1.442695, %v3587_v51 }
 0x810   : > { %v7968_v58 = vpop.eup %5573  ;;  %3228 = vadd.xlane.f32.xlu1 %v7966_v2  ;;  %v3157_v61 = vpop.xlane.xlu1 %3156 }
 0x811   : > { %3230 = vadd.xlane.f32.xlu0 %v7968_v58  ;;  %v3184_v24 = vsub.f32 %v7815_v20, %v3157_v61 }
 0x813   : > { %v7972_v23 = vpop.eup %5575  ;;  %v3204_v10 = vmul.f32 1.442695, %v3184_v24 }
 0x814   : > { %3232 = vadd.xlane.f32.xlu1 %v7972_v23 }
 0x817   : > { %v7975_v22 = vpop.eup %5577 }
 0x818   : > { %v7977_v54 = vpop.eup %5579  ;;  %3633 = vadd.xlane.f32.xlu1 %v7975_v22 }
 0x819   : > { %3234 = vadd.xlane.f32.xlu0 %v7977_v54  ;;  %v3161_v18 = vpop.xlane.xlu1 %3160 }
 0x81a   : > { %v3186_v11 = vsub.f32 %v7831_v41, %v3161_v18 }
 0x81e   : > { %v3562_v50 = vpop.xlane.xlu1 %3561 }
 0x821   : > { %v3556_v57 = vpop.xlane.xlu0 %3555 }
 0x822   : > { %v3586_v6 = vsub.f32 %v7846_v29, %v3556_v57  ;;  %v7983_v48 = vpop.xlane.xlu1 %3565 }
 0x824   : > { %v3603_v32 = vmul.f32 1.442695, %v3586_v6  ;;  %v3208_v6 = vmul.f32 1.442695, %v3186_v11 }
 0x825   : > { %v3560_v36 = vpop.xlane.xlu0 %3559 }
 0x826   : > { %5581 = vpow2.f32 %v3603_v32  ;;  %v3588_v21 = vsub.f32 %v7855_v25, %v3560_v36  ;;  %v7990_v34 = vpop.xlane.xlu1 %3164  ;;  %v3589_v32 = vsub.f32 %v7840_v53, %v3562_v50 }
 0x827   : > { %5583 = vpow2.f32 %v3605_v38 }
 0x828   : > { %v3607_v19 = vmul.f32 1.442695, %v3588_v21  ;;  %v3609_v41 = vmul.f32 1.442695, %v3589_v32 }
 0x829   : > { %v7986_v1 = vpop.xlane.xlu0 %3158  ;;  %3302 = vrot.lane.b32.xlu1 %v9171_v47, %s5792_s11 }
 0x82a   : > { %5585 = vpow2.f32 %v3607_v19 }
 0x82b   : > { %5587 = vpow2.f32 %v3204_v10 }
 0x82c   : > { %5589 = vpow2.f32 %v3208_v6 }
 0x82d   : > { %v7992_v3 = vpop.xlane.xlu0 %3162  ;;  %3304 = vrot.lane.b32.xlu1 %v9170_v60, %s5792_s11  ;;  %5591 = vpow2.f32 %v3609_v41 }
 0x82f   : > { %v7996_v29 = vpop.xlane.xlu1 %3168 }
 0x830   : > { %v7998_v9 = vpop.eup %5581 }
 0x831   : > { %v8000_v25 = vpop.xlane.xlu0 %3563  ;;  %3635 = vadd.xlane.f32.xlu0 %v7998_v9  ;;  %3709 = vrot.lane.b32.xlu1 %v9170_v60, %s5793_s12  ;;  %v8005_v13 = vpop.eup %5583 }
 0x832   : > { %9344 = vst [vmem:[#allocation27_spill] sm:$0xff] %v8005_v13 }
 0x834   : > { %v8007_v16 = vpop.xlane.xlu1 %3569  ;;  %v8012_v59 = vpop.eup %5585 }
 0x835   : > { %v8009_v27 = vpop.xlane.xlu0 %3567  ;;  %3637 = vadd.xlane.f32.xlu0 %v8005_v13  ;;  %9345 = vst [vmem:[#allocation14_spill] sm:$0xff] %v8012_v59  ;;  %v8058_v10 = vpop.eup %5587 }
 0x838   : > { %v8017_v49 = vpop.xlane.xlu1 %3573 }
 0x839   : > { %v8014_v46 = vpop.xlane.xlu0 %3166  ;;  %3639 = vadd.xlane.f32.xlu0 %v8012_v59  ;;  %v3187_v59 = vsub.f32 %v7869_v4, %v7992_v3  ;;  %v3592_v4 = vsub.f32 %v7892_v17, %v8009_v27  ;;  %v3188_v27 = vsub.f32 %v7858_v31, %v7990_v34 }
 0x83c   : > { %v8021_v0 = vpop.xlane.xlu1 %3172 }
 0x83d   : > { %v8019_v42 = vpop.xlane.xlu0 %3170 }
 0x841   : > { %v8023_v60 = vpop.xlane.xlu0 %3571 }
 0x845   : > { %v8026_v39 = vpop.xlane.xlu0 %3575  ;;  %v8028_v44 = vpop.xlane.xlu1 %3176 }
 0x849   : > { %v8031_v63 = vpop.xlane.xlu0 %3174 }
 0x84a   : > { %v8033_v57 = vpop.f32.mrb[48].mxu0  ;;  %v8035_v51 = vpop.xlane.xlu1 %3577 }
 0x84b   : > { %9346 = vst [vmem:[#allocation28_spill] sm:$0xff] %v8033_v57  ;;  %v8038_v36 = vpop.f32.mrb[49].mxu0 }
 0x84c   : > { %9347 = vst [vmem:[#allocation24_spill] sm:$0xff] %v8038_v36  ;;  %v8040_v20 = vpop.f32.mrb[50].mxu0 }
 0x84d   : > { %v8042_v61 = vpop.f32.mrb[51].mxu0  ;;  %v8044_v38 = vpop.xlane.xlu0 %3178 }
 0x84e   : > { %v8046_v21 = vpop.xlane.xlu1 %3581 }
 0x84f   : > { %3707 = vrot.lane.b32.xlu0 %v9171_v47, %s5793_s12  ;;  %v8065_v47 = vpop.eup %5589 }
 0x850   : > { %v8076_v57 = vpop.eup %5591 }
 0x851   : > { %v8050_v18 = vpop.xlane.xlu0 %3579  ;;  %9354 = vst [vmem:[#allocation102_spill] sm:$0xff] %v8076_v57 }
 0x852   : > { %v8052_v19 = vpop.f32.mrb[52].mxu0  ;;  %v3301_v53 = vpop.permute.xlu1 %3300 }
 0x853   : > { %9348 = vst [vmem:[#allocation30_spill] sm:$0xff] %v8052_v19  ;;  %v8054_v50 = vpop.f32.mrb[53].mxu0  ;;  %4985 = vmatprep.subr.bf16.mxu1 %v3301_v53  ;;  %v3185_v19 = vsub.f32 %v7865_v43, %v7986_v1  ;;  %v3590_v43 = vsub.f32 %v7883_v33, %v8000_v25  ;;  %v3615_v33 = vmul.f32 1.442695, %v3592_v4 }
 0x854   : > { %9349 = vst [vmem:[#allocation20_spill] sm:$0xff] %v8054_v50  ;;  %v8056_v24 = vpop.f32.mrb[54].mxu0  ;;  %4986 = vmatpush3.bf16.msra.mxu1 %v3301_v53 }
 0x855   : > { %9350 = vst [vmem:[#allocation26_spill] sm:$0xff] %v8056_v24  ;;  %v8060_v11 = vpop.f32.mrb[55].mxu0  ;;  %v8062_v6 = vpop.xlane.xlu0 %3583  ;;  %3236 = vadd.xlane.f32.xlu1 %v8058_v10  ;;  %v3206_v13 = vmul.f32 1.442695, %v3185_v19  ;;  %v3210_v24 = vmul.f32 1.442695, %v3187_v59 }
 0x856   : > { %v3611_v19 = vmul.f32 1.442695, %v3590_v43  ;;  %v3212_v59 = vmul.f32 1.442695, %v3188_v27 }
 0x857   : > { %5593 = vpow2.f32 %v3206_v13 }
 0x858   : > { %5595 = vpow2.f32 %v3210_v24  ;;  %v3593_v24 = vsub.f32 %v7888_v14, %v8007_v16  ;;  %v3191_v16 = vsub.f32 %v7910_v56, %v8019_v42 }
 0x859   : > { %v3706_v32 = vpop.permute.xlu0 %3705  ;;  %3240 = vadd.xlane.f32.xlu1 %v8065_v47  ;;  %5597 = vpow2.f32 %v3611_v19 }
 0x85a   : > { %v8068_v41 = vpop.f32.mrb[56].mxu0  ;;  %5017 = vmatprep.subr.bf16.mxu0 %v3706_v32  ;;  %v3617_v43 = vmul.f32 1.442695, %v3593_v24  ;;  %v3218_v27 = vmul.f32 1.442695, %v3191_v16  ;;  %v3595_v24 = vsub.f32 %v7897_v15, %v8017_v49  ;;  %v9356_v15 = vld [vmem:[#allocation23_spill] sm:$0xff] }
 0x85b   : > { %9351 = vst [vmem:[#allocation59_spill] sm:$0xff] %v8068_v41  ;;  %v8072_v53 = vpop.f32.mrb[57].mxu0  ;;  %5018 = vmatpush3.bf16.msra.mxu0 %v3706_v32 }
 0x85c   : > { %9352 = vst [vmem:[#allocation61_spill] sm:$0xff] %v8072_v53  ;;  %v8074_v50 = vpop.f32.mrb[58].mxu0 }
 0x85d   : > { %9353 = vst [vmem:[#allocation62_spill] sm:$0xff] %v8074_v50  ;;  %v8078_v36 = vpop.f32.mrb[59].mxu0  ;;  %3641 = vadd.xlane.f32.xlu1 %v8076_v57  ;;  %v3591_v57 = vsub.f32 %v7849_v55, %v7983_v48  ;;  %v9355_v55 = vld [vmem:[#allocation25_spill] sm:$0xff] }
 0x85f   : > { %v3613_v50 = vmul.f32 1.442695, %v3591_v57  ;;  %v3190_v57 = vsub.f32 %v7875_v62, %v7996_v29  ;;  %v3189_v62 = vsub.f32 %v7901_v30, %v8014_v46 }
 0x861   : > { %v8097_v3 = vpop.eup %5593  ;;  %5599 = vpow2.f32 %v3613_v50  ;;  %v3216_v50 = vmul.f32 1.442695, %v3190_v57 }
 0x862   : > { %v8083_v41 = vpop.f32.mrb[60].mxu0  ;;  %v8102_v25 = vpop.eup %5595  ;;  %5601 = vpow2.f32 %v3615_v33 }
 0x863   : > { %v8087_v1 = vpop.f32.mrb[61].mxu0  ;;  %v8107_v48 = vpop.eup %5597  ;;  %5603 = vpow2.f32 %v3212_v59  ;;  %v3594_v59 = vsub.f32 %v7918_v52, %v8023_v60  ;;  %v3596_v52 = vsub.f32 %v7924_v7, %v8026_v39  ;;  %v9357_v60 = vld [vmem:[#allocation31_spill] sm:$0xff] }
 0x864   : > { %v8089_v32 = vpop.f32.mrb[62].mxu0  ;;  %5605 = vpow2.f32 %v3216_v50 }
 0x865   : > { %v8091_v53 = vpop.f32.mrb[63].mxu0  ;;  %5607 = vpow2.f32 %v3617_v43  ;;  %v3619_v43 = vmul.f32 1.442695, %v3594_v59 }
 0x86b   : > { %v8112_v17 = vpop.eup %5599 }
 0x86c   : > { %v8115_v13 = vpop.eup %5601 }
 0x86d   : > { %v8126_v19 = vpop.eup %5603 }
 0x86e   : > { %3238 = vadd.xlane.f32.xlu0 %v8097_v3  ;;  %3306 = vrot.lane.b32.xlu1 %v9281_v37, %s5792_s11  ;;  %v8129_v34 = vpop.eup %5605 }
 0x86f   : > { %v8134_v14 = vpop.eup %5607 }
 0x872   : > { %3242 = vadd.xlane.f32.xlu0 %v8102_v25  ;;  %3308 = vrot.lane.b32.xlu1 %v9355_v55, %s5792_s11 }
 0x876   : > { %3643 = vadd.xlane.f32.xlu0 %v8107_v48  ;;  %3713 = vrot.lane.b32.xlu1 %v9355_v55, %s5793_s12 }
 0x87a   : > { %3645 = vadd.xlane.f32.xlu0 %v8112_v17 }
 0x87e   : > { %3647 = vadd.xlane.f32.xlu0 %v8115_v13 }
 0x894   : > { %3711 = vrot.lane.b32.xlu0 %v9281_v37, %s5793_s12  ;;  %v3214_v37 = vmul.f32 1.442695, %v3189_v62 }
 0x89a   : > { %3244 = vadd.xlane.f32.xlu1 %v8126_v19 }
 0x89d   : > { %v3229_v31 = vpop.xlane.xlu1 %3228 }
 0x89e   : > { %v3231_v4 = vpop.xlane.xlu0 %3230  ;;  %5609 = vrcp.f32 %v3229_v31  ;;  %3248 = vadd.xlane.f32.xlu1 %v8129_v34  ;;  %v3621_v31 = vmul.f32 1.442695, %v3595_v24  ;;  %v3192_v24 = vsub.f32 %v7906_v5, %v8021_v0 }
 0x89f   : > { %5611 = vrcp.f32 %v3231_v4 }
 0x8a0   : > { %5613 = vpow2.f32 %v3214_v37 }
 0x8a1   : > { %v8136_v29 = vpop.xlane.xlu1 %3232  ;;  %5615 = vpow2.f32 %v3218_v27 }
 0x8a2   : > { %3649 = vadd.xlane.f32.xlu1 %v8134_v14  ;;  %5617 = vpow2.f32 %v3619_v43  ;;  %v3220_v43 = vmul.f32 1.442695, %v3192_v24 }
 0x8a3   : > { %5619 = vpow2.f32 %v3621_v31 }
 0x8a5   : > { %v3634_v33 = vpop.xlane.xlu1 %3633 }
 0x8a6   : > { %v8161_v7 = vpop.xlane.xlu0 %3234 }
 0x8a8   : > { %v5610_v55 = vpop.eup %5609 }
 0x8a9   : > { %v5612_v57 = vpop.eup %5611  ;;  %v3276_v30 = vmul.f32 %v5610_v55, %v7966_v2  ;;  %v3303_v46 = vpop.permute.xlu1 %3302 }
 0x8aa   : > { %v3277_v50 = vmul.f32 %v5612_v57, %v7968_v58  ;;  %4987 = vmatprep.subr.bf16.mxu1 %v3303_v46  ;;  %v8149_v2 = vpop.eup %5613  ;;  %v3623_v58 = vmul.f32 1.442695, %v3596_v52  ;;  %v3195_v52 = vsub.f32 %v7942_v40, %v8044_v38  ;;  %v3600_v40 = vsub.f32 %v7954_v45, %v8062_v6  ;;  %v9359_v45 = vld [vmem:[#allocation43_spill] sm:$0xff] }
 0x8ab   : > { %4988 = vmatpush3.bf16.msra.mxu1 %v3303_v46  ;;  %v8154_v49 = vpop.eup %5615 }
 0x8ac   : > { %v3292_v56 = vpack.c.bf16 %v3277_v50, %v3276_v30  ;;  %5621 = vpow2.f32 %v3623_v58  ;;  %v8159_v4 = vpop.eup %5617 }
 0x8ad   : > { %v3305_v42 = vpop.permute.xlu1 %3304  ;;  %5623 = vrcp.f32 %v3634_v33  ;;  %v8166_v39 = vpop.eup %5619 }
 0x8ae   : > { %5001 = vmatprep.mubr.bf16.mxu1 %v3292_v56  ;;  %4989 = vmatprep.subr.bf16.mxu1 %v3305_v42  ;;  %v3194_v56 = vsub.f32 %v7927_v26, %v8028_v44  ;;  %v3193_v26 = vsub.f32 %v7933_v12, %v8031_v63  ;;  %v3599_v12 = vsub.f32 %v7945_v28, %v8046_v21 }
 0x8af   : > { %4990 = vmatpush3.bf16.msra.mxu1 %v3305_v42 }
 0x8b0   : > { %v3224_v42 = vmul.f32 1.442695, %v3194_v56  ;;  %v9362_v56 = vld [vmem:[#allocation34_spill] sm:$0xff] }
 0x8b1   : > { %v3710_v46 = vpop.permute.xlu1 %3709 }
 0x8b3   : > { %3246 = vadd.xlane.f32.xlu0 %v8149_v2  ;;  %3310 = vrot.lane.b32.xlu1 %v9356_v15, %s5792_s11 }
 0x8b6   : > { %v8169_v37 = vpop.eup %5621 }
 0x8b7   : > { %3250 = vadd.xlane.f32.xlu0 %v8154_v49  ;;  %3312 = vrot.lane.b32.xlu1 %v9357_v60, %s5792_s11  ;;  %v5624_v27 = vpop.eup %5623 }
 0x8b8   : > { %v3681_v30 = vmul.f32 %v5624_v27, %v7975_v22  ;;  %v3597_v22 = vsub.f32 %v7936_v35, %v8035_v51  ;;  %v3222_v51 = vmul.f32 1.442695, %v3193_v26 }
 0x8bb   : > { %3651 = vadd.xlane.f32.xlu0 %v8159_v4  ;;  %3717 = vrot.lane.b32.xlu1 %v9357_v60, %s5793_s12  ;;  %v3598_v60 = vsub.f32 %v7950_v8, %v8050_v18  ;;  %v3631_v8 = vmul.f32 1.442695, %v3600_v40  ;;  %v9358_v18 = vld [vmem:[#allocation29_spill] sm:$0xff]  ;;  %v9372_v40 = vld [vmem:[#allocation51_spill] sm:$0xff] }
 0x8bd   : > { %v3627_v63 = vmul.f32 1.442695, %v3598_v60  ;;  %v9367_v60 = vld [vmem:[#allocation37_spill] sm:$0xff] }
 0x8be   : > { %v3636_v62 = vpop.xlane.xlu0 %3635 }
 0x8bf   : > { %5625 = vrcp.f32 %v3636_v62  ;;  %3653 = vadd.xlane.f32.xlu0 %v8166_v39 }
 0x8c0   : > { %5627 = vpow2.f32 %v3220_v43 }
 0x8c1   : > { %5629 = vpow2.f32 %v3224_v42 }
 0x8c2   : > { %v8171_v16 = vpop.xlane.xlu0 %3637 }
 0x8c3   : > { %3655 = vadd.xlane.f32.xlu0 %v8169_v37 }
 0x8c6   : > { %v8174_v55 = vpop.xlane.xlu0 %3639 }
 0x8c9   : > { %v5626_v59 = vpop.eup %5625 }
 0x8ca   : > { %v3708_v57 = vpop.permute.xlu0 %3707  ;;  %v3682_v33 = vmul.f32 %v5626_v59, %v7998_v9  ;;  %v3625_v9 = vmul.f32 1.442695, %v3597_v22  ;;  %v8186_v31 = vpop.eup %5627  ;;  %v3629_v59 = vmul.f32 1.442695, %v3599_v12  ;;  %v9363_v22 = vld [vmem:[#allocation36_spill] sm:$0xff]  ;;  %v9369_v12 = vld [vmem:[#allocation19_spill] sm:$0xff] }
 0x8cb   : > { %5019 = vmatprep.subr.bf16.mxu0 %v3708_v57  ;;  %v8189_v5 = vpop.eup %5629 }
 0x8cc   : > { %5020 = vmatpush3.bf16.msra.mxu0 %v3708_v57  ;;  %v3697_v50 = vpack.c.bf16 %v3682_v33, %v3681_v30  ;;  %5631 = vpow2.f32 %v3625_v9  ;;  %v9360_v30 = vld [vmem:[#allocation42_spill] sm:$0xff] }
 0x8cd   : > { %5021 = vmatprep.subr.bf16.mxu0 %v3710_v46  ;;  %5633 = vpow2.f32 %v3222_v51  ;;  %v9364_v51 = vld [vmem:[#allocation11_spill] sm:$0xff] }
 0x8ce   : > { %5033 = vmatprep.mubr.bf16.mxu0 %v3697_v50  ;;  %v9361_v50 = vld [vmem:[#allocation54_spill] sm:$0xff] }
 0x8d0   : > { %5022 = vmatpush3.bf16.msra.mxu0 %v3710_v46 }
 0x8d6   : > { %v8196_v35 = vpop.eup %5631 }
 0x8d7   : > { %v8211_v38 = vpop.eup %5633 }
 0x8d9   : > { %3715 = vrot.lane.b32.xlu0 %v9356_v15, %s5793_s12  ;;  %v3226_v15 = vmul.f32 1.442695, %v3195_v52  ;;  %v9365_v52 = vld [vmem:[#allocation49_spill] sm:$0xff] }
 0x8db   : > { %5635 = vpow2.f32 %v3226_v15  ;;  %v9366_v15 = vld [vmem:[#allocation46_spill] sm:$0xff] }
 0x8dc   : > { %5637 = vpow2.f32 %v3627_v63  ;;  %v9370_v63 = vld [vmem:[#allocation50_spill] sm:$0xff] }
 0x8dd   : > { %5639 = vpow2.f32 %v3629_v59 }
 0x8de   : > { %5641 = vpow2.f32 %v3631_v8  ;;  %v9373_v8 = vld [vmem:[#allocation47_spill] sm:$0xff] }
 0x8df   : > { %3252 = vadd.xlane.f32.xlu1 %v8186_v31  ;;  %5643 = vrcp.f32 %v8161_v7 }
 0x8e2   : > { %v8191_v0 = vpop.xlane.xlu1 %3236 }
 0x8e3   : > { %3256 = vadd.xlane.f32.xlu1 %v8189_v5 }
 0x8e5   : > { %v8216_v28 = vpop.eup %5635 }
 0x8e6   : > { %v8198_v44 = vpop.xlane.xlu1 %3240  ;;  %v8223_v6 = vpop.eup %5637 }
 0x8e7   : > { %3657 = vadd.xlane.f32.xlu1 %v8196_v35  ;;  %v8230_v33 = vpop.eup %5639 }
 0x8e8   : > { %v8237_v24 = vpop.eup %5641 }
 0x8ea   : > { %v8203_v58 = vpop.xlane.xlu1 %3641 }
 0x8ee   : > { %v3307_v62 = vpop.permute.xlu1 %3306 }
 0x8ef   : > { %4991 = vmatprep.subr.bf16.mxu1 %v3307_v62 }
 0x8f0   : > { %4992 = vmatpush3.bf16.msra.mxu1 %v3307_v62  ;;  %v9368_v62 = vld [vmem:[#allocation48_spill] sm:$0xff] }
 0x8f2   : > { %v3309_v27 = vpop.permute.xlu1 %3308 }
 0x8f3   : > { %4993 = vmatprep.subr.bf16.mxu1 %v3309_v27 }
 0x8f4   : > { %4994 = vmatpush3.bf16.msra.mxu1 %v3309_v27  ;;  %v9371_v27 = vld [vmem:[#allocation39_spill] sm:$0xff] }
 0x8f6   : > { %v3714_v26 = vpop.permute.xlu1 %3713 }
 0x8f8   : > { %3254 = vadd.xlane.f32.xlu0 %v8211_v38  ;;  %3314 = vrot.lane.b32.xlu1 %v9358_v18, %s5792_s11  ;;  %s4462_s11 = sshll.u32 %s8699_s9, 4  ;;  %s8823_s11 = int_to_ptr.vmem [resolvable:$true] %s4462_s11 }
 0x8fb   : > { %v8218_v21 = vpop.xlane.xlu0 %3238 }
 0x8fc   : > { %3258 = vadd.xlane.f32.xlu0 %v8216_v28  ;;  %3842 = vrot.lane.b32.xlu1 %v9359_v45, %s5794_s13  ;;  %v9374_v45 = vld [vmem:[#allocation56_spill] sm:$0xff]  ;;  %5645 = vrcp.f32 %v8218_v21 }
 0x8fd   : > { %5647 = vrcp.f32 %v8136_v29  ;;  %v5644_v29 = vpop.eup %5643 }
 0x8fe   : > { %5649 = vrcp.f32 %v8191_v0  ;;  %v9410_v0 = vld [vmem:[#allocation100_spill] sm:$0xff] }
 0x8ff   : > { %v8225_v57 = vpop.xlane.xlu0 %3242 }
 0x900   : > { %3659 = vadd.xlane.f32.xlu0 %v8223_v6  ;;  %3844 = vrot.lane.b32.xlu1 %v9360_v30, %s5794_s13  ;;  %v9375_v30 = vld [vmem:[#allocation40_spill] sm:$0xff]  ;;  %5651 = vrcp.f32 %v8225_v57 }
 0x903   : > { %v8232_v46 = vpop.xlane.xlu0 %3643 }
 0x904   : > { %3661 = vadd.xlane.f32.xlu0 %v8230_v33  ;;  %3846 = vrot.lane.b32.xlu1 %v9361_v50, %s5794_s13 }
 0x906   : > { %v5646_v21 = vpop.eup %5645 }
 0x907   : > { %v8239_v43 = vpop.xlane.xlu0 %3645 }
 0x908   : > { %3663 = vadd.xlane.f32.xlu0 %v8237_v24  ;;  %3848 = vrot.lane.b32.xlu1 %v9362_v56, %s5794_s13  ;;  %v9376_v56 = vld [vmem:[#allocation38_spill] sm:$0xff] }
 0x90b   : > { %v8244_v42 = vpop.xlane.xlu0 %3647 }
 0x90c   : > { %3852 = vrot.lane.b32.xlu1 %v9363_v22, %s5794_s13  ;;  %v9377_v22 = vld [vmem:[#allocation53_spill] sm:$0xff] }
 0x90f   : > { %v3712_v9 = vpop.permute.xlu0 %3711 }
 0x910   : > { %5023 = vmatprep.subr.bf16.mxu0 %v3712_v9  ;;  %3856 = vrot.lane.b32.xlu1 %v9364_v51, %s5794_s13  ;;  %v9379_v51 = vld [vmem:[#allocation44_spill] sm:$0xff] }
 0x911   : > { %5024 = vmatpush3.bf16.msra.mxu0 %v3712_v9 }
 0x912   : > { %5025 = vmatprep.subr.bf16.mxu0 %v3714_v26 }
 0x914   : > { %3860 = vrot.lane.b32.xlu1 %v9365_v52, %s5794_s13 }
 0x915   : > { %5026 = vmatpush3.bf16.msra.mxu0 %v3714_v26  ;;  %v9378_v26 = vld [vmem:[#allocation65_spill] sm:$0xff] }
 0x918   : > { %3864 = vrot.lane.b32.xlu1 %v9366_v15, %s5794_s13  ;;  %v9380_v15 = vld [vmem:[#allocation75_spill] sm:$0xff] }
 0x91c   : > { %3868 = vrot.lane.b32.xlu1 %v9367_v60, %s5794_s13  ;;  %v9381_v60 = vld [vmem:[#allocation45_spill] sm:$0xff] }
 0x91e   : > { %3719 = vrot.lane.b32.xlu0 %v9358_v18, %s5793_s12 }
 0x920   : > { %3872 = vrot.lane.b32.xlu1 %v9368_v62, %s5794_s13  ;;  %v9382_v62 = vld [vmem:[#allocation78_spill] sm:$0xff] }
 0x922   : > { %3850 = vrot.lane.b32.xlu0 %v9369_v12, %s5794_s13  ;;  %v9383_v12 = vld [vmem:[#allocation52_spill] sm:$0xff] }
 0x924   : > { %3908 = vrot.lane.b32.xlu1 %v9370_v63, %s5795_s14 }
 0x926   : > { %3854 = vrot.lane.b32.xlu0 %v9371_v27, %s5794_s13  ;;  %v9384_v27 = vld [vmem:[#allocation81_spill] sm:$0xff] }
 0x927   : > { %v8266_v59 = vpop.xlane.xlu1 %3244 }
 0x928   : > { %3912 = vrot.lane.b32.xlu1 %v9372_v40, %s5795_s14  ;;  %v9385_v40 = vld [vmem:[#allocation41_spill] sm:$0xff] }
 0x92a   : > { %3858 = vrot.lane.b32.xlu0 %v9373_v8, %s5794_s13 }
 0x92b   : > { %v8272_v18 = vpop.xlane.xlu1 %3248 }
 0x92c   : > { %3916 = vrot.lane.b32.xlu1 %v9374_v45, %s5795_s14  ;;  %v9386_v45 = vld [vmem:[#allocation67_spill] sm:$0xff] }
 0x92e   : > { %3862 = vrot.lane.b32.xlu0 %v9375_v30, %s5794_s13  ;;  %v9387_v30 = vld [vmem:[#allocation35_spill] sm:$0xff] }
 0x92f   : > { %v8278_v50 = vpop.xlane.xlu1 %3649 }
 0x930   : > { %3920 = vrot.lane.b32.xlu1 %v9376_v56, %s5795_s14 }
 0x932   : > { %3866 = vrot.lane.b32.xlu0 %v9377_v22, %s5794_s13  ;;  %v9388_v22 = vld [vmem:[#allocation57_spill] sm:$0xff] }
 0x933   : > { %v3311_v9 = vpop.permute.xlu1 %3310 }
 0x934   : > { %4995 = vmatprep.subr.bf16.mxu1 %v3311_v9  ;;  %3924 = vrot.lane.b32.xlu1 %v9378_v26, %s5795_s14 }
 0x935   : > { %4996 = vmatpush3.bf16.msra.mxu1 %v3311_v9  ;;  %v9389_v9 = vld [vmem:[#allocation63_spill] sm:$0xff] }
 0x936   : > { %3870 = vrot.lane.b32.xlu0 %v9379_v51, %s5794_s13  ;;  %v9390_v51 = vld [vmem:[#allocation60_spill] sm:$0xff] }
 0x937   : > { %v3313_v52 = vpop.permute.xlu1 %3312 }
 0x938   : > { %4997 = vmatprep.subr.bf16.mxu1 %v3313_v52  ;;  %3928 = vrot.lane.b32.xlu1 %v9380_v15, %s5795_s14 }
 0x939   : > { %4998 = vmatpush3.bf16.msra.mxu1 %v3313_v52  ;;  %v9391_v52 = vld [vmem:[#allocation68_spill] sm:$0xff] }
 0x93a   : > { %3906 = vrot.lane.b32.xlu0 %v9381_v60, %s5795_s14  ;;  %v9392_v60 = vld [vmem:[#allocation84_spill] sm:$0xff] }
 0x93c   : > { %3932 = vrot.lane.b32.xlu1 %v9382_v62, %s5795_s14  ;;  %v9393_v62 = vld [vmem:[#allocation72_spill] sm:$0xff] }
 0x93e   : > { %3910 = vrot.lane.b32.xlu0 %v9383_v12, %s5795_s14 }
 0x940   : > { %v3247_v63 = vpop.xlane.xlu0 %3246  ;;  %3936 = vrot.lane.b32.xlu1 %v9384_v27, %s5795_s14  ;;  %v9394_v27 = vld [vmem:[#allocation17_spill] sm:$0xff] }
 0x941   : > { %5653 = vrcp.f32 %v3247_v63  ;;  %v9412_v63 = vld [vmem:[#allocation99_spill] sm:$0xff] }
 0x942   : > { %3914 = vrot.lane.b32.xlu0 %v9385_v40, %s5795_s14  ;;  %v3718_v40 = vpop.permute.xlu1 %3717  ;;  %5655 = vrcp.f32 %v8198_v44  ;;  %v3281_v44 = vmul.f32 %v5646_v21, %v8097_v3 }
 0x943   : > { %5657 = vrcp.f32 %v8266_v59 }
 0x944   : > { %v3251_v8 = vpop.xlane.xlu0 %3250  ;;  %3972 = vrot.lane.b32.xlu1 %v9386_v45, %s5796_s15  ;;  %v9395_v45 = vld [vmem:[#allocation79_spill] sm:$0xff] }
 0x945   : > { %5659 = vrcp.f32 %v3251_v8 }
 0x946   : > { %3918 = vrot.lane.b32.xlu0 %v9387_v30, %s5795_s14  ;;  %v9396_v30 = vld [vmem:[#allocation13_spill] sm:$0xff]  ;;  %5661 = vrcp.f32 %v8272_v18  ;;  %v9416_v18 = vld [vmem:[#allocation18_spill] sm:$0xff] }
 0x948   : > { %v8304_v56 = vpop.xlane.xlu0 %3651  ;;  %3976 = vrot.lane.b32.xlu1 %v9388_v22, %s5796_s15  ;;  %v9397_v22 = vld [vmem:[#allocation80_spill] sm:$0xff] }
 0x94a   : > { %3922 = vrot.lane.b32.xlu0 %v9389_v9, %s5795_s14  ;;  %v9398_v9 = vld [vmem:[#allocation94_spill] sm:$0xff] }
 0x94c   : > { %v8310_v26 = vpop.xlane.xlu0 %3653  ;;  %3980 = vrot.lane.b32.xlu1 %v9390_v51, %s5796_s15  ;;  %v9399_v51 = vld [vmem:[#allocation64_spill] sm:$0xff] }
 0x94e   : > { %3926 = vrot.lane.b32.xlu0 %v9391_v52, %s5795_s14  ;;  %v9400_v52 = vld [vmem:[#allocation93_spill] sm:$0xff] }
 0x950   : > { %v8316_v15 = vpop.xlane.xlu0 %3655  ;;  %3984 = vrot.lane.b32.xlu1 %v9392_v60, %s5796_s15  ;;  %v9401_v60 = vld [vmem:[#allocation71_spill] sm:$0xff] }
 0x952   : > { %3930 = vrot.lane.b32.xlu0 %v9393_v62, %s5795_s14  ;;  %v9402_v62 = vld [vmem:[#allocation12_spill] sm:$0xff] }
 0x954   : > { %v3716_v12 = vpop.permute.xlu0 %3715  ;;  %3988 = vrot.lane.b32.xlu1 %v9394_v27, %s5796_s15  ;;  %v9404_v27 = vld [vmem:[#allocation97_spill] sm:$0xff] }
 0x955   : > { %5027 = vmatprep.subr.bf16.mxu0 %v3716_v12 }
 0x956   : > { %5028 = vmatpush3.bf16.msra.mxu0 %v3716_v12  ;;  %3934 = vrot.lane.b32.xlu0 %v9395_v45, %s5795_s14  ;;  %v9403_v12 = vld [vmem:[#allocation83_spill] sm:$0xff] }
 0x957   : > { %5029 = vmatprep.subr.bf16.mxu0 %v3718_v40 }
 0x958   : > { %3992 = vrot.lane.b32.xlu1 %v9396_v30, %s5796_s15  ;;  %v9406_v30 = vld [vmem:[#allocation98_spill] sm:$0xff] }
 0x95a   : > { %5030 = vmatpush3.bf16.msra.mxu0 %v3718_v40  ;;  %3970 = vrot.lane.b32.xlu0 %v9397_v22, %s5796_s15  ;;  %v9405_v40 = vld [vmem:[#allocation85_spill] sm:$0xff]  ;;  %v9407_v22 = vld [vmem:[#allocation58_spill] sm:$0xff] }
 0x95c   : > { %3996 = vrot.lane.b32.xlu1 %v9398_v9, %s5796_s15 }
 0x95e   : > { %3974 = vrot.lane.b32.xlu0 %v9399_v51, %s5796_s15  ;;  %v9408_v51 = vld [vmem:[#allocation10_spill] sm:$0xff] }
 0x960   : > { %4000 = vrot.lane.b32.xlu1 %v9400_v52, %s5796_s15  ;;  %v9409_v52 = vld [vmem:[#allocation92_spill] sm:$0xff] }
 0x962   : > { %3978 = vrot.lane.b32.xlu0 %v9401_v60, %s5796_s15  ;;  %v9411_v60 = vld [vmem:[#allocation91_spill] sm:$0xff] }
 0x964   : > { %4036 = vrot.lane.b32.xlu1 %v9402_v62, %s5797_s16  ;;  %v5648_v62 = vpop.eup %5647 }
 0x966   : > { %3982 = vrot.lane.b32.xlu0 %v9403_v12, %s5796_s15  ;;  %v5650_v12 = vpop.eup %5649 }
 0x967   : > { %v3280_v59 = vmul.f32 %v5650_v12, %v8058_v10 }
 0x968   : > { %4040 = vrot.lane.b32.xlu1 %v9404_v27, %s5797_s16  ;;  %v3279_v27 = vmul.f32 %v5644_v29, %v7977_v54 }
 0x969   : > { %v3294_v3 = vpack.c.bf16 %v3281_v44, %v3280_v59 }
 0x96a   : > { %3986 = vrot.lane.b32.xlu0 %v9405_v40, %s5796_s15  ;;  %v3278_v40 = vmul.f32 %v5648_v62, %v7972_v23  ;;  %v9415_v23 = vld [vmem:[#allocation95_spill] sm:$0xff]  ;;  %v9417_v62 = vld [vmem:[#allocation8_spill] sm:$0xff] }
 0x96c   : > { %v3253_v45 = vpop.xlane.xlu1 %3252  ;;  %4044 = vrot.lane.b32.xlu1 %v9406_v30, %s5797_s16  ;;  %v9413_v30 = vld [vmem:[#allocation96_spill] sm:$0xff] }
 0x96d   : > { %5663 = vrcp.f32 %v3253_v45 }
 0x96e   : > { %3990 = vrot.lane.b32.xlu0 %v9407_v22, %s5796_s15  ;;  %v3293_v22 = vpack.c.bf16 %v3279_v27, %v3278_v40 }
 0x970   : > { %v3257_v9 = vpop.xlane.xlu1 %3256  ;;  %4048 = vrot.lane.b32.xlu1 %v9408_v51, %s5797_s16  ;;  %v5652_v51 = vpop.eup %5651 }
 0x971   : > { %v5654_v29 = vpop.eup %5653  ;;  %v3283_v10 = vmul.f32 %v5652_v51, %v8102_v25  ;;  %v9420_v51 = vld [vmem:[#allocation15_spill] sm:$0xff] }
 0x972   : > { %3994 = vrot.lane.b32.xlu0 %v9409_v52, %s5796_s15  ;;  %v9414_v52 = vld [vmem:[#allocation101_spill] sm:$0xff] }
 0x974   : > { %v8360_v7 = vpop.xlane.xlu1 %3657  ;;  %4052 = vrot.lane.b32.xlu1 %v9410_v0, %s5797_s16  ;;  %v5656_v0 = vpop.eup %5655 }
 0x975   : > { %v5658_v8 = vpop.eup %5657  ;;  %v3282_v12 = vmul.f32 %v5656_v0, %v8065_v47 }
 0x976   : > { %3998 = vrot.lane.b32.xlu0 %v9411_v60, %s5796_s15  ;;  %v3285_v60 = vmul.f32 %v5654_v29, %v8149_v2  ;;  %v3284_v27 = vmul.f32 %v5658_v8, %v8126_v19  ;;  %v9418_v2 = vld [vmem:[#allocation9_spill] sm:$0xff]  ;;  %v9422_v29 = vld [vmem:[#allocation22_spill] sm:$0xff]  ;;  %s8819_s15 = scalar_lea.hbm %s8875_s5, %s4595_s10 }
 0x978   : > { %v3315_v57 = vpop.permute.xlu1 %3314  ;;  %4056 = vrot.lane.b32.xlu1 %v9412_v63, %s5797_s16  ;;  %v5660_v63 = vpop.eup %5659  ;;  %v3296_v40 = vpack.c.bf16 %v3285_v60, %v3284_v27 }
 0x979   : > { %4999 = vmatprep.subr.bf16.mxu1 %v3315_v57  ;;  %v3287_v47 = vmul.f32 %v5660_v63, %v8154_v49 }
 0x97a   : > { %4034 = vrot.lane.b32.xlu0 %v9413_v30, %s5797_s16  ;;  %5000 = vmatpush3.bf16.msra.mxu1 %v3315_v57  ;;  %v3295_v57 = vpack.c.bf16 %v3283_v10, %v3282_v12  ;;  %v5662_v30 = vpop.eup %5661 }
 0x97b   : > { %v3286_v59 = vmul.f32 %v5662_v30, %v8129_v34 }
 0x97c   : > { %v8376_v54 = vpop.permute.xlu1 %3842  ;;  %4060 = vrot.lane.b32.xlu1 %v9414_v52, %s5797_s16 }
 0x97d   : > { %5002 = vmatmul.mubr.bf16.vlgmr.msra.gmra.mrb[48].mxu1 %v3293_v22  ;;  %v3297_v22 = vpack.c.bf16 %v3287_v47, %v3286_v59 }
 0x97e   : > { %4038 = vrot.lane.b32.xlu0 %v9415_v23, %s5797_s16  ;;  %5005 = vmatprep.mubr.bf16.mxu1 %v3294_v3 }
 0x980   : > { %v8383_v21 = vpop.permute.xlu1 %3844  ;;  %4064 = vrot.lane.b32.xlu1 %v9416_v18, %s5797_s16 }
 0x982   : > { %4042 = vrot.lane.b32.xlu0 %v9417_v62, %s5797_s16  ;;  %v9424_v62 = vld [vmem:[#allocation14_spill] sm:$0xff] }
 0x984   : > { %v8392_v44 = vpop.permute.xlu1 %3846  ;;  %4100 = vrot.lane.b32.xlu1 %v8042_v61, %s5798_s17  ;;  %v9419_v61 = vld [vmem:[#allocation16_spill] sm:$0xff] }
 0x985   : > { %v3255_v25 = vpop.xlane.xlu0 %3254  ;;  %5006 = vmatmul.mubr.bf16.gmra.mrb[52].mxu1 %v3295_v57 }
 0x986   : > { %5665 = vrcp.f32 %v3255_v25  ;;  %4046 = vrot.lane.b32.xlu0 %v9418_v2, %s5797_s16  ;;  %5009 = vmatprep.mubr.bf16.mxu1 %v3296_v40  ;;  %v9428_v25 = vld [vmem:[#allocation102_spill] sm:$0xff] }
 0x987   : > { %5667 = vrcp.f32 %v3257_v9  ;;  %v5664_v9 = vpop.eup %5663 }
 0x988   : > { %v8399_v19 = vpop.permute.xlu1 %3848  ;;  %4104 = vrot.lane.b32.xlu1 %v8040_v20, %s5798_s17  ;;  %v3288_v52 = vmul.f32 %v5664_v9, %v8186_v31 }
 0x989   : > { %v3259_v45 = vpop.xlane.xlu0 %3258 }
 0x98a   : > { %5669 = vrcp.f32 %v3259_v45  ;;  %4050 = vrot.lane.b32.xlu0 %v9419_v61, %s5797_s16 }
 0x98b   : > { %5671 = vrcp.f32 %v8174_v55 }
 0x98c   : > { %5673 = vrcp.f32 %v8232_v46  ;;  %v8409_v49 = vpop.permute.xlu1 %3852  ;;  %4108 = vrot.lane.b32.xlu1 %v8060_v11, %s5798_s17  ;;  %v9421_v46 = vld [vmem:[#allocation26_spill] sm:$0xff] }
 0x98d   : > { %5675 = vrcp.f32 %v8171_v16  ;;  %v3660_v20 = vpop.xlane.xlu0 %3659  ;;  %5010 = vmatmul.mubr.bf16.gmra.mrb[56].mxu1 %v3297_v22 }
 0x98e   : > { %5677 = vrcp.f32 %v8203_v58  ;;  %4054 = vrot.lane.b32.xlu0 %v9420_v51, %s5797_s16  ;;  %v9430_v51 = vld [vmem:[#allocation55_spill] sm:$0xff] }
 0x98f   : > { %5679 = vrcp.f32 %v8244_v42  ;;  %v9423_v42 = vld [vmem:[#allocation21_spill] sm:$0xff] }
 0x990   : > { %v5666_v34 = vpop.eup %5665  ;;  %v8416_v55 = vpop.permute.xlu1 %3856  ;;  %4112 = vrot.lane.b32.xlu1 %v9421_v46, %s5798_s17  ;;  %5681 = vrcp.f32 %v8304_v56 }
 0x991   : > { %v8420_v16 = vpop.xlane.xlu0 %3661  ;;  %v3289_v11 = vmul.f32 %v5666_v34, %v8211_v38  ;;  %v5668_v3 = vpop.eup %5667  ;;  %5683 = vrcp.f32 %v8239_v43  ;;  %v9431_v34 = vld [vmem:[#allocation20_spill] sm:$0xff] }
 0x992   : > { %4058 = vrot.lane.b32.xlu0 %v9422_v29, %s5797_s16  ;;  %v3290_v38 = vmul.f32 %v5668_v3, %v8189_v5  ;;  %5685 = vrcp.f32 %v8278_v50  ;;  %v9427_v50 = vld [vmem:[#allocation24_spill] sm:$0xff] }
 0x993   : > { %v3298_v58 = vpack.c.bf16 %v3289_v11, %v3288_v52  ;;  %5687 = vrcp.f32 %v8316_v15  ;;  %v9429_v15 = vld [vmem:[#allocation28_spill] sm:$0xff] }
 0x994   : > { %v5670_v23 = vpop.eup %5669  ;;  %v8429_v8 = vpop.permute.xlu1 %3860  ;;  %4116 = vrot.lane.b32.xlu1 %v8078_v36, %s5798_s17  ;;  %v9425_v36 = vld [vmem:[#allocation62_spill] sm:$0xff]  ;;  %5689 = vrcp.f32 %v3660_v20 }
 0x995   : > { %v5672_v0 = vpop.eup %5671  ;;  %v3664_v31 = vpop.xlane.xlu0 %3663  ;;  %5013 = vmatprep.mubr.bf16.mxu1 %v3298_v58  ;;  %v3291_v10 = vmul.f32 %v5670_v23, %v8216_v28  ;;  %v9426_v28 = vld [vmem:[#allocation27_spill] sm:$0xff]  ;;  %5691 = vrcp.f32 %v8310_v26 }
 0x996   : > { %v5674_v18 = vpop.eup %5673  ;;  %4062 = vrot.lane.b32.xlu0 %v9423_v42, %s5797_s16  ;;  %v3684_v12 = vmul.f32 %v5672_v0, %v9424_v62  ;;  %5693 = vrcp.f32 %v8360_v7  ;;  %s5711_s16 = scalar_lea.vmem %s8823_s11, 2048 }
 0x997   : > { %v5676_v56 = vpop.eup %5675  ;;  %v3299_v60 = vpack.c.bf16 %v3291_v10, %v3290_v38  ;;  %v3686_v5 = vmul.f32 %v5674_v18, %v8107_v48  ;;  %5695 = vrcp.f32 %v3664_v31  ;;  %p5712_p4 = scmp.ne.s32.totalorder %s8823_s11, %s5711_s16 }
 0x998   : > { %v5678_v43 = vpop.eup %5677  ;;  %v8439_v27 = vpop.permute.xlu1 %3864  ;;  %4120 = vrot.lane.b32.xlu1 %v9425_v36, %s5798_s17  ;;  %v3683_v63 = vmul.f32 %v5676_v56, %v9426_v28  ;;  %5697 = vrcp.f32 %v8420_v16 }
 0x999   : > { %v3720_v57 = vpop.permute.xlu0 %3719  ;;  %5014 = vmatmul.mubr.bf16.gmra.mrb[60].mxu1 %v3299_v60  ;;  %v3685_v40 = vmul.f32 %v5678_v43, %v9428_v25  ;;  %v5680_v30 = vpop.eup %5679  ;;  %v9435_v60 = vld [vmem:[#allocation61_spill] sm:$0xff]  ;;  %p5713_p5 = pnand %p5712_p4, %p5874_p10 }
 0x99a   : > { %5031 = vmatprep.subr.bf16.mxu0 %v3720_v57  ;;  %4098 = vrot.lane.b32.xlu0 %v9427_v50, %s5798_s17  ;;  %v3698_v2 = vpack.c.bf16 %v3684_v12, %v3683_v63  ;;  %v5682_v61 = vpop.eup %5681  ;;  %v3688_v26 = vmul.f32 %v5680_v30, %v8115_v13  ;;  %v9437_v63 = vld [vmem:[#allocation59_spill] sm:$0xff]  ;;  %v9439_v30 = vld [vmem:[#allocation88_spill] sm:$0xff] }
 0x99b   : > { %5032 = vmatpush3.bf16.msra.mxu0 %v3720_v57  ;;  %v3699_v45 = vpack.c.bf16 %v3686_v5, %v3685_v40  ;;  %v5684_v59 = vpop.eup %5683  ;;  %v3690_v9 = vmul.f32 %v5682_v61, %v8159_v4  ;;  %p5714_p6 = pneg %p5713_p5 }
 0x99c   : > { %v8450_v47 = vpop.permute.xlu1 %3868  ;;  %4124 = vrot.lane.b32.xlu1 %v8091_v53, %s5798_s17  ;;  %v5686_v22 = vpop.eup %5685  ;;  %v3687_v46 = vmul.f32 %v5684_v59, %v8112_v17  ;;  %v9433_v17 = vld [vmem:[#allocation30_spill] sm:$0xff] }
 0x99d   : > { %v8454_v48 = vpop.permute.xlu0 %3850  ;;  %v3689_v13 = vmul.f32 %v5686_v22, %v8134_v14  ;;  %v5688_v11 = vpop.eup %5687  ;;  %v9440_v59 = vld [vmem:[#allocation70_spill] sm:$0xff] }
 0x99e   : > { %5034 = vmatmul.mubr.bf16.vlgmr.msra.gmra.mrb[64].mxu0 %v3698_v2  ;;  %4102 = vrot.lane.b32.xlu0 %v9429_v15, %s5798_s17  ;;  %v3700_v52 = vpack.c.bf16 %v3688_v26, %v3687_v46  ;;  %v5690_v23 = vpop.eup %5689  ;;  %v3692_v38 = vmul.f32 %v5688_v11, %v8169_v37  ;;  %v9436_v37 = vld [vmem:[#allocation82_spill] sm:$0xff]  ;;  %v9444_v11 = vld [vmem:[#allocation32_spill] sm:$0xff] }
 0x99f   : > { %5037 = vmatprep.mubr.bf16.mxu0 %v3699_v45  ;;  %v3701_v58 = vpack.c.bf16 %v3690_v9, %v3689_v13  ;;  %v5692_v14 = vpop.eup %5691  ;;  %v3694_v42 = vmul.f32 %v5690_v23, %v8223_v6  ;;  %v4280_v57 = vsel %vm4274_vm1, %v9436_v37, %v8409_v49  ;;  %v9441_v22 = vld [vmem:[#allocation90_spill] sm:$0xff]  ;;  %v9446_v23 = vld [vmem:[#allocation69_spill] sm:$0xff] }
 0x9a0   : > { %v3873_v20 = vpop.permute.xlu1 %3872  ;;  %4128 = vrot.lane.b32.xlu1 %v8089_v32, %s5798_s17  ;;  %v9432_v32 = vld [vmem:[#allocation77_spill] sm:$0xff]  ;;  %v5694_v31 = vpop.eup %5693  ;;  %v3691_v43 = vmul.f32 %v5692_v14, %v8166_v39 }
 0x9a1   : > { %v8462_v53 = vpop.permute.xlu0 %3854  ;;  %v8467_v7 = vsel %vm4274_vm1, %v9430_v51, %v3873_v20  ;;  %v4276_v3 = vsel %vm4274_vm1, %v9432_v32, %v8383_v21  ;;  %v9434_v21 = vld [vmem:[#allocation74_spill] sm:$0xff]  ;;  %v3693_v62 = vmul.f32 %v5694_v31, %v8196_v35  ;;  %v5696_v36 = vpop.eup %5695  ;;  %v9438_v35 = vld [vmem:[#allocation76_spill] sm:$0xff]  ;;  %v4288_v32 = vsel %vm4274_vm1, %v9444_v11, %v8450_v47  ;;  %v9449_v37 = vld [vmem:[#allocation89_spill] sm:$0xff] }
 0x9a2   : > { %4106 = vrot.lane.b32.xlu0 %v9431_v34, %s5798_s17  ;;  %v4278_v16 = vsel %vm4274_vm1, %v9434_v21, %v8399_v19  ;;  %v3702_v12 = vpack.c.bf16 %v3692_v38, %v3691_v43  ;;  %v5698_v50 = vpop.eup %5697  ;;  %v3696_v39 = vmul.f32 %v5696_v36, %v8237_v24  ;;  %v4282_v25 = vsel %vm4274_vm1, %v9438_v35, %v8416_v55 }
 0x9a3   : > { %v3703_v28 = vpack.c.bf16 %v3694_v42, %v3693_v62  ;;  %v3695_v61 = vmul.f32 %v5698_v50, %v8230_v33  ;;  %v4275_v24 = vsel %vm4274_vm1, %v9440_v59, %v8376_v54  ;;  %v4284_v55 = vsel %vm4274_vm1, %v9441_v22, %v8429_v8  ;;  %v9443_v54 = vld [vmem:[#allocation87_spill] sm:$0xff] }
 0x9a4   : > { %v3909_v4 = vpop.permute.xlu1 %3908  ;;  %v4286_v34 = vsel %vm4274_vm1, %v9443_v54, %v8439_v27 }
 0x9a5   : > { %v8477_v29 = vpop.permute.xlu0 %3858  ;;  %v8480_v0 = vsel %vm4291_vm2, %v4276_v3, %v3909_v4  ;;  %v3704_v15 = vpack.c.bf16 %v3696_v39, %v3695_v61 }
 0x9a6   : > { %5038 = vmatmul.mubr.bf16.gmra.mrb[68].mxu0 %v3700_v52  ;;  %4110 = vrot.lane.b32.xlu0 %v9433_v17, %s5798_s17  ;;  %v4281_v17 = vsel %vm4274_vm1, %v9446_v23, %v8462_v53  ;;  %v9448_v53 = vld [vmem:[#allocation86_spill] sm:$0xff] }
 0x9a7   : > { %5041 = vmatprep.mubr.bf16.mxu0 %v3701_v58 }
 0x9a8   : > { %v3913_v10 = vpop.permute.xlu1 %3912 }
 0x9a9   : > { %v3863_v18 = vpop.permute.xlu0 %3862  ;;  %v4295_v56 = vsel %vm4291_vm2, %v4278_v16, %v3913_v10 }
 0x9aa   : > { %4114 = vrot.lane.b32.xlu0 %v9435_v60, %s5798_s17  ;;  %v4285_v43 = vsel %vm4274_vm1, %v9448_v53, %v3863_v18 }
 0x9ac   : > { %v3917_v19 = vpop.permute.xlu1 %3916 }
 0x9ad   : > { %v3867_v5 = vpop.permute.xlu0 %3866  ;;  %v4297_v6 = vsel %vm4291_vm2, %v4280_v57, %v3917_v19 }
 0x9ae   : > { %5042 = vmatmul.mubr.bf16.gmra.mrb[72].mxu0 %v3702_v12  ;;  %4118 = vrot.lane.b32.xlu0 %v9437_v63, %s5798_s17  ;;  %v4287_v57 = vsel %vm4274_vm1, %v9449_v37, %v3867_v5 }
 0x9af   : > { %5045 = vmatprep.mubr.bf16.mxu0 %v3703_v28 }
 0x9b0   : > { %v3921_v40 = vpop.permute.xlu1 %3920 }
 0x9b1   : > { %v3871_v2 = vpop.permute.xlu0 %3870  ;;  %v4299_v49 = vsel %vm4291_vm2, %v4282_v25, %v3921_v40 }
 0x9b2   : > { %v4289_v45 = vsel %vm4274_vm1, %v9439_v30, %v3871_v2  ;;  %4122 = vrot.lane.b32.xlu0 %v8087_v1, %s5798_s17  ;;  %v9442_v1 = vld [vmem:[#allocation66_spill] sm:$0xff] }
 0x9b3   : > { %v4277_v33 = vsel %vm4274_vm1, %v9442_v1, %v8392_v44 }
 0x9b4   : > { %v3925_v26 = vpop.permute.xlu1 %3924 }
 0x9b5   : > { %v3907_v20 = vpop.permute.xlu0 %3906  ;;  %v4301_v9 = vsel %vm4291_vm2, %v4284_v55, %v3925_v26 }
 0x9b6   : > { %v4292_v51 = vsel %vm4291_vm2, %v4275_v24, %v3907_v20  ;;  %5046 = vmatmul.mubr.bf16.gmra.mrb[76].mxu0 %v3704_v15  ;;  %4126 = vrot.lane.b32.xlu0 %v8083_v41, %s5798_s17  ;;  %v9445_v41 = vld [vmem:[#allocation73_spill] sm:$0xff]  ;;  %s5801_s17 = smov [#allocation4]  }
 0x9b7   : > { %v4279_v3 = vsel %vm4274_vm1, %v9445_v41, %v8454_v48  ;;  %v9447_v48 = vld [vmem:[#allocation33_spill] sm:$0xff] }
 0x9b8   : > { %v3929_v46 = vpop.permute.xlu1 %3928  ;;  %v4283_v21 = vsel %vm4274_vm1, %v9447_v48, %v8477_v29 }
 0x9b9   : > { %v3911_v8 = vpop.permute.xlu0 %3910  ;;  %v4303_v13 = vsel %vm4291_vm2, %v4286_v34, %v3929_v46 }
 0x9ba   : > { %v4294_v52 = vsel %vm4291_vm2, %v4277_v33, %v3911_v8 }
 0x9bc   : > { %v3933_v4 = vpop.permute.xlu1 %3932 }
 0x9bd   : > { %v3915_v44 = vpop.permute.xlu0 %3914  ;;  %v4305_v58 = vsel %vm4291_vm2, %v4288_v32, %v3933_v4 }
 0x9be   : > { %v4296_v27 = vsel %vm4291_vm2, %v4279_v3, %v3915_v44 }
 0x9c0   : > { %v3937_v14 = vpop.permute.xlu1 %3936 }
 0x9c1   : > { %v3919_v31 = vpop.permute.xlu0 %3918  ;;  %v4307_v38 = vsel %vm4291_vm2, %v8467_v7, %v3937_v14 }
 0x9c2   : > { %v4298_v47 = vsel %vm4291_vm2, %v4281_v17, %v3919_v31 }
 0x9c4   : > { %v3973_v16 = vpop.permute.xlu1 %3972 }
 0x9c5   : > { %v3923_v10 = vpop.permute.xlu0 %3922  ;;  %v4310_v42 = vsel %vm4308_vm3, %v8480_v0, %v3973_v16 }
 0x9c6   : > { %v4300_v60 = vsel %vm4291_vm2, %v4283_v21, %v3923_v10 }
 0x9c8   : > { %v3977_v62 = vpop.permute.xlu1 %3976 }
 0x9c9   : > { %v3927_v12 = vpop.permute.xlu0 %3926  ;;  %v4312_v7 = vsel %vm4308_vm3, %v4295_v56, %v3977_v62 }
 0x9ca   : > { %v4302_v36 = vsel %vm4291_vm2, %v4285_v43, %v3927_v12 }
 0x9cc   : > { %v3981_v29 = vpop.permute.xlu1 %3980 }
 0x9cd   : > { %v3931_v19 = vpop.permute.xlu0 %3930  ;;  %v4314_v28 = vsel %vm4308_vm3, %v4297_v6, %v3981_v29 }
 0x9ce   : > { %v4304_v0 = vsel %vm4291_vm2, %v4287_v57, %v3931_v19 }
 0x9d0   : > { %v3985_v63 = vpop.permute.xlu1 %3984 }
 0x9d1   : > { %v3935_v50 = vpop.permute.xlu0 %3934  ;;  %v4316_v39 = vsel %vm4308_vm3, %v4299_v49, %v3985_v63 }
 0x9d2   : > { %v4306_v18 = vsel %vm4291_vm2, %v4289_v45, %v3935_v50 }
 0x9d4   : > { %v3989_v35 = vpop.permute.xlu1 %3988 }
 0x9d5   : > { %v3971_v25 = vpop.permute.xlu0 %3970  ;;  %v4318_v56 = vsel %vm4308_vm3, %v4301_v9, %v3989_v35 }
 0x9d6   : > { %v4309_v40 = vsel %vm4308_vm3, %v4292_v51, %v3971_v25 }
 0x9d8   : > { %v3993_v2 = vpop.permute.xlu1 %3992 }
 0x9d9   : > { %v3975_v5 = vpop.permute.xlu0 %3974  ;;  %v4320_v30 = vsel %vm4308_vm3, %v4303_v13, %v3993_v2 }
 0x9da   : > { %v4311_v6 = vsel %vm4308_vm3, %v4294_v52, %v3975_v5 }
 0x9dc   : > { %v3997_v61 = vpop.permute.xlu1 %3996 }
 0x9dd   : > { %v3979_v15 = vpop.permute.xlu0 %3978  ;;  %v4322_v59 = vsel %vm4308_vm3, %v4305_v58, %v3997_v61 }
 0x9de   : > { %v4313_v49 = vsel %vm4308_vm3, %v4296_v27, %v3979_v15 }
 0x9e0   : > { %v4001_v24 = vpop.permute.xlu1 %4000 }
 0x9e1   : > { %v3983_v45 = vpop.permute.xlu0 %3982  ;;  %v4324_v22 = vsel %vm4308_vm3, %v4307_v38, %v4001_v24 }
 0x9e2   : > { %v4315_v55 = vsel %vm4308_vm3, %v4298_v47, %v3983_v45 }
 0x9e4   : > { %v4037_v26 = vpop.permute.xlu1 %4036 }
 0x9e5   : > { %v3987_v20 = vpop.permute.xlu0 %3986  ;;  %v8567_v9 = vsel %vm344_vm0, %v4310_v42, %v4037_v26 }
 0x9e6   : > { %v4317_v51 = vsel %vm4308_vm3, %v4300_v60, %v3987_v20 }
 0x9e8   : > { %v4041_v1 = vpop.permute.xlu1 %4040 }
 0x9e9   : > { %v3991_v33 = vpop.permute.xlu0 %3990  ;;  %v8571_v54 = vsel %vm344_vm0, %v4312_v7, %v4041_v1 }
 0x9ea   : > { %v4319_v34 = vsel %vm4308_vm3, %v4302_v36, %v3991_v33 }
 0x9ec   : > { %v4045_v46 = vpop.permute.xlu1 %4044 }
 0x9ed   : > { %v3995_v8 = vpop.permute.xlu0 %3994  ;;  %v8575_v13 = vsel %vm344_vm0, %v4314_v28, %v4045_v46 }
 0x9ee   : > { %v4321_v52 = vsel %vm4308_vm3, %v4304_v0, %v3995_v8 }
 0x9f0   : > { %v4049_v11 = vpop.permute.xlu1 %4048 }
 0x9f1   : > { %v3999_v32 = vpop.permute.xlu0 %3998  ;;  %v8579_v41 = vsel %vm344_vm0, %v4316_v39, %v4049_v11 }
 0x9f2   : > { %v4323_v3 = vsel %vm4308_vm3, %v4306_v18, %v3999_v32 }
 0x9f4   : > { %v4053_v4 = vpop.permute.xlu1 %4052 }
 0x9f5   : > { %v4035_v44 = vpop.permute.xlu0 %4034  ;;  %v8583_v58 = vsel %vm344_vm0, %v4318_v56, %v4053_v4 }
 0x9f6   : > { %v8586_v27 = vsel %vm344_vm0, %v4309_v40, %v4035_v44 }
 0x9f8   : > { %v4057_v23 = vpop.permute.xlu1 %4056 }
 0x9f9   : > { %v4039_v17 = vpop.permute.xlu0 %4038  ;;  %v8589_v14 = vsel %vm344_vm0, %v4320_v30, %v4057_v23 }
 0x9fa   : > { %v8592_v31 = vsel %vm344_vm0, %v4311_v6, %v4039_v17 }
 0x9fc   : > { %v4061_v38 = vpop.permute.xlu1 %4060 }
 0x9fd   : > { %v4043_v47 = vpop.permute.xlu0 %4042  ;;  %v8595_v48 = vsel %vm344_vm0, %v4322_v59, %v4061_v38 }
 0x9fe   : > { %v8598_v21 = vsel %vm344_vm0, %v4313_v49, %v4043_v47 }
 0xa00   : > { %v4065_v16 = vpop.permute.xlu1 %4064 }
 0xa01   : > { %v4047_v10 = vpop.permute.xlu0 %4046  ;;  %v8601_v42 = vsel %vm344_vm0, %v4324_v22, %v4065_v16 }
 0xa02   : > { %v8604_v60 = vsel %vm344_vm0, %v4315_v55, %v4047_v10 }
 0xa04   : > { %v4101_v11 = vpop.permute.xlu1 %4100 }
 0xa05   : > { %v4051_v53 = vpop.permute.xlu0 %4050 }
 0xa06   : > { %v8607_v43 = vsel %vm344_vm0, %v4317_v51, %v4051_v53 }
 0xa09   : > { %v4055_v62 = vpop.permute.xlu0 %4054 }
 0xa0a   : > { %v8610_v12 = vsel %vm344_vm0, %v4319_v34, %v4055_v62 }
 0xa0d   : > { %v4059_v7 = vpop.permute.xlu0 %4058 }
 0xa0e   : > { %v8613_v36 = vsel %vm344_vm0, %v4321_v52, %v4059_v7 }
 0xa11   : > { %v4063_v37 = vpop.permute.xlu0 %4062 }
 0xa12   : > { %v8616_v57 = vsel %vm344_vm0, %v4323_v3, %v4063_v37  ;;  %v4105_v3 = vpop.permute.xlu1 %4104 }
 0xa15   : > { %v4099_v52 = vpop.permute.xlu0 %4098 }
 0xa16   : > { %v8634_v44 = vpop.permute.xlu1 %4108 }
 0xa19   : > { %v4103_v32 = vpop.permute.xlu0 %4102 }
 0xa1a   : > { %v8638_v17 = vpop.permute.xlu1 %4112 }
 0xa1d   : > { %v4107_v4 = vpop.permute.xlu0 %4106 }
 0xa1e   : > { %v8642_v47 = vpop.permute.xlu1 %4116 }
 0xa21   : > { %v8636_v23 = vpop.permute.xlu0 %4110 }
 0xa22   : > { %v8646_v10 = vpop.permute.xlu1 %4120 }
 0xa25   : > { %v8640_v38 = vpop.permute.xlu0 %4114 }
 0xa26   : > { %v8650_v62 = vpop.permute.xlu1 %4124 }
 0xa29   : > { %v8644_v16 = vpop.permute.xlu0 %4118 }
 0xa2a   : > { %v8654_v37 = vpop.permute.xlu1 %4128 }
 0xa2d   : > { %v8648_v53 = vpop.permute.xlu0 %4122 }
 0xa31   : > { %v8652_v7 = vpop.permute.xlu0 %4126 }
 0xa50   : > { %v5003_v29 = vpop.f32.mrb[48].mxu1 }
 0xa51   : > { %v3358_v19 = vpop.f32.mrb[49].mxu1 }
 0xa52   : > { %4162 = vrot.lane.b32.xlu0 %v3358_v19, %s5799_s18  ;;  %v5004_v28 = vpop.f32.mrb[50].mxu1 }
 0xa53   : > { %v3361_v0 = vpop.f32.mrb[51].mxu1 }
 0xa54   : > { %4164 = vrot.lane.b32.xlu1 %v3361_v0, %s5799_s18 }
 0xa56   : > { %4166 = vrot.lane.b32.xlu0 %v5003_v29, %s5799_s18 }
 0xa58   : > { %4168 = vrot.lane.b32.xlu1 %v5004_v28, %s5799_s18  ;;  %v5007_v63 = vpop.f32.mrb[52].mxu1 }
 0xa59   : > { %v3374_v50 = vpop.f32.mrb[53].mxu1 }
 0xa5a   : > { %4170 = vrot.lane.b32.xlu0 %v3374_v50, %s5799_s18  ;;  %v5008_v39 = vpop.f32.mrb[54].mxu1 }
 0xa5b   : > { %v3377_v18 = vpop.f32.mrb[55].mxu1 }
 0xa5c   : > { %4172 = vrot.lane.b32.xlu1 %v3377_v18, %s5799_s18 }
 0xa5e   : > { %4174 = vrot.lane.b32.xlu0 %v5007_v63, %s5799_s18 }
 0xa60   : > { %4176 = vrot.lane.b32.xlu1 %v5008_v39, %s5799_s18  ;;  %v5011_v35 = vpop.f32.mrb[56].mxu1 }
 0xa61   : > { %v3390_v25 = vpop.f32.mrb[57].mxu1 }
 0xa62   : > { %4178 = vrot.lane.b32.xlu0 %v3390_v25, %s5799_s18  ;;  %v5012_v56 = vpop.f32.mrb[58].mxu1 }
 0xa63   : > { %v3393_v40 = vpop.f32.mrb[59].mxu1 }
 0xa64   : > { %4180 = vrot.lane.b32.xlu1 %v3393_v40, %s5799_s18 }
 0xa66   : > { %4182 = vrot.lane.b32.xlu0 %v5011_v35, %s5799_s18 }
 0xa68   : > { %4184 = vrot.lane.b32.xlu1 %v5012_v56, %s5799_s18 }
 0xa6c   : > { %v5015_v2 = vpop.f32.mrb[60].mxu1 }
 0xa6d   : > { %v3406_v5 = vpop.f32.mrb[61].mxu1 }
 0xa6e   : > { %4186 = vrot.lane.b32.xlu0 %v3406_v5, %s5799_s18  ;;  %v5016_v30 = vpop.f32.mrb[62].mxu1 }
 0xa6f   : > { %v3409_v6 = vpop.f32.mrb[63].mxu1 }
 0xa70   : > { %4188 = vrot.lane.b32.xlu1 %v3409_v6, %s5799_s18 }
 0xa71   : > { %v5035_v61 = vpop.f32.mrb[64].mxu0 }
 0xa72   : > { %v3763_v15 = vpop.f32.mrb[65].mxu0  ;;  %4190 = vrot.lane.b32.xlu0 %v5015_v2, %s5799_s18 }
 0xa73   : > { %v5036_v59 = vpop.f32.mrb[66].mxu0 }
 0xa74   : > { %v3766_v49 = vpop.f32.mrb[67].mxu0  ;;  %4192 = vrot.lane.b32.xlu1 %v5016_v30, %s5799_s18  ;;  %s5715_s18 = sshll.u32 %s5801_s17, 4  ;;  %s5716_s18 = int_to_ptr.vmem [resolvable:$false] %s5715_s18 }
 0xa75   : > { %p5718_p7 = scmp.lt.s32.totalorder %s8823_s11, %s5716_s18 }
 0xa76   : > { %4226 = vrot.lane.b32.xlu0 %v3763_v15, %s5800_s19 }
 0xa78   : > { %4228 = vrot.lane.b32.xlu1 %v3766_v49, %s5800_s19 }
 0xa79   : > { %v5039_v24 = vpop.f32.mrb[68].mxu0 }
 0xa7a   : > { %v3779_v45 = vpop.f32.mrb[69].mxu0  ;;  %4230 = vrot.lane.b32.xlu0 %v5035_v61, %s5800_s19  ;;  %v4342_v61 = vsel %vm4341_vm5, %v8586_v27, %v4099_v52  ;;  %v4344_v27 = vsel %vm4341_vm5, %v8592_v31, %v4103_v32  ;;  %v4346_v32 = vsel %vm4341_vm5, %v8598_v21, %v4107_v4 }
 0xa7b   : > { %v5040_v22 = vpop.f32.mrb[70].mxu0 }
 0xa7c   : > { %v3782_v55 = vpop.f32.mrb[71].mxu0  ;;  %4232 = vrot.lane.b32.xlu1 %v5036_v59, %s5800_s19  ;;  %v8684_v59 = vld [vmem:[%s269_s29] ss:$0 sm:$0xff] }
 0xa7e   : > { %4234 = vrot.lane.b32.xlu0 %v3779_v45, %s5800_s19 }
 0xa80   : > { %4236 = vrot.lane.b32.xlu1 %v3782_v55, %s5800_s19 }
 0xa81   : > { %v5043_v26 = vpop.f32.mrb[72].mxu0 }
 0xa82   : > { %v3795_v20 = vpop.f32.mrb[73].mxu0  ;;  %4238 = vrot.lane.b32.xlu0 %v5039_v24, %s5800_s19  ;;  %v4343_v24 = vsel %vm4341_vm5, %v8567_v9, %v4101_v11  ;;  %v4345_v9 = vsel %vm4341_vm5, %v8571_v54, %v4105_v3 }
 0xa83   : > { %v5044_v51 = vpop.f32.mrb[74].mxu0 }
 0xa84   : > { %v3798_v1 = vpop.f32.mrb[75].mxu0  ;;  %4240 = vrot.lane.b32.xlu1 %v5040_v22, %s5800_s19 }
 0xa86   : > { %4242 = vrot.lane.b32.xlu0 %v3795_v20, %s5800_s19 }
 0xa88   : > { %4244 = vrot.lane.b32.xlu1 %v3798_v1, %s5800_s19 }
 0xa89   : > { %v5047_v33 = vpop.f32.mrb[76].mxu0 }
 0xa8a   : > { %v3811_v34 = vpop.f32.mrb[77].mxu0  ;;  %4246 = vrot.lane.b32.xlu0 %v5043_v26, %s5800_s19 }
 0xa8b   : > { %v5048_v46 = vpop.f32.mrb[78].mxu0 }
 0xa8c   : > { %v3814_v8 = vpop.f32.mrb[79].mxu0  ;;  %4248 = vrot.lane.b32.xlu1 %v5044_v51, %s5800_s19 }
 0xa8e   : > { %4250 = vrot.lane.b32.xlu0 %v3811_v34, %s5800_s19 }
 0xa90   : > { %4252 = vrot.lane.b32.xlu1 %v3814_v8, %s5800_s19 }
 0xa92   : > { %4254 = vrot.lane.b32.xlu0 %v5047_v33, %s5800_s19 }
 0xa94   : > { %4256 = vrot.lane.b32.xlu1 %v5048_v46, %s5800_s19  ;;  %s5717_s19 = scalar_lea.vmem %s5716_s18, 4096 }
 0xa95   : > { %p5719_p8 = scmp.lt.s32.totalorder %s5717_s19, %s5711_s16 }
 0xa97   : > { %p5720_p9 = por %p5719_p8, %p5718_p7 }
 0xa99   : > { %p5721_p12 = pnand %p5720_p9, %p5714_p6 }
 0xac4   : > { %v4163_v29 = vpop.permute.xlu0 %4162 }
 0xac5   : > { %v4359_v15 = vsel %vm4358_vm4, %v4342_v61, %v4163_v29 }
 0xac6   : > { %v4165_v19 = vpop.permute.xlu1 %4164 }
 0xac7   : > { %v4360_v22 = vsel %vm4358_vm4, %v4343_v24, %v4165_v19 }
 0xac8   : > { %v4167_v28 = vpop.permute.xlu0 %4166 }
 0xac9   : > { %v4361_v1 = vsel %vm4358_vm4, %v4344_v27, %v4167_v28 }
 0xaca   : > { %v4169_v0 = vpop.permute.xlu1 %4168 }
 0xacb   : > { %v4362_v8 = vsel %vm4358_vm4, %v4345_v9, %v4169_v0  ;;  %v4347_v0 = vsel %vm4341_vm5, %v8575_v13, %v8634_v44 }
 0xacc   : > { %v4171_v63 = vpop.permute.xlu0 %4170 }
 0xacd   : > { %v4363_v29 = vsel %vm4358_vm4, %v4346_v32, %v4171_v63  ;;  %v4348_v63 = vsel %vm4341_vm5, %v8604_v60, %v8636_v23 }
 0xace   : > { %v4173_v50 = vpop.permute.xlu1 %4172 }
 0xacf   : > { %v4364_v4 = vsel %vm4358_vm4, %v4347_v0, %v4173_v50  ;;  %v4349_v50 = vsel %vm4341_vm5, %v8579_v41, %v8638_v17  ;;  %v4356_v0 = vsel %vm4341_vm5, %v8616_v57, %v8652_v7 }
 0xad0   : > { %v4175_v39 = vpop.permute.xlu0 %4174 }
 0xad1   : > { %v4365_v44 = vsel %vm4358_vm4, %v4348_v63, %v4175_v39  ;;  %v4350_v39 = vsel %vm4341_vm5, %v8607_v43, %v8640_v38 }
 0xad2   : > { %v8656_v18 = vpop.permute.xlu1 %4176 }
 0xad3   : > { %v4366_v23 = vsel %vm4358_vm4, %v4349_v50, %v8656_v18  ;;  %v4351_v18 = vsel %vm4341_vm5, %v8583_v58, %v8642_v47 }
 0xad4   : > { %v8659_v35 = vpop.permute.xlu0 %4178 }
 0xad5   : > { %v4367_v17 = vsel %vm4358_vm4, %v4350_v39, %v8659_v35  ;;  %v4352_v35 = vsel %vm4341_vm5, %v8610_v12, %v8644_v16 }
 0xad6   : > { %v8661_v25 = vpop.permute.xlu1 %4180 }
 0xad7   : > { %v4368_v38 = vsel %vm4358_vm4, %v4351_v18, %v8661_v25  ;;  %v4353_v25 = vsel %vm4341_vm5, %v8589_v14, %v8646_v10 }
 0xad8   : > { %v8663_v56 = vpop.permute.xlu0 %4182 }
 0xad9   : > { %v4369_v47 = vsel %vm4358_vm4, %v4352_v35, %v8663_v56  ;;  %v4354_v56 = vsel %vm4341_vm5, %v8613_v36, %v8648_v53 }
 0xada   : > { %v8665_v40 = vpop.permute.xlu1 %4184 }
 0xadb   : > { %v4370_v16 = vsel %vm4358_vm4, %v4353_v25, %v8665_v40  ;;  %v4355_v40 = vsel %vm4341_vm5, %v8595_v48, %v8650_v62 }
 0xae0   : > { %v8667_v2 = vpop.permute.xlu0 %4186 }
 0xae1   : > { %v4371_v10 = vsel %vm4358_vm4, %v4354_v56, %v8667_v2 }
 0xae2   : > { %v8669_v5 = vpop.permute.xlu1 %4188 }
 0xae3   : > { %v4372_v53 = vsel %vm4358_vm4, %v4355_v40, %v8669_v5 }
 0xae4   : > { %v8671_v30 = vpop.permute.xlu0 %4190 }
 0xae6   : > { %v8677_v6 = vpop.permute.xlu1 %4192 }
 0xae8   : > { %v4227_v49 = vpop.permute.xlu0 %4226 }
 0xae9   : > { %v4376_v45 = vsel %vm4375_vm6, %v4359_v15, %v4227_v49 }
 0xaea   : > { %v4393_v55 = vsel %vm4392_vm7, %v4376_v45, 0.0  ;;  %v4229_v26 = vpop.permute.xlu1 %4228 }
 0xaeb   : > { %v4416_v20 = vadd.f32 %v8684_v59, %v4393_v55  ;;  %v4377_v51 = vsel %vm4375_vm6, %v4360_v22, %v4229_v26 }
 0xaec   : > { %v4394_v33 = vsel %vm4392_vm7, %v4377_v51, 0.0  ;;  %v4231_v34 = vpop.permute.xlu0 %4230 }
 0xaed   : > { %4432 = vst [vmem:[%s8699_s9] sm:$0xff] %v4416_v20  ;;  %v4417_v31 = vadd.f32 %v8684_v59, %v4394_v33  ;;  %v4378_v46 = vsel %vm4375_vm6, %v4361_v1, %v4231_v34 }
 0xaee   : > { %v4395_v52 = vsel %vm4392_vm7, %v4378_v46, 0.0  ;;  %v4233_v11 = vpop.permute.xlu1 %4232 }
 0xaef   : > { %4433 = vst [vmem:[%s8699_s9 + $0x8] sm:$0xff] %v4417_v31  ;;  %v4418_v54 = vadd.f32 %v8684_v59, %v4395_v52  ;;  %v4379_v3 = vsel %vm4375_vm6, %v4362_v8, %v4233_v11 }
 0xaf0   : > { %v4396_v19 = vsel %vm4392_vm7, %v4379_v3, 0.0  ;;  %v4235_v28 = vpop.permute.xlu0 %4234 }
 0xaf1   : > { %4434 = vst [vmem:[%s8699_s9 + $0x10] sm:$0xff] %v4418_v54  ;;  %v4419_v61 = vadd.f32 %v8684_v59, %v4396_v19  ;;  %v4380_v21 = vsel %vm4375_vm6, %v4363_v29, %v4235_v28 }
 0xaf2   : > { %v4397_v15 = vsel %vm4392_vm7, %v4380_v21, 0.0  ;;  %v4237_v49 = vpop.permute.xlu1 %4236 }
 0xaf3   : > { %4435 = vst [vmem:[%s8699_s9 + $0x18] sm:$0xff] %v4419_v61  ;;  %v4420_v24 = vadd.f32 %v8684_v59, %v4397_v15  ;;  %v4381_v13 = vsel %vm4375_vm6, %v4364_v4, %v4237_v49  ;;  %v4373_v61 = vsel %vm4358_vm4, %v4356_v0, %v8671_v30  ;;  %v4357_v4 = vsel %vm4341_vm5, %v8601_v42, %v8654_v37 }
 0xaf4   : > { %v4398_v45 = vsel %vm4392_vm7, %v4381_v13, 0.0  ;;  %v4239_v22 = vpop.permute.xlu0 %4238  ;;  %v4374_v15 = vsel %vm4358_vm4, %v4357_v4, %v8677_v6 }
 0xaf5   : > { %4436 = vst [vmem:[%s8699_s9 + $0x20] sm:$0xff] %v4420_v24  ;;  %v4421_v55 = vadd.f32 %v8684_v59, %v4398_v45  ;;  %v4382_v60 = vsel %vm4375_vm6, %v4365_v44, %v4239_v22 }
 0xaf6   : > { %v4399_v26 = vsel %vm4392_vm7, %v4382_v60, 0.0  ;;  %v4241_v27 = vpop.permute.xlu1 %4240 }
 0xaf7   : > { %4437 = vst [vmem:[%s8699_s9 + $0x28] sm:$0xff] %v4421_v55  ;;  %v4422_v20 = vadd.f32 %v8684_v59, %v4399_v26  ;;  %v4383_v41 = vsel %vm4375_vm6, %v4366_v23, %v4241_v27 }
 0xaf8   : > { %v4400_v51 = vsel %vm4392_vm7, %v4383_v41, 0.0  ;;  %v4243_v1 = vpop.permute.xlu0 %4242 }
 0xaf9   : > { %4438 = vst [vmem:[%s8699_s9 + $0x30] sm:$0xff] %v4422_v20  ;;  %v4423_v33 = vadd.f32 %v8684_v59, %v4400_v51  ;;  %v4384_v43 = vsel %vm4375_vm6, %v4367_v17, %v4243_v1 }
 0xafa   : > { %v4401_v34 = vsel %vm4392_vm7, %v4384_v43, 0.0  ;;  %v4245_v9 = vpop.permute.xlu1 %4244 }
 0xafb   : > { %4439 = vst [vmem:[%s8699_s9 + $0x38] sm:$0xff] %v4423_v33  ;;  %v4424_v31 = vadd.f32 %v8684_v59, %v4401_v34  ;;  %v4385_v58 = vsel %vm4375_vm6, %v4368_v38, %v4245_v9 }
 0xafc   : > { %v4402_v46 = vsel %vm4392_vm7, %v4385_v58, 0.0  ;;  %v4247_v8 = vpop.permute.xlu0 %4246 }
 0xafd   : > { %4440 = vst [vmem:[%s8699_s9 + $0x40] sm:$0xff] %v4424_v31  ;;  %v4425_v52 = vadd.f32 %v8684_v59, %v4402_v46  ;;  %v4386_v12 = vsel %vm4375_vm6, %v4369_v47, %v4247_v8 }
 0xafe   : > { %v4403_v11 = vsel %vm4392_vm7, %v4386_v12, 0.0  ;;  %v4249_v32 = vpop.permute.xlu1 %4248 }
 0xaff   : > { %4441 = vst [vmem:[%s8699_s9 + $0x48] sm:$0xff] %v4425_v52  ;;  %v4426_v54 = vadd.f32 %v8684_v59, %v4403_v11  ;;  %v4387_v14 = vsel %vm4375_vm6, %v4370_v16, %v4249_v32 }
 0xb00   : > { %v4404_v3 = vsel %vm4392_vm7, %v4387_v14, 0.0  ;;  %v4251_v29 = vpop.permute.xlu0 %4250 }
 0xb01   : > { %4442 = vst [vmem:[%s8699_s9 + $0x50] sm:$0xff] %v4426_v54  ;;  %v4427_v19 = vadd.f32 %v8684_v59, %v4404_v3  ;;  %v4388_v36 = vsel %vm4375_vm6, %v4371_v10, %v4251_v29 }
 0xb02   : > { %v4405_v28 = vsel %vm4392_vm7, %v4388_v36, 0.0  ;;  %v4253_v2 = vpop.permute.xlu1 %4252 }
 0xb03   : > { %4443 = vst [vmem:[%s8699_s9 + $0x58] sm:$0xff] %v4427_v19  ;;  %v4428_v48 = vadd.f32 %v8684_v59, %v4405_v28  ;;  %v4389_v62 = vsel %vm4375_vm6, %v4372_v53, %v4253_v2 }
 0xb04   : > { %v4406_v21 = vsel %vm4392_vm7, %v4389_v62, 0.0  ;;  %v4255_v5 = vpop.permute.xlu0 %4254 }
 0xb05   : > { %4444 = vst [vmem:[%s8699_s9 + $0x60] sm:$0xff] %v4428_v48  ;;  %v4429_v57 = vadd.f32 %v8684_v59, %v4406_v21  ;;  %v4390_v7 = vsel %vm4375_vm6, %v4373_v61, %v4255_v5 }
 0xb06   : > { %v4407_v30 = vsel %vm4392_vm7, %v4390_v7, 0.0  ;;  %v4257_v49 = vpop.permute.xlu1 %4256 }
 0xb07   : > { %4445 = vst [vmem:[%s8699_s9 + $0x68] sm:$0xff] %v4429_v57  ;;  %v4430_v63 = vadd.f32 %v8684_v59, %v4407_v30  ;;  %v4391_v42 = vsel %vm4375_vm6, %v4374_v15, %v4257_v49 }
 0xb08   : > { %v4408_v37 = vsel %vm4392_vm7, %v4391_v42, 0.0 }
 0xb09   : > { %4446 = vst [vmem:[%s8699_s9 + $0x70] sm:$0xff] %v4430_v63  ;;  %v4431_v6 = vadd.f32 %v8684_v59, %v4408_v37 }
 0xb0b   : > { %4447 = vst [vmem:[%s8699_s9 + $0x78] sm:$0xff] %v4431_v6 }
 0xb0c   : > { %5724 = shalt.err (!%p5721_p12)
}
 0xb0d   : > { %s5725_s20 = scalar_lea.hbm %s8819_s15, 2048  ;;  %s5729_s27 = scalar_lea.hbm %s8875_s5, 12288 }
 0xb0e   : > { %p5726_p13 = scmp.ne.s32.totalorder %s8819_s15, %s5725_s20  ;;  %p5730_p2 = scmp.lt.u32.totalorder %s8819_s15, %s8875_s5 }
 0xb0f   : > { %p5731_p3 = scmp.lt.u32.totalorder %s5729_s27, %s5725_s20  ;;  %p5733_p5 = scmp.lt.u32.totalorder %s5725_s20, %s8819_s15 }
 0xb10   : > { %p5727_p0 = pnand %p5726_p13, %p5874_p10 }
 0xb11   : > { %p5732_p4 = por %p5731_p3, %p5730_p2 }
 0xb12   : > { %p5728_p1 = pneg %p5727_p0 }
 0xb13   : > { %p5734_p6 = por %p5733_p5, %p5732_p4 }
 0xb15   : > { %p5735_p7 = pnand %p5734_p6, %p5728_p1 }
 0xb17   : > { %5738 = shalt.err (!%p5735_p7)
}
 0xb18   : > { %s5802_s9 = smov 128  }
 0xb19   : > { %5049 = dma.vmem_to_hbm [thread:$0]  (%p5874_p10), %s8823_s11, 2048, %s8819_s15, %s8828_s26, %s5802_s9, %s5802_s9, %s5794_s13  }
 0xb1a PF: > { %p5055_p8 = scmp.ge.s32.totalorder %s5775_s25, 2  ;;  %s4477_s10 = sand.u32 1, %s5763_s23  }
 0xb1b   : > { %s4478_s12 = scalar_lea.sflag [#allocation5], %s4477_s10 }
 0xb1c   : > { %p5052_p9 = pnand %p5055_p8, %p5878_p11 }
 0xb1e   : > { %5758 = dma.done.wait (!%p5052_p9), %s4478_s12, 2048  }
 0xb1f   : > { %5760 = vsyncadd (!%p5052_p9), %s4478_s12, 4294965248  ;;  %p21_p12 = scmp.ge.s32.totalorder %s5861_s28, 8   ;;  %s9450_s23 = smov %s5767_s24 }
 0xb20   : > { %s9451_s24 = smov %s5771_s0  ;;  %s9452_s0 = smov %s5872_s6 }
 0xb21   : > { %s9453_s25 = smov %s5861_s28  ;;  %23 = sbr.rel (!%p21_p12) target bundleno = 18 (0x12), region = 80 }
 0xb28   :  { %4483 = vsyncpa [#allocation5], 1 }
 0xb29   :  { %4485 = vsyncpa [#allocation5 + $0x1], 1 }

</bundles_post_ra>
